<compile_context>
chip_gen: v7x
topology: tpu7x:2x2x1
jax: 0.10.0
libtpu: 0.0.40
codegen_flags: <defaults>
</compile_context>

<pallas_src>
import jax
import jax.numpy as jnp
from jax import lax
from jax.experimental import pallas as pl
from jax.experimental.pallas import tpu as pltpu
import numpy as np

EPS = 1e-5
NEG_SLOPE = 0.1
LANE = 128


def _round_up(x, m):
    return (x + m - 1) // m * m


# ----------------------------------------------------------------------------
# Fused kernel.  One grid step = (one batch image, one residual block).
#   x_ref:   (1, H, W, Cp)  bf16   lane-padded input image
#   w1_ref:  (1, Cp, Chp)   bf16   1x1 conv weights for this block
#   s1/b1:   (1, 1, Chp)    f32    folded BN1 scale / bias
#   w2_ref:  (1, 9, Chp, Cp) bf16  3x3 conv weights, tap-major (t = ky*3+kx)
#   s2/b2:   (1, 1, Cp)     f32    folded BN2 scale / bias
#   o_ref:   (1, H, W, Cp)  bf16   written only at the last block
#   act_ref: VMEM (M, Cp)   f32    residual carry across blocks
#   ybuf_ref: VMEM (M + 2*(W+8), 3*Chp) f32
#            zero-guarded [left | center | right] column-masked copies of the
#            1x1 output; statically offset slices of it feed the 3x3 matmuls.
# ----------------------------------------------------------------------------
def fused_resblock_kernel(x_ref, w1_ref, s1_ref, b1_ref, w2_ref, s2_ref,
                          b2_ref, o_ref, act_ref, ybuf_ref):
    _, H, W, Cp = x_ref.shape
    Chp = w1_ref.shape[2]
    M = H * W
    PAD = W + 8                       # zero guard rows above / below the data

    b = pl.program_id(1)
    nb = pl.num_programs(1)

    # ---- once per image: load the residual carry, zero the guard rows ------
    @pl.when(b == 0)
    def _init():
        act_ref[...] = x_ref[...].reshape(M, Cp).astype(jnp.float32)
        ybuf_ref[0:PAD, :] = jnp.zeros((PAD, 3 * Chp), jnp.float32)
        ybuf_ref[PAD + M:PAD + M + PAD, :] = jnp.zeros((PAD, 3 * Chp),
                                                       jnp.float32)

    # ---- stage 1: 1x1 conv (bf16 x bf16 -> f32 MXU) + folded BN + LeakyReLU -
    z1 = jnp.dot(act_ref[...].astype(jnp.bfloat16), w1_ref[0],
                 preferred_element_type=jnp.float32)
    z1 = z1 * s1_ref[0] + b1_ref[0]
    y = jnp.maximum(z1, NEG_SLOPE * z1)                     # (M, Chp) f32

    # ---- stage 2: aligned stores of column-masked left/center/right copies -
    col = lax.broadcasted_iota(jnp.int32, (M, 1), 0) % W
    ybuf_ref[PAD:PAD + M, 0:Chp] = jnp.where(col != W - 1, y, 0.0)   # dx = -1
    ybuf_ref[PAD:PAD + M, Chp:2 * Chp] = y                            # dx =  0
    ybuf_ref[PAD:PAD + M, 2 * Chp:3 * Chp] = jnp.where(col != 0, y, 0.0)  # +1

    # ---- stage 3: 3x3 conv as 9 accumulating MXU matmuls (K = Chp each) -----
    # out[m] += ybuf[PAD + m + (ky-1)*W + (kx-1), block kx] @ w2[ky, kx]
    # Row-OOB taps hit the zero guard rows; column-OOB taps hit masked zeros.
    acc = None
    for ky in range(3):
        for kx in range(3):
            s = PAD + (ky - 1) * W + (kx - 1)
            lhs = ybuf_ref[s:s + M, kx * Chp:(kx + 1) * Chp].astype(jnp.bfloat16)
            part = jnp.dot(lhs, w2_ref[0, ky * 3 + kx],
                           preferred_element_type=jnp.float32)
            acc = part if acc is None else acc + part

    # ---- folded BN2 + LeakyReLU + residual add ------------------------------
    z2 = acc * s2_ref[0] + b2_ref[0]
    z2 = jnp.maximum(z2, NEG_SLOPE * z2)
    new = z2 + act_ref[...]             # residual re-read (still VMEM-resident)
    act_ref[...] = new                  # carry to the next block

    @pl.when(b == nb - 1)
    def _store():
        o_ref[...] = new.reshape(1, H, W, Cp).astype(o_ref.dtype)


# ----------------------------------------------------------------------------
# Wrapper: NCHW f32 in/out, lane-pads channels once, single fused pallas_call
# over (batch, nblocks).
# ----------------------------------------------------------------------------
def res_block_forward(x_nchw, params):
    w1_all, s1_all, b1_all, w2_all, s2_all, b2_all = params
    N, C, H, W = x_nchw.shape
    NB, Cp, Chp = w1_all.shape
    M = H * W
    assert W % 8 == 0, "W must be a multiple of 8 (sublane) for this kernel"

    x = jnp.transpose(x_nchw, (0, 2, 3, 1))                  # NCHW -> NHWC
    if Cp != C:
        x = jnp.pad(x, ((0, 0), (0, 0), (0, 0), (0, Cp - C)))
    x = x.astype(jnp.bfloat16)

    flops = 2 * N * NB * M * (Cp * Chp + 9 * Chp * Cp)
    bytes_accessed = (N * M * Cp * 2 * 2                      # x in + out (bf16)
                      + int(w1_all.size) * 2 + int(w2_all.size) * 2
                      + (int(s1_all.size) + int(b1_all.size)
                         + int(s2_all.size) + int(b2_all.size)) * 4)

    grid_spec = pltpu.PrefetchScalarGridSpec(
        num_scalar_prefetch=0,
        grid=(N, NB),
        in_specs=[
            pl.BlockSpec((1, H, W, Cp), lambda n, b: (n, 0, 0, 0)),    # x
            pl.BlockSpec((1, Cp, Chp), lambda n, b: (b, 0, 0)),        # w1
            pl.BlockSpec((1, 1, Chp), lambda n, b: (b, 0, 0)),         # s1
            pl.BlockSpec((1, 1, Chp), lambda n, b: (b, 0, 0)),         # b1
            pl.BlockSpec((1, 9, Chp, Cp), lambda n, b: (b, 0, 0, 0)),  # w2
            pl.BlockSpec((1, 1, Cp), lambda n, b: (b, 0, 0)),          # s2
            pl.BlockSpec((1, 1, Cp), lambda n, b: (b, 0, 0)),          # b2
        ],
        out_specs=pl.BlockSpec((1, H, W, Cp), lambda n, b: (n, 0, 0, 0)),
        scratch_shapes=[
            pltpu.VMEM((M, Cp), jnp.float32),                     # act carry
            pltpu.VMEM((M + 2 * (W + 8), 3 * Chp), jnp.float32),  # guarded l/c/r
        ],
    )

    out = pl.pallas_call(
        fused_resblock_kernel,
        out_shape=jax.ShapeDtypeStruct((N, H, W, Cp), jnp.bfloat16),
        grid_spec=grid_spec,
        compiler_params=pltpu.CompilerParams(
            dimension_semantics=("parallel", "arbitrary"),
            vmem_limit_bytes=32 * 1024 * 1024),
        cost_estimate=pl.CostEstimate(
            flops=flops, transcendentals=0, bytes_accessed=bytes_accessed),
    )(x, w1_all, s1_all, b1_all, w2_all, s2_all, b2_all)

    out = out[..., :C].astype(jnp.float32)
    return jnp.transpose(out, (0, 3, 1, 2))                  # NHWC -> NCHW


# ----------------------------------------------------------------------------
# Deterministic raw parameters (PyTorch-equivalent), BN folding, lane padding,
# bf16 cast, and per-block stacking.
# ----------------------------------------------------------------------------
def make_raw_params(key, ch, nblocks):
    raw = []
    ch2 = ch // 2
    for _ in range(nblocks):
        key, *ks = jax.random.split(key, 11)
        w1 = jax.random.normal(ks[0], (1, 1, ch, ch2), jnp.float32) * (1.0 / np.sqrt(ch))
        cb1 = jax.random.normal(ks[1], (ch2,), jnp.float32) * 0.05
        g1 = 1.0 + 0.1 * jax.random.normal(ks[2], (ch2,), jnp.float32)
        be1 = 0.1 * jax.random.normal(ks[3], (ch2,), jnp.float32)
        m1 = 0.1 * jax.random.normal(ks[4], (ch2,), jnp.float32)
        v1 = jnp.abs(jax.random.normal(ks[5], (ch2,), jnp.float32)) + 0.5

        w2 = jax.random.normal(ks[6], (3, 3, ch2, ch), jnp.float32) * (1.0 / np.sqrt(9 * ch2))
        cb2 = jax.random.normal(ks[7], (ch,), jnp.float32) * 0.05
        g2 = 1.0 + 0.1 * jax.random.normal(ks[8], (ch,), jnp.float32)
        be2 = 0.1 * jax.random.normal(ks[9], (ch,), jnp.float32)
        m2 = 0.1 * jnp.sin(jnp.arange(ch, dtype=jnp.float32))
        v2 = 1.0 + 0.2 * jnp.cos(jnp.arange(ch, dtype=jnp.float32))
        raw.append((w1, cb1, g1, be1, m1, v1, w2, cb2, g2, be2, m2, v2))
    return raw


def fold_and_pad_params(raw_params):
    w1s, s1s, b1s, w2s, s2s, b2s = [], [], [], [], [], []
    for (w1, cb1, g1, be1, m1, v1, w2, cb2, g2, be2, m2, v2) in raw_params:
        C, Ch = w1.shape[2], w1.shape[3]
        Cp, Chp = _round_up(C, LANE), _round_up(Ch, LANE)

        # fold conv bias + BN into (scale, bias): y = conv(x)*s + b
        s1 = g1 * lax.rsqrt(v1 + EPS)
        b1 = be1 + s1 * (cb1 - m1)
        s2 = g2 * lax.rsqrt(v2 + EPS)
        b2 = be2 + s2 * (cb2 - m2)

        # lane-pad: padded channels stay exactly zero through every block
        w1p = jnp.zeros((Cp, Chp), jnp.float32).at[:C, :Ch].set(w1.reshape(C, Ch))
        w2p = jnp.zeros((3, 3, Chp, Cp), jnp.float32).at[:, :, :Ch, :C].set(w2)

        w1s.append(w1p.astype(jnp.bfloat16))
        w2s.append(w2p.reshape(9, Chp, Cp).astype(jnp.bfloat16))   # t = ky*3+kx
        s1s.append(jnp.zeros((1, Chp), jnp.float32).at[0, :Ch].set(s1))
        b1s.append(jnp.zeros((1, Chp), jnp.float32).at[0, :Ch].set(b1))
        s2s.append(jnp.zeros((1, Cp), jnp.float32).at[0, :C].set(s2))
        b2s.append(jnp.zeros((1, Cp), jnp.float32).at[0, :C].set(b2))
    return (jnp.stack(w1s), jnp.stack(s1s), jnp.stack(b1s),
            jnp.stack(w2s), jnp.stack(s2s), jnp.stack(b2s))


# ----------------------------------------------------------------------------
# Pure-JAX reference (matches PyTorch eval-mode semantics, f32 HIGHEST).
# ----------------------------------------------------------------------------
def ref_forward(x_nchw, raw_params):
    x = jnp.transpose(x_nchw, (0, 2, 3, 1))
    dn = ('NHWC', 'HWIO', 'NHWC')
    for (w1, cb1, g1, be1, m1, v1, w2, cb2, g2, be2, m2, v2) in raw_params:
        z = lax.conv_general_dilated(x, w1, (1, 1), 'VALID', dimension_numbers=dn,
                                     precision=lax.Precision.HIGHEST) + cb1
        z = (z - m1) * lax.rsqrt(v1 + EPS) * g1 + be1
        z = jnp.where(z > 0, z, NEG_SLOPE * z)
        z = lax.conv_general_dilated(z, w2, (1, 1), ((1, 1), (1, 1)),
                                     dimension_numbers=dn,
                                     precision=lax.Precision.HIGHEST) + cb2
        z = (z - m2) * lax.rsqrt(v2 + EPS) * g2 + be2
        z = jnp.where(z > 0, z, NEG_SLOPE * z)
        x = z + x
    return jnp.transpose(x, (0, 3, 1, 2))


if __name__ == "__main__":
    N, CH, H, W = 2, 16, 16, 16
    NBLOCKS = 2

    key = jax.random.PRNGKey(0)
    kx, kp = jax.random.split(key)
    x = jax.random.normal(kx, (N, CH, H, W), jnp.float32)    # NCHW like PyTorch

    raw_params = make_raw_params(kp, CH, NBLOCKS)
    params = fold_and_pad_params(raw_params)

    fwd = jax.jit(res_block_forward)
    out = jax.block_until_ready(fwd(x, params))
    ref = jax.block_until_ready(ref_forward(x, raw_params))

    assert out.shape == (N, CH, H, W)
    max_err = float(jnp.max(jnp.abs(out - ref)))
    scale = float(jnp.max(jnp.abs(ref)))
    # bf16 matmul operands with f32 accumulation vs f32 HIGHEST reference.
    assert max_err <= 5e-2 * scale + 1e-3, \
        f"mismatch vs reference: abs {max_err} (ref max {scale})"

    print("KERNEL_OK")
</pallas_src>

<mosaic_0001>
module attributes {stable_mosaic.version = 11 : i64} {
  func.func @fused_resblock_kernel(%arg0: i32, %arg1: i32, %arg2: memref<1x16x16x128xbf16, #tpu.memory_space<vmem>>, %arg3: memref<1x128x128xbf16, #tpu.memory_space<vmem>>, %arg4: memref<1x1x128xf32, #tpu.memory_space<vmem>>, %arg5: memref<1x1x128xf32, #tpu.memory_space<vmem>>, %arg6: memref<1x9x128x128xbf16, #tpu.memory_space<vmem>>, %arg7: memref<1x1x128xf32, #tpu.memory_space<vmem>>, %arg8: memref<1x1x128xf32, #tpu.memory_space<vmem>>, %arg9: memref<1x16x16x128xbf16, #tpu.memory_space<vmem>>, %arg10: memref<256x128xf32, #tpu.memory_space<vmem>>, %arg11: memref<304x384xf32, #tpu.memory_space<vmem>>) attributes {dimension_semantics = [#tpu.dimension_semantics<parallel>, #tpu.dimension_semantics<arbitrary>], iteration_bounds = array<i64: 2, 2>, scalar_prefetch = 0 : i64, scratch_operands = 2 : i64, tpu.core_type = #tpu.core_type<tc>, window_params = [{transform_indices = @transform_0, window_bounds = array<i64: 1, 16, 16, 128>}, {transform_indices = @transform_1, window_bounds = array<i64: 1, 128, 128>}, {transform_indices = @transform_2, window_bounds = array<i64: 1, 1, 128>}, {transform_indices = @transform_3, window_bounds = array<i64: 1, 1, 128>}, {transform_indices = @transform_4, window_bounds = array<i64: 1, 9, 128, 128>}, {transform_indices = @transform_5, window_bounds = array<i64: 1, 1, 128>}, {transform_indices = @transform_6, window_bounds = array<i64: 1, 1, 128>}, {transform_indices = @transform_7, window_bounds = array<i64: 1, 16, 16, 128>}]} {
    %c0_i32 = arith.constant 0 : i32
    %0 = arith.cmpi eq, %arg1, %c0_i32 : i32
    %1 = arith.extui %0 : i1 to i32
    %c0_i32_0 = arith.constant 0 : i32
    %2 = arith.cmpi ne, %1, %c0_i32_0 : i32
    scf.if %2 {
      %c0_84 = arith.constant 0 : index
      %c0_85 = arith.constant 0 : index
      %c0_86 = arith.constant 0 : index
      %c0_87 = arith.constant 0 : index
      %121 = vector.load %arg2[%c0_84, %c0_85, %c0_86, %c0_87] : memref<1x16x16x128xbf16, #tpu.memory_space<vmem>>, vector<1x16x16x128xbf16>
      %122 = vector.shape_cast %121 : vector<1x16x16x128xbf16> to vector<256x128xbf16>
      %123 = arith.extf %122 : vector<256x128xbf16> to vector<256x128xf32>
      %c0_88 = arith.constant 0 : index
      %c0_89 = arith.constant 0 : index
      %124 = vector.load %arg10[%c0_88, %c0_89] : memref<256x128xf32, #tpu.memory_space<vmem>>, vector<256x128xf32>
      tpu.vector_store %arg10[%c0_88, %c0_89], %123 {strides = array<i32>} : memref<256x128xf32, #tpu.memory_space<vmem>>, vector<256x128xf32>,
      %cst_90 = arith.constant 0.000000e+00 : f32
      %125 = vector.broadcast %cst_90 : f32 to vector<24x384xf32>
      %c0_91 = arith.constant 0 : index
      %c0_92 = arith.constant 0 : index
      %126 = vector.load %arg11[%c0_91, %c0_92] : memref<304x384xf32, #tpu.memory_space<vmem>>, vector<24x384xf32>
      tpu.vector_store %arg11[%c0_91, %c0_92], %125 {strides = array<i32>} : memref<304x384xf32, #tpu.memory_space<vmem>>, vector<24x384xf32>,
      %cst_93 = arith.constant 0.000000e+00 : f32
      %127 = vector.broadcast %cst_93 : f32 to vector<24x384xf32>
      %c280 = arith.constant 280 : index
      %c0_94 = arith.constant 0 : index
      %128 = vector.load %arg11[%c280, %c0_94] : memref<304x384xf32, #tpu.memory_space<vmem>>, vector<24x384xf32>
      tpu.vector_store %arg11[%c280, %c0_94], %127 {strides = array<i32>} : memref<304x384xf32, #tpu.memory_space<vmem>>, vector<24x384xf32>,
    } else {
    }
    %c0 = arith.constant 0 : index
    %c0_1 = arith.constant 0 : index
    %3 = vector.load %arg10[%c0, %c0_1] : memref<256x128xf32, #tpu.memory_space<vmem>>, vector<256x128xf32>
    %4 = arith.truncf %3 : vector<256x128xf32> to vector<256x128xbf16>
    %c0_2 = arith.constant 0 : index
    %c0_3 = arith.constant 0 : index
    %c0_4 = arith.constant 0 : index
    %5 = vector.load %arg3[%c0_2, %c0_3, %c0_4] : memref<1x128x128xbf16, #tpu.memory_space<vmem>>, vector<1x128x128xbf16>
    %6 = vector.shape_cast %5 : vector<1x128x128xbf16> to vector<128x128xbf16>
    %cst = arith.constant dense<0.000000e+00> : vector<256x128xf32>
    %7 = tpu.matmul %4, %6, %cst {dimension_numbers = #tpu.dot_dimension_numbers<[1], [0], [0], [1], [0, 0, 1, 1], [], []>} : vector<256x128xbf16>, vector<128x128xbf16>, vector<256x128xf32> -> vector<256x128xf32>
    %c0_5 = arith.constant 0 : index
    %c0_6 = arith.constant 0 : index
    %c0_7 = arith.constant 0 : index
    %8 = vector.load %arg4[%c0_5, %c0_6, %c0_7] : memref<1x1x128xf32, #tpu.memory_space<vmem>>, vector<1x1x128xf32>
    %9 = vector.shape_cast %8 : vector<1x1x128xf32> to vector<1x128xf32>
    %10 = vector.broadcast %9 : vector<1x128xf32> to vector<256x128xf32>
    %11 = arith.mulf %7, %10 : vector<256x128xf32>
    %c0_8 = arith.constant 0 : index
    %c0_9 = arith.constant 0 : index
    %c0_10 = arith.constant 0 : index
    %12 = vector.load %arg5[%c0_8, %c0_9, %c0_10] : memref<1x1x128xf32, #tpu.memory_space<vmem>>, vector<1x1x128xf32>
    %13 = vector.shape_cast %12 : vector<1x1x128xf32> to vector<1x128xf32>
    %14 = vector.broadcast %13 : vector<1x128xf32> to vector<256x128xf32>
    %15 = arith.addf %11, %14 : vector<256x128xf32>
    %cst_11 = arith.constant 1.000000e-01 : f32
    %16 = vector.broadcast %cst_11 : f32 to vector<256x128xf32>
    %17 = arith.mulf %16, %15 : vector<256x128xf32>
    %18 = arith.maximumf %15, %17 : vector<256x128xf32>
    %19 = tpu.iota {dimensions = array<i32: 0>} : vector<256x1xi32>
    %c16_i32 = arith.constant 16 : i32
    %c0_i32_12 = arith.constant 0 : i32
    %20 = arith.cmpi eq, %c16_i32, %c0_i32_12 : i32
    %c1_i32 = arith.constant 1 : i32
    %21 = arith.select %20, %c1_i32, %c16_i32 : i32
    %22 = vector.broadcast %21 : i32 to vector<256x1xi32>
    %23 = arith.remsi %19, %22 : vector<256x1xi32>
    %c0_i32_13 = arith.constant 0 : i32
    %24 = vector.broadcast %c0_i32_13 : i32 to vector<256x1xi32>
    %25 = arith.cmpi ne, %23, %24 : vector<256x1xi32>
    %c0_i32_14 = arith.constant 0 : i32
    %26 = vector.broadcast %c0_i32_14 : i32 to vector<256x1xi32>
    %27 = arith.cmpi slt, %23, %26 : vector<256x1xi32>
    %c0_i32_15 = arith.constant 0 : i32
    %28 = arith.cmpi slt, %21, %c0_i32_15 : i32
    %29 = vector.broadcast %28 : i1 to vector<256x1xi1>
    %30 = vector.broadcast %29 : vector<256x1xi1> to vector<256x1xi1>
    %31 = arith.xori %27, %30 : vector<256x1xi1>
    %32 = arith.andi %31, %25 : vector<256x1xi1>
    %33 = vector.broadcast %21 : i32 to vector<256x1xi32>
    %34 = arith.addi %23, %33 : vector<256x1xi32>
    %35 = arith.select %32, %34, %23 : vector<256x1xi1>, vector<256x1xi32>
    %c15_i32 = arith.constant 15 : i32
    %36 = vector.broadcast %c15_i32 : i32 to vector<256x1xi32>
    %37 = arith.cmpi ne, %35, %36 : vector<256x1xi32>
    %cst_16 = arith.constant 0.000000e+00 : f32
    %38 = vector.shape_cast %37 : vector<256x1xi1> to vector<256x1xi1>
    %39 = vector.broadcast %38 : vector<256x1xi1> to vector<256x128xi1>
    %40 = vector.broadcast %cst_16 : f32 to vector<256x128xf32>
    %41 = arith.select %39, %18, %40 : vector<256x128xi1>, vector<256x128xf32>
    %c24 = arith.constant 24 : index
    %c0_17 = arith.constant 0 : index
    %42 = vector.load %arg11[%c24, %c0_17] : memref<304x384xf32, #tpu.memory_space<vmem>>, vector<256x128xf32>
    tpu.vector_store %arg11[%c24, %c0_17], %41 {strides = array<i32>} : memref<304x384xf32, #tpu.memory_space<vmem>>, vector<256x128xf32>,
    %c24_18 = arith.constant 24 : index
    %c128 = arith.constant 128 : index
    %43 = vector.load %arg11[%c24_18, %c128] : memref<304x384xf32, #tpu.memory_space<vmem>>, vector<256x128xf32>
    tpu.vector_store %arg11[%c24_18, %c128], %18 {strides = array<i32>} : memref<304x384xf32, #tpu.memory_space<vmem>>, vector<256x128xf32>,
    %c0_i32_19 = arith.constant 0 : i32
    %44 = vector.broadcast %c0_i32_19 : i32 to vector<256x1xi32>
    %45 = arith.cmpi ne, %35, %44 : vector<256x1xi32>
    %cst_20 = arith.constant 0.000000e+00 : f32
    %46 = vector.shape_cast %45 : vector<256x1xi1> to vector<256x1xi1>
    %47 = vector.broadcast %46 : vector<256x1xi1> to vector<256x128xi1>
    %48 = vector.broadcast %cst_20 : f32 to vector<256x128xf32>
    %49 = arith.select %47, %18, %48 : vector<256x128xi1>, vector<256x128xf32>
    %c24_21 = arith.constant 24 : index
    %c256 = arith.constant 256 : index
    %50 = vector.load %arg11[%c24_21, %c256] : memref<304x384xf32, #tpu.memory_space<vmem>>, vector<256x128xf32>
    tpu.vector_store %arg11[%c24_21, %c256], %49 {strides = array<i32>} : memref<304x384xf32, #tpu.memory_space<vmem>>, vector<256x128xf32>,
    %c7 = arith.constant 7 : index
    %c0_22 = arith.constant 0 : index
    %51 = vector.load %arg11[%c7, %c0_22] : memref<304x384xf32, #tpu.memory_space<vmem>>, vector<256x128xf32>
    %52 = arith.truncf %51 : vector<256x128xf32> to vector<256x128xbf16>
    %c0_23 = arith.constant 0 : index
    %c0_24 = arith.constant 0 : index
    %c0_25 = arith.constant 0 : index
    %c0_26 = arith.constant 0 : index
    %53 = vector.load %arg6[%c0_23, %c0_24, %c0_25, %c0_26] : memref<1x9x128x128xbf16, #tpu.memory_space<vmem>>, vector<1x1x128x128xbf16>
    %54 = vector.shape_cast %53 : vector<1x1x128x128xbf16> to vector<128x128xbf16>
    %cst_27 = arith.constant dense<0.000000e+00> : vector<256x128xf32>
    %55 = tpu.matmul %52, %54, %cst_27 {dimension_numbers = #tpu.dot_dimension_numbers<[1], [0], [0], [1], [0, 0, 1, 1], [], []>} : vector<256x128xbf16>, vector<128x128xbf16>, vector<256x128xf32> -> vector<256x128xf32>
    %c8 = arith.constant 8 : index
    %c128_28 = arith.constant 128 : index
    %56 = vector.load %arg11[%c8, %c128_28] : memref<304x384xf32, #tpu.memory_space<vmem>>, vector<256x128xf32>
    %57 = arith.truncf %56 : vector<256x128xf32> to vector<256x128xbf16>
    %c0_29 = arith.constant 0 : index
    %c1 = arith.constant 1 : index
    %c0_30 = arith.constant 0 : index
    %c0_31 = arith.constant 0 : index
    %58 = vector.load %arg6[%c0_29, %c1, %c0_30, %c0_31] : memref<1x9x128x128xbf16, #tpu.memory_space<vmem>>, vector<1x1x128x128xbf16>
    %59 = vector.shape_cast %58 : vector<1x1x128x128xbf16> to vector<128x128xbf16>
    %cst_32 = arith.constant dense<0.000000e+00> : vector<256x128xf32>
    %60 = tpu.matmul %57, %59, %cst_32 {dimension_numbers = #tpu.dot_dimension_numbers<[1], [0], [0], [1], [0, 0, 1, 1], [], []>} : vector<256x128xbf16>, vector<128x128xbf16>, vector<256x128xf32> -> vector<256x128xf32>
    %61 = arith.addf %55, %60 : vector<256x128xf32>
    %c9 = arith.constant 9 : index
    %c256_33 = arith.constant 256 : index
    %62 = vector.load %arg11[%c9, %c256_33] : memref<304x384xf32, #tpu.memory_space<vmem>>, vector<256x128xf32>
    %63 = arith.truncf %62 : vector<256x128xf32> to vector<256x128xbf16>
    %c0_34 = arith.constant 0 : index
    %c2 = arith.constant 2 : index
    %c0_35 = arith.constant 0 : index
    %c0_36 = arith.constant 0 : index
    %64 = vector.load %arg6[%c0_34, %c2, %c0_35, %c0_36] : memref<1x9x128x128xbf16, #tpu.memory_space<vmem>>, vector<1x1x128x128xbf16>
    %65 = vector.shape_cast %64 : vector<1x1x128x128xbf16> to vector<128x128xbf16>
    %cst_37 = arith.constant dense<0.000000e+00> : vector<256x128xf32>
    %66 = tpu.matmul %63, %65, %cst_37 {dimension_numbers = #tpu.dot_dimension_numbers<[1], [0], [0], [1], [0, 0, 1, 1], [], []>} : vector<256x128xbf16>, vector<128x128xbf16>, vector<256x128xf32> -> vector<256x128xf32>
    %67 = arith.addf %61, %66 : vector<256x128xf32>
    %c23 = arith.constant 23 : index
    %c0_38 = arith.constant 0 : index
    %68 = vector.load %arg11[%c23, %c0_38] : memref<304x384xf32, #tpu.memory_space<vmem>>, vector<256x128xf32>
    %69 = arith.truncf %68 : vector<256x128xf32> to vector<256x128xbf16>
    %c0_39 = arith.constant 0 : index
    %c3 = arith.constant 3 : index
    %c0_40 = arith.constant 0 : index
    %c0_41 = arith.constant 0 : index
    %70 = vector.load %arg6[%c0_39, %c3, %c0_40, %c0_41] : memref<1x9x128x128xbf16, #tpu.memory_space<vmem>>, vector<1x1x128x128xbf16>
    %71 = vector.shape_cast %70 : vector<1x1x128x128xbf16> to vector<128x128xbf16>
    %cst_42 = arith.constant dense<0.000000e+00> : vector<256x128xf32>
    %72 = tpu.matmul %69, %71, %cst_42 {dimension_numbers = #tpu.dot_dimension_numbers<[1], [0], [0], [1], [0, 0, 1, 1], [], []>} : vector<256x128xbf16>, vector<128x128xbf16>, vector<256x128xf32> -> vector<256x128xf32>
    %73 = arith.addf %67, %72 : vector<256x128xf32>
    %c24_43 = arith.constant 24 : index
    %c128_44 = arith.constant 128 : index
    %74 = vector.load %arg11[%c24_43, %c128_44] : memref<304x384xf32, #tpu.memory_space<vmem>>, vector<256x128xf32>
    %75 = arith.truncf %74 : vector<256x128xf32> to vector<256x128xbf16>
    %c0_45 = arith.constant 0 : index
    %c4 = arith.constant 4 : index
    %c0_46 = arith.constant 0 : index
    %c0_47 = arith.constant 0 : index
    %76 = vector.load %arg6[%c0_45, %c4, %c0_46, %c0_47] : memref<1x9x128x128xbf16, #tpu.memory_space<vmem>>, vector<1x1x128x128xbf16>
    %77 = vector.shape_cast %76 : vector<1x1x128x128xbf16> to vector<128x128xbf16>
    %cst_48 = arith.constant dense<0.000000e+00> : vector<256x128xf32>
    %78 = tpu.matmul %75, %77, %cst_48 {dimension_numbers = #tpu.dot_dimension_numbers<[1], [0], [0], [1], [0, 0, 1, 1], [], []>} : vector<256x128xbf16>, vector<128x128xbf16>, vector<256x128xf32> -> vector<256x128xf32>
    %79 = arith.addf %73, %78 : vector<256x128xf32>
    %c25 = arith.constant 25 : index
    %c256_49 = arith.constant 256 : index
    %80 = vector.load %arg11[%c25, %c256_49] : memref<304x384xf32, #tpu.memory_space<vmem>>, vector<256x128xf32>
    %81 = arith.truncf %80 : vector<256x128xf32> to vector<256x128xbf16>
    %c0_50 = arith.constant 0 : index
    %c5 = arith.constant 5 : index
    %c0_51 = arith.constant 0 : index
    %c0_52 = arith.constant 0 : index
    %82 = vector.load %arg6[%c0_50, %c5, %c0_51, %c0_52] : memref<1x9x128x128xbf16, #tpu.memory_space<vmem>>, vector<1x1x128x128xbf16>
    %83 = vector.shape_cast %82 : vector<1x1x128x128xbf16> to vector<128x128xbf16>
    %cst_53 = arith.constant dense<0.000000e+00> : vector<256x128xf32>
    %84 = tpu.matmul %81, %83, %cst_53 {dimension_numbers = #tpu.dot_dimension_numbers<[1], [0], [0], [1], [0, 0, 1, 1], [], []>} : vector<256x128xbf16>, vector<128x128xbf16>, vector<256x128xf32> -> vector<256x128xf32>
    %85 = arith.addf %79, %84 : vector<256x128xf32>
    %c39 = arith.constant 39 : index
    %c0_54 = arith.constant 0 : index
    %86 = vector.load %arg11[%c39, %c0_54] : memref<304x384xf32, #tpu.memory_space<vmem>>, vector<256x128xf32>
    %87 = arith.truncf %86 : vector<256x128xf32> to vector<256x128xbf16>
    %c0_55 = arith.constant 0 : index
    %c6 = arith.constant 6 : index
    %c0_56 = arith.constant 0 : index
    %c0_57 = arith.constant 0 : index
    %88 = vector.load %arg6[%c0_55, %c6, %c0_56, %c0_57] : memref<1x9x128x128xbf16, #tpu.memory_space<vmem>>, vector<1x1x128x128xbf16>
    %89 = vector.shape_cast %88 : vector<1x1x128x128xbf16> to vector<128x128xbf16>
    %cst_58 = arith.constant dense<0.000000e+00> : vector<256x128xf32>
    %90 = tpu.matmul %87, %89, %cst_58 {dimension_numbers = #tpu.dot_dimension_numbers<[1], [0], [0], [1], [0, 0, 1, 1], [], []>} : vector<256x128xbf16>, vector<128x128xbf16>, vector<256x128xf32> -> vector<256x128xf32>
    %91 = arith.addf %85, %90 : vector<256x128xf32>
    %c40 = arith.constant 40 : index
    %c128_59 = arith.constant 128 : index
    %92 = vector.load %arg11[%c40, %c128_59] : memref<304x384xf32, #tpu.memory_space<vmem>>, vector<256x128xf32>
    %93 = arith.truncf %92 : vector<256x128xf32> to vector<256x128xbf16>
    %c0_60 = arith.constant 0 : index
    %c7_61 = arith.constant 7 : index
    %c0_62 = arith.constant 0 : index
    %c0_63 = arith.constant 0 : index
    %94 = vector.load %arg6[%c0_60, %c7_61, %c0_62, %c0_63] : memref<1x9x128x128xbf16, #tpu.memory_space<vmem>>, vector<1x1x128x128xbf16>
    %95 = vector.shape_cast %94 : vector<1x1x128x128xbf16> to vector<128x128xbf16>
    %cst_64 = arith.constant dense<0.000000e+00> : vector<256x128xf32>
    %96 = tpu.matmul %93, %95, %cst_64 {dimension_numbers = #tpu.dot_dimension_numbers<[1], [0], [0], [1], [0, 0, 1, 1], [], []>} : vector<256x128xbf16>, vector<128x128xbf16>, vector<256x128xf32> -> vector<256x128xf32>
    %97 = arith.addf %91, %96 : vector<256x128xf32>
    %c41 = arith.constant 41 : index
    %c256_65 = arith.constant 256 : index
    %98 = vector.load %arg11[%c41, %c256_65] : memref<304x384xf32, #tpu.memory_space<vmem>>, vector<256x128xf32>
    %99 = arith.truncf %98 : vector<256x128xf32> to vector<256x128xbf16>
    %c0_66 = arith.constant 0 : index
    %c8_67 = arith.constant 8 : index
    %c0_68 = arith.constant 0 : index
    %c0_69 = arith.constant 0 : index
    %100 = vector.load %arg6[%c0_66, %c8_67, %c0_68, %c0_69] : memref<1x9x128x128xbf16, #tpu.memory_space<vmem>>, vector<1x1x128x128xbf16>
    %101 = vector.shape_cast %100 : vector<1x1x128x128xbf16> to vector<128x128xbf16>
    %cst_70 = arith.constant dense<0.000000e+00> : vector<256x128xf32>
    %102 = tpu.matmul %99, %101, %cst_70 {dimension_numbers = #tpu.dot_dimension_numbers<[1], [0], [0], [1], [0, 0, 1, 1], [], []>} : vector<256x128xbf16>, vector<128x128xbf16>, vector<256x128xf32> -> vector<256x128xf32>
    %103 = arith.addf %97, %102 : vector<256x128xf32>
    %c0_71 = arith.constant 0 : index
    %c0_72 = arith.constant 0 : index
    %c0_73 = arith.constant 0 : index
    %104 = vector.load %arg7[%c0_71, %c0_72, %c0_73] : memref<1x1x128xf32, #tpu.memory_space<vmem>>, vector<1x1x128xf32>
    %105 = vector.shape_cast %104 : vector<1x1x128xf32> to vector<1x128xf32>
    %106 = vector.broadcast %105 : vector<1x128xf32> to vector<256x128xf32>
    %107 = arith.mulf %103, %106 : vector<256x128xf32>
    %c0_74 = arith.constant 0 : index
    %c0_75 = arith.constant 0 : index
    %c0_76 = arith.constant 0 : index
    %108 = vector.load %arg8[%c0_74, %c0_75, %c0_76] : memref<1x1x128xf32, #tpu.memory_space<vmem>>, vector<1x1x128xf32>
    %109 = vector.shape_cast %108 : vector<1x1x128xf32> to vector<1x128xf32>
    %110 = vector.broadcast %109 : vector<1x128xf32> to vector<256x128xf32>
    %111 = arith.addf %107, %110 : vector<256x128xf32>
    %cst_77 = arith.constant 1.000000e-01 : f32
    %112 = vector.broadcast %cst_77 : f32 to vector<256x128xf32>
    %113 = arith.mulf %112, %111 : vector<256x128xf32>
    %114 = arith.maximumf %111, %113 : vector<256x128xf32>
    %c0_78 = arith.constant 0 : index
    %c0_79 = arith.constant 0 : index
    %115 = vector.load %arg10[%c0_78, %c0_79] : memref<256x128xf32, #tpu.memory_space<vmem>>, vector<256x128xf32>
    %116 = arith.addf %114, %115 : vector<256x128xf32>
    %c0_80 = arith.constant 0 : index
    %c0_81 = arith.constant 0 : index
    %117 = vector.load %arg10[%c0_80, %c0_81] : memref<256x128xf32, #tpu.memory_space<vmem>>, vector<256x128xf32>
    tpu.vector_store %arg10[%c0_80, %c0_81], %116 {strides = array<i32>} : memref<256x128xf32, #tpu.memory_space<vmem>>, vector<256x128xf32>,
    %c1_i32_82 = arith.constant 1 : i32
    %118 = arith.cmpi eq, %arg1, %c1_i32_82 : i32
    %119 = arith.extui %118 : i1 to i32
    %c0_i32_83 = arith.constant 0 : i32
    %120 = arith.cmpi ne, %119, %c0_i32_83 : i32
    scf.if %120 {
      %121 = vector.shape_cast %116 : vector<256x128xf32> to vector<1x16x16x128xf32>
      %122 = arith.truncf %121 : vector<1x16x16x128xf32> to vector<1x16x16x128xbf16>
      %c0_84 = arith.constant 0 : index
      %c0_85 = arith.constant 0 : index
      %c0_86 = arith.constant 0 : index
      %c0_87 = arith.constant 0 : index
      %123 = vector.load %arg9[%c0_84, %c0_85, %c0_86, %c0_87] : memref<1x16x16x128xbf16, #tpu.memory_space<vmem>>, vector<1x16x16x128xbf16>
      tpu.vector_store %arg9[%c0_84, %c0_85, %c0_86, %c0_87], %122 {strides = array<i32>} : memref<1x16x16x128xbf16, #tpu.memory_space<vmem>>, vector<1x16x16x128xbf16>,
    } else {
    }
    return
  }
  func.func @transform_0(%arg0: i32, %arg1: i32) -> (i32, i32, i32, i32) {
    %c0_i32 = arith.constant 0 : i32
    %c0_i32_0 = arith.constant 0 : i32
    %c0_i32_1 = arith.constant 0 : i32
    %c0_i32_2 = arith.constant 0 : i32
    return %arg0, %c0_i32, %c0_i32_0, %c0_i32_1 : i32, i32, i32, i32
  }
  func.func @transform_1(%arg0: i32, %arg1: i32) -> (i32, i32, i32) {
    %c0_i32 = arith.constant 0 : i32
    %c0_i32_0 = arith.constant 0 : i32
    %c0_i32_1 = arith.constant 0 : i32
    return %arg1, %c0_i32, %c0_i32_0 : i32, i32, i32
  }
  func.func @transform_2(%arg0: i32, %arg1: i32) -> (i32, i32, i32) {
    %c0_i32 = arith.constant 0 : i32
    %c0_i32_0 = arith.constant 0 : i32
    %c0_i32_1 = arith.constant 0 : i32
    return %arg1, %c0_i32, %c0_i32_0 : i32, i32, i32
  }
  func.func @transform_3(%arg0: i32, %arg1: i32) -> (i32, i32, i32) {
    %c0_i32 = arith.constant 0 : i32
    %c0_i32_0 = arith.constant 0 : i32
    %c0_i32_1 = arith.constant 0 : i32
    return %arg1, %c0_i32, %c0_i32_0 : i32, i32, i32
  }
  func.func @transform_4(%arg0: i32, %arg1: i32) -> (i32, i32, i32, i32) {
    %c0_i32 = arith.constant 0 : i32
    %c0_i32_0 = arith.constant 0 : i32
    %c0_i32_1 = arith.constant 0 : i32
    %c0_i32_2 = arith.constant 0 : i32
    return %arg1, %c0_i32, %c0_i32_0, %c0_i32_1 : i32, i32, i32, i32
  }
  func.func @transform_5(%arg0: i32, %arg1: i32) -> (i32, i32, i32) {
    %c0_i32 = arith.constant 0 : i32
    %c0_i32_0 = arith.constant 0 : i32
    %c0_i32_1 = arith.constant 0 : i32
    return %arg1, %c0_i32, %c0_i32_0 : i32, i32, i32
  }
  func.func @transform_6(%arg0: i32, %arg1: i32) -> (i32, i32, i32) {
    %c0_i32 = arith.constant 0 : i32
    %c0_i32_0 = arith.constant 0 : i32
    %c0_i32_1 = arith.constant 0 : i32
    return %arg1, %c0_i32, %c0_i32_0 : i32, i32, i32
  }
  func.func @transform_7(%arg0: i32, %arg1: i32) -> (i32, i32, i32, i32) {
    %c0_i32 = arith.constant 0 : i32
    %c0_i32_0 = arith.constant 0 : i32
    %c0_i32_1 = arith.constant 0 : i32
    %c0_i32_2 = arith.constant 0 : i32
    return %arg0, %c0_i32, %c0_i32_0, %c0_i32_1 : i32, i32, i32, i32
  }
}

</mosaic_0001>

<bundles_post_ra>
// kernel: res_block_forward.1
= control target key start
LH: loop header
LB: loop body
LE: loop exit
PB: predicated region body
PF: predicated region fallthrough
CT: control target
= control target key end

     0   :  { %s7519_s24 = smov 0   ;;  %s7521_s25 = smov 0   ;;  %s8980_s0 = inlined_call_operand.vmem [shape: bf16[2,16,16,128], index: 0, kind: input, shape index: {}]   ;;  %s8981_s1 = inlined_call_operand.vmem [shape: bf16[2,128,128], index: 1, kind: input, shape index: {}]   ;;  %s8982_s2 = inlined_call_operand.vmem [shape: f32[2,1,128], index: 2, kind: input, shape index: {}]   ;;  %s8983_s3 = inlined_call_operand.vmem [shape: f32[2,1,128], index: 3, kind: input, shape index: {}]   ;;  %s8984_s4 = inlined_call_operand.vmem [shape: bf16[2,9,128,128], index: 4, kind: input, shape index: {}]   ;;  %s8985_s5 = inlined_call_operand.vmem [shape: f32[2,1,128], index: 5, kind: input, shape index: {}]   ;;  %s8986_s6 = inlined_call_operand.vmem [shape: f32[2,1,128], index: 6, kind: input, shape index: {}]   ;;  %s8987_s7 = inlined_call_operand.vmem [shape: bf16[2,16,16,128], index: 7, kind: output, shape index: {}]  }
   0x1   :  { %8988 = sst [smem:[#allocation6_spill]] %s8980_s0  ;;  %s7523_s26 = smov 0  }
   0x2   :  { %s7525_s27 = smov 0   ;;  %s7527_s28 = smov 0  }
   0x3 LB: > { %s26_s29 = sadd.s32 1, %s7468_s26  ;;  %s29_s30 = sadd.s32 1, %s7472_s27  ;;  %s7476_s28 = sphi %s7527_s28, %s17_s28   ;;  %s7472_s27 = sphi %s7525_s27, %s9062_s27   ;;  %s7468_s26 = sphi %s7523_s26, %s9061_s26   ;;  %s7464_s25 = sphi %s7521_s25, %s9060_s25   ;;  %s7460_s24 = sphi %s7519_s24, %s9059_s24  }
   0x4   : > { %p27_p0 = scmp.ge.s32.totalorder %s26_s29, 2  ;;  %p5873_p1 = scmp.ge.s32.totalorder %s7476_s28, 1 }
   0x5   : > { %p301_p2 = scmp.lt.s32.totalorder %s7476_s28, 5 }
   0x6   : > { %s9064_s29 = smov (%p27_p0, %s26_s29), 0  ;;  %s9066_s30 = smov (!%p27_p0, %s29_s30), %s7472_s27 }
   0x7   : > { %8989 = sst [smem:[#allocation4_spill]] %s9064_s29  ;;  %p302_p3 = pnand %p5873_p1, %p301_p2 }
   0x8   : > { %p31_p4 = scmp.ge.s32.totalorder %s9066_s30, 2  ;;  %p355_p5 = scmp.lt.s32.totalorder (!%p302_p3), %s7464_s25, 1 }
   0x9   : > { %305 = sbr.rel (%p302_p3) target bundleno = 848 (0x350), region = 48  ;;  %p360_p6 = scmp.lt.s32.totalorder (!%p302_p3), %s7460_s24, 1 }
   0xa   : > { %s9068_s30 = smov (%p31_p4, %s9066_s30), 0  ;;  %s8991_s0 = sld [smem:[#allocation6_spill]] (!%p302_p3) }
   0xb   : > { %8990 = sst [smem:[#allocation5_spill]] %s9068_s30  ;;  %p5881_p7 = scmp.ne.s32.totalorder (!%p302_p3), %s7460_s24, 0 }
  0x10   : > { %s9070_s25 = smov (!%p355_p5, %s7464_s25), 1  ;;  %v7478_v10 = vmov (!%p5881_p7), 0.0  }
  0x11   : > { %s7553_s8 = scalar_select %p360_p6, %s7460_s24, 1 }
  0x12   : > { %s6129_s9 = sshll.u32 %s9070_s25, 7  ;;  %391 = sbr.rel (%p5881_p7) target bundleno = 42 (0x2a), region = 52  ;;  %488 = vst [vmem:[#allocation3] sm:$0xff] (!%p5881_p7), %v7478_v10  ;;  %491 = vst [vmem:[#allocation3 + $0x18] sm:$0xff] (!%p5881_p7), %v7478_v10 }
  0x13   : > { %s7558_s12 = scalar_lea.vmem %s8991_s0, %s6129_s9  ;;  %s6130_s13 = sshll.u32 %s7553_s8, 6  ;;  %492 = vst [vmem:[#allocation3 + $0x20] sm:$0xff] (!%p5881_p7), %v7478_v10  ;;  %493 = vst [vmem:[#allocation3 + $0x28] sm:$0xff] (!%p5881_p7), %v7478_v10 }
  0x14   : > { %s7564_s16 = scalar_lea.vmem %s8981_s1, %s6130_s13  ;;  %s370_s22 = scalar_lea.vmem %s8983_s3, %s7553_s8  ;;  %v6165_v0 = vld [vmem:[%s7558_s12] sm:$0xff] (!%p5881_p7)   ;;  %v6308_v1 = vld [vmem:[%s7558_s12 + $0x8] sm:$0xff] (!%p5881_p7)   ;;  %v6309_v2 = vld [vmem:[%s7558_s12 + $0x10] sm:$0xff] (!%p5881_p7)   ;;  %494 = vst [vmem:[#allocation3 + $0x30] sm:$0xff] (!%p5881_p7), %v7478_v10 }
  0x15   : > { %s7314_s23 = smul.u32 576, %s7553_s8  ;;  %s378_s10 = scalar_lea.vmem %s8985_s5, %s7553_s8  ;;  %v6166_v3 = vunpack.c.l.bf16 (!%p5881_p7), %v6165_v0  ;;  %v6167_v4 = vunpack.c.h.bf16 (!%p5881_p7), %v6165_v0  ;;  %v6170_v5 = vunpack.c.l.bf16 (!%p5881_p7), %v6308_v1  ;;  %v6171_v6 = vunpack.c.h.bf16 (!%p5881_p7), %v6308_v1  ;;  %v6310_v7 = vld [vmem:[%s7558_s12 + $0x18] sm:$0xff] (!%p5881_p7)   ;;  %v6311_v8 = vld [vmem:[%s7558_s12 + $0x20] sm:$0xff] (!%p5881_p7)   ;;  %v6312_v9 = vld [vmem:[%s7558_s12 + $0x28] sm:$0xff] (!%p5881_p7)   ;;  %495 = vst [vmem:[#allocation3 + $0x38] sm:$0xff] (!%p5881_p7), %v7478_v10 }
  0x16   : > { %s381_s29 = scalar_lea.vmem %s8986_s6, %s7553_s8  ;;  %s7591_s19 = scalar_lea.vmem %s8987_s7, %s6129_s9  ;;  %496 = vst [vmem:[#allocation3 + $0x40] sm:$0xff] (!%p5881_p7), %v7478_v10  ;;  %497 = vst [vmem:[#allocation3 + $0x348] sm:$0xff] (!%p5881_p7), %v7478_v10  ;;  %v6174_v11 = vunpack.c.l.bf16 (!%p5881_p7), %v6309_v2  ;;  %v6175_v12 = vunpack.c.h.bf16 (!%p5881_p7), %v6309_v2  ;;  %v6178_v13 = vunpack.c.l.bf16 (!%p5881_p7), %v6310_v7  ;;  %v6179_v14 = vunpack.c.h.bf16 (!%p5881_p7), %v6310_v7  ;;  %v6313_v15 = vld [vmem:[%s7558_s12 + $0x30] sm:$0xff] (!%p5881_p7)   ;;  %v6314_v16 = vld [vmem:[%s7558_s12 + $0x38] sm:$0xff] (!%p5881_p7)  }
  0x17   : > { %s7586_s15 = scalar_lea.vmem %s8984_s4, %s7314_s23  ;;  %498 = vst [vmem:[#allocation3 + $0x350] sm:$0xff] (!%p5881_p7), %v7478_v10  ;;  %499 = vst [vmem:[#allocation3 + $0x358] sm:$0xff] (!%p5881_p7), %v7478_v10  ;;  %v6315_v17 = vld [vmem:[%s7558_s12 + $0x40] sm:$0xff] (!%p5881_p7)   ;;  %v6182_v18 = vunpack.c.l.bf16 (!%p5881_p7), %v6311_v8  ;;  %v6183_v19 = vunpack.c.h.bf16 (!%p5881_p7), %v6311_v8  ;;  %v6186_v20 = vunpack.c.l.bf16 (!%p5881_p7), %v6312_v9  ;;  %v6187_v21 = vunpack.c.h.bf16 (!%p5881_p7), %v6312_v9  ;;  %v6316_v22 = vld [vmem:[%s7558_s12 + $0x48] sm:$0xff] (!%p5881_p7)  }
  0x18   : > { %500 = vst [vmem:[#allocation3 + $0x360] sm:$0xff] (!%p5881_p7), %v7478_v10  ;;  %501 = vst [vmem:[#allocation3 + $0x368] sm:$0xff] (!%p5881_p7), %v7478_v10  ;;  %v6317_v23 = vld [vmem:[%s7558_s12 + $0x50] sm:$0xff] (!%p5881_p7)   ;;  %v6318_v24 = vld [vmem:[%s7558_s12 + $0x58] sm:$0xff] (!%p5881_p7)   ;;  %v6190_v25 = vunpack.c.l.bf16 (!%p5881_p7), %v6313_v15  ;;  %v6191_v26 = vunpack.c.h.bf16 (!%p5881_p7), %v6313_v15  ;;  %v6194_v27 = vunpack.c.l.bf16 (!%p5881_p7), %v6314_v16  ;;  %v6195_v28 = vunpack.c.h.bf16 (!%p5881_p7), %v6314_v16 }
  0x19   : > { %502 = vst [vmem:[#allocation3 + $0x370] sm:$0xff] %v7478_v10  ;;  %505 = vst [vmem:[#allocation3 + $0x388] sm:$0xff] %v7478_v10  ;;  %v6319_v29 = vld [vmem:[%s7558_s12 + $0x60] sm:$0xff]   ;;  %v6320_v30 = vld [vmem:[%s7558_s12 + $0x68] sm:$0xff]   ;;  %v6198_v31 = vunpack.c.l.bf16 %v6315_v17  ;;  %v6199_v32 = vunpack.c.h.bf16 %v6315_v17  ;;  %v6202_v33 = vunpack.c.l.bf16 %v6316_v22  ;;  %v6203_v34 = vunpack.c.h.bf16 %v6316_v22 }
  0x1a   : > { %456 = vst [vmem:[#allocation2] sm:$0xff] %v6166_v3  ;;  %457 = vst [vmem:[#allocation2 + $0x8] sm:$0xff] %v6167_v4  ;;  %v6321_v35 = vld [vmem:[%s7558_s12 + $0x70] sm:$0xff]   ;;  %v6322_v36 = vld [vmem:[%s7558_s12 + $0x78] sm:$0xff]   ;;  %v6206_v37 = vunpack.c.l.bf16 %v6317_v23  ;;  %v6207_v38 = vunpack.c.h.bf16 %v6317_v23  ;;  %v6210_v39 = vunpack.c.l.bf16 %v6318_v24  ;;  %v6211_v40 = vunpack.c.h.bf16 %v6318_v24 }
  0x1b   : > { %458 = vst [vmem:[#allocation2 + $0x10] sm:$0xff] %v6170_v5  ;;  %459 = vst [vmem:[#allocation2 + $0x18] sm:$0xff] %v6171_v6  ;;  %v6214_v41 = vunpack.c.l.bf16 %v6319_v29  ;;  %v6215_v42 = vunpack.c.h.bf16 %v6319_v29  ;;  %v6218_v43 = vunpack.c.l.bf16 %v6320_v30  ;;  %v6219_v44 = vunpack.c.h.bf16 %v6320_v30 }
  0x1c   : > { %460 = vst [vmem:[#allocation2 + $0x20] sm:$0xff] %v6174_v11  ;;  %461 = vst [vmem:[#allocation2 + $0x28] sm:$0xff] %v6175_v12  ;;  %v6222_v45 = vunpack.c.l.bf16 %v6321_v35  ;;  %v6223_v46 = vunpack.c.h.bf16 %v6321_v35  ;;  %v6226_v47 = vunpack.c.l.bf16 %v6322_v36  ;;  %v6227_v48 = vunpack.c.h.bf16 %v6322_v36 }
  0x1d   : > { %462 = vst [vmem:[#allocation2 + $0x30] sm:$0xff] %v6178_v13  ;;  %463 = vst [vmem:[#allocation2 + $0x38] sm:$0xff] %v6179_v14 }
  0x1e   : > { %464 = vst [vmem:[#allocation2 + $0x40] sm:$0xff] %v6182_v18  ;;  %465 = vst [vmem:[#allocation2 + $0x48] sm:$0xff] %v6183_v19 }
  0x1f   : > { %466 = vst [vmem:[#allocation2 + $0x50] sm:$0xff] %v6186_v20  ;;  %467 = vst [vmem:[#allocation2 + $0x58] sm:$0xff] %v6187_v21 }
  0x20   : > { %468 = vst [vmem:[#allocation2 + $0x60] sm:$0xff] %v6190_v25  ;;  %469 = vst [vmem:[#allocation2 + $0x68] sm:$0xff] %v6191_v26 }
  0x21   : > { %470 = vst [vmem:[#allocation2 + $0x70] sm:$0xff] %v6194_v27  ;;  %471 = vst [vmem:[#allocation2 + $0x78] sm:$0xff] %v6195_v28 }
  0x22   : > { %472 = vst [vmem:[#allocation2 + $0x80] sm:$0xff] %v6198_v31  ;;  %473 = vst [vmem:[#allocation2 + $0x88] sm:$0xff] %v6199_v32 }
  0x23   : > { %474 = vst [vmem:[#allocation2 + $0x90] sm:$0xff] %v6202_v33  ;;  %475 = vst [vmem:[#allocation2 + $0x98] sm:$0xff] %v6203_v34 }
  0x24   : > { %476 = vst [vmem:[#allocation2 + $0xa0] sm:$0xff] %v6206_v37  ;;  %477 = vst [vmem:[#allocation2 + $0xa8] sm:$0xff] %v6207_v38 }
  0x25   : > { %478 = vst [vmem:[#allocation2 + $0xb0] sm:$0xff] %v6210_v39  ;;  %479 = vst [vmem:[#allocation2 + $0xb8] sm:$0xff] %v6211_v40 }
  0x26   : > { %480 = vst [vmem:[#allocation2 + $0xc0] sm:$0xff] %v6214_v41  ;;  %481 = vst [vmem:[#allocation2 + $0xc8] sm:$0xff] %v6215_v42 }
  0x27   : > { %482 = vst [vmem:[#allocation2 + $0xd0] sm:$0xff] %v6218_v43  ;;  %483 = vst [vmem:[#allocation2 + $0xd8] sm:$0xff] %v6219_v44 }
  0x28   : > { %484 = vst [vmem:[#allocation2 + $0xe0] sm:$0xff] %v6222_v45  ;;  %485 = vst [vmem:[#allocation2 + $0xe8] sm:$0xff] %v6223_v46 }
  0x29   : > { %486 = vst [vmem:[#allocation2 + $0xf0] sm:$0xff] %v6226_v47  ;;  %487 = vst [vmem:[#allocation2 + $0xf8] sm:$0xff] %v6227_v48 }
  0x2a PF: > { %v7356_v49 = vld [vmem:[%s7564_s16] sm:$0xff]   ;;  %v7357_v50 = vld [vmem:[%s7564_s16 + $0x8] sm:$0xff]   ;;  %v7358_v51 = vld [vmem:[%s7564_s16 + $0x10] sm:$0xff]   ;;  %s8992_s9 = scalar_lea.vmem %s8982_s2, %s7553_s8  ;;  %p6094_p8 = scmp.ne.s32.totalorder %s7460_s24, 1 }
  0x2b   : > { %6578 = vmatprep.subr.bf16.mxu0 %v7356_v49  ;;  %v7359_v52 = vld [vmem:[%s7564_s16 + $0x18] sm:$0xff]   ;;  %v506_v53 = vld [vmem:[#allocation2] sm:$0xff]  ;;  %v507_v54 = vld [vmem:[#allocation2 + $0x8] sm:$0xff] }
  0x2c   : > { %6579 = vmatpush3.bf16.msra.mxu0 %v7356_v49  ;;  %v538_v55 = vpack.c.bf16 %v507_v54, %v506_v53  ;;  %v7360_v56 = vld [vmem:[%s7564_s16 + $0x20] sm:$0xff]   ;;  %v7361_v57 = vld [vmem:[%s7564_s16 + $0x28] sm:$0xff]   ;;  %v7362_v58 = vld [vmem:[%s7564_s16 + $0x30] sm:$0xff]  }
  0x2d   : > { %6580 = vmatprep.subr.bf16.mxu0 %v7357_v50  ;;  %v7365_v59 = vld [vmem:[%s7586_s15 + $0x100] sm:$0xff]   ;;  %v7367_v60 = vld [vmem:[%s7586_s15 + $0x108] sm:$0xff]   ;;  %v7363_v61 = vld [vmem:[%s7564_s16 + $0x38] sm:$0xff]  }
  0x2e   : > { %6594 = vmatprep.mubr.bf16.mxu0 %v538_v55  ;;  %6818 = vmatprep.subr.bf16.mxu1 %v7365_v59  ;;  %v7369_v62 = vld [vmem:[%s7586_s15 + $0x110] sm:$0xff]   ;;  %v509_v0 = vld [vmem:[#allocation2 + $0x18] sm:$0xff]  ;;  %v510_v1 = vld [vmem:[#allocation2 + $0x20] sm:$0xff] }
  0x2f   : > { %6819 = vmatpush3.bf16.msra.mxu1 %v7365_v59  ;;  %v508_v63 = vld [vmem:[#allocation2 + $0x10] sm:$0xff]  ;;  %v511_v2 = vld [vmem:[#allocation2 + $0x28] sm:$0xff]  ;;  %v7364_v3 = vld [vmem:[%s7586_s15 + $0x40] sm:$0xff]  }
  0x30   : > { %6581 = vmatpush3.bf16.msra.mxu0 %v7357_v50  ;;  %6820 = vmatprep.subr.bf16.mxu1 %v7367_v60  ;;  %v539_v4 = vpack.c.bf16 %v509_v0, %v508_v63  ;;  %v7366_v5 = vld [vmem:[%s7586_s15 + $0x48] sm:$0xff]   ;;  %v540_v6 = vpack.c.bf16 %v511_v2, %v510_v1  ;;  %v512_v7 = vld [vmem:[#allocation2 + $0x30] sm:$0xff]  ;;  %v513_v8 = vld [vmem:[#allocation2 + $0x38] sm:$0xff] }
  0x31   : > { %6582 = vmatprep.subr.bf16.mxu0 %v7358_v51  ;;  %v514_v9 = vld [vmem:[#allocation2 + $0x40] sm:$0xff]  ;;  %v515_v10 = vld [vmem:[#allocation2 + $0x48] sm:$0xff]  ;;  %v7368_v11 = vld [vmem:[%s7586_s15 + $0x50] sm:$0xff]   ;;  %v541_v12 = vpack.c.bf16 %v513_v8, %v512_v7 }
  0x32   : > { %v542_v13 = vpack.c.bf16 %v515_v10, %v514_v9  ;;  %v516_v14 = vld [vmem:[#allocation2 + $0x50] sm:$0xff]  ;;  %v517_v15 = vld [vmem:[#allocation2 + $0x58] sm:$0xff]  ;;  %v518_v16 = vld [vmem:[#allocation2 + $0x60] sm:$0xff] }
  0x33   : > { %6821 = vmatpush3.bf16.msra.mxu1 %v7367_v60  ;;  %v519_v17 = vld [vmem:[#allocation2 + $0x68] sm:$0xff]  ;;  %v543_v18 = vpack.c.bf16 %v517_v15, %v516_v14  ;;  %v520_v20 = vld [vmem:[#allocation2 + $0x70] sm:$0xff]  ;;  %v521_v21 = vld [vmem:[#allocation2 + $0x78] sm:$0xff] }
  0x34   : > { %6583 = vmatpush3.bf16.msra.mxu0 %v7358_v51  ;;  %6822 = vmatprep.subr.bf16.mxu1 %v7369_v62  ;;  %v544_v19 = vpack.c.bf16 %v519_v17, %v518_v16  ;;  %v522_v22 = vld [vmem:[#allocation2 + $0x80] sm:$0xff]  ;;  %v523_v23 = vld [vmem:[#allocation2 + $0x88] sm:$0xff]  ;;  %v545_v24 = vpack.c.bf16 %v521_v21, %v520_v20  ;;  %v524_v26 = vld [vmem:[#allocation2 + $0x90] sm:$0xff] }
  0x35   : > { %6584 = vmatprep.subr.bf16.mxu0 %v7359_v52  ;;  %v546_v25 = vpack.c.bf16 %v523_v23, %v522_v22  ;;  %v525_v27 = vld [vmem:[#allocation2 + $0x98] sm:$0xff]  ;;  %v526_v28 = vld [vmem:[#allocation2 + $0xa0] sm:$0xff]  ;;  %v527_v29 = vld [vmem:[#allocation2 + $0xa8] sm:$0xff] }
  0x36   : > { %v547_v30 = vpack.c.bf16 %v525_v27, %v524_v26  ;;  %v548_v31 = vpack.c.bf16 %v527_v29, %v526_v28  ;;  %v528_v32 = vld [vmem:[#allocation2 + $0xb0] sm:$0xff]  ;;  %v529_v33 = vld [vmem:[#allocation2 + $0xb8] sm:$0xff]  ;;  %v530_v34 = vld [vmem:[#allocation2 + $0xc0] sm:$0xff] }
  0x37   : > { %6823 = vmatpush3.bf16.msra.mxu1 %v7369_v62  ;;  %v531_v35 = vld [vmem:[#allocation2 + $0xc8] sm:$0xff]  ;;  %v549_v36 = vpack.c.bf16 %v529_v33, %v528_v32  ;;  %v532_v38 = vld [vmem:[#allocation2 + $0xd0] sm:$0xff]  ;;  %v533_v39 = vld [vmem:[#allocation2 + $0xd8] sm:$0xff]  ;;  %v921_v62 = vlaneseq }
  0x38   : > { %6585 = vmatpush3.bf16.msra.mxu0 %v7359_v52  ;;  %v550_v37 = vpack.c.bf16 %v531_v35, %v530_v34  ;;  %v534_v40 = vld [vmem:[#allocation2 + $0xe0] sm:$0xff]  ;;  %v535_v41 = vld [vmem:[#allocation2 + $0xe8] sm:$0xff]  ;;  %v551_v42 = vpack.c.bf16 %v533_v39, %v532_v38  ;;  %v536_v44 = vld [vmem:[#allocation2 + $0xf0] sm:$0xff] }
  0x39   : > { %6586 = vmatprep.subr.bf16.mxu0 %v7360_v56  ;;  %v552_v43 = vpack.c.bf16 %v535_v41, %v534_v40  ;;  %v537_v45 = vld [vmem:[#allocation2 + $0xf8] sm:$0xff]  ;;  %v7372_v49 = vld [vmem:[%s7586_s15 + $0x60] sm:$0xff]   ;;  %v7374_v51 = vld [vmem:[%s7586_s15 + $0x68] sm:$0xff]   ;;  %v7642_v63 = vshrl.u32 %v921_v62, 7 }
  0x3a   : > { %v553_v46 = vpack.c.bf16 %v537_v45, %v536_v44  ;;  %v7370_v47 = vld [vmem:[%s7586_s15 + $0x58] sm:$0xff]   ;;  %v7373_v50 = vld [vmem:[%s7586_s15 + $0x120] sm:$0xff]   ;;  %v7375_v52 = vld [vmem:[%s7586_s15 + $0x128] sm:$0xff]  }
  0x3b   : > { %v7371_v48 = vld [vmem:[%s7586_s15 + $0x118] sm:$0xff]   ;;  %v7376_v53 = vld [vmem:[%s7586_s15 + $0x70] sm:$0xff]   ;;  %v7635_v60 = vld [vmem:[%s7586_s15 + $0x140] sm:$0xff]   ;;  %v924_v2 = vadd.s32 16, %v7642_v63  ;;  %v928_v7 = vadd.s32 48, %v7642_v63  ;;  %v926_v8 = vadd.s32 32, %v7642_v63 }
  0x3c   : > { %6587 = vmatpush3.bf16.msra.mxu0 %v7360_v56  ;;  %6824 = vmatprep.subr.bf16.mxu1 %v7371_v48  ;;  %v7377_v54 = vld [vmem:[%s7586_s15 + $0x130] sm:$0xff]   ;;  %v7378_v55 = vld [vmem:[%s7586_s15 + $0x78] sm:$0xff]   ;;  %v1690_v0 = vld [vmem:[#allocation3] sm:$0x80]  ;;  %v958_v9 = vand.u32 15, %v7642_v63  ;;  %v929_v10 = vadd.s32 56, %v7642_v63 }
  0x3d   : > { %6588 = vmatprep.subr.bf16.mxu0 %v7361_v57  ;;  %6825 = vmatpush3.bf16.msra.mxu1 %v7371_v48  ;;  %v7379_v56 = vld [vmem:[%s7586_s15 + $0x138] sm:$0xff]   ;;  %v7662_v17 = vld [vmem:[%s8992_s9] ss:$0 sm:$0xff]  ;;  %v986_v20 = vand.u32 15, %v926_v8  ;;  %v7669_v21 = vadd.s32 64, %v7642_v63  ;;  %v7672_v22 = vadd.s32 88, %v7642_v63 }
  0x3e   : > { %6826 = vmatprep.subr.bf16.mxu1 %v7373_v50  ;;  %v1691_v1 = vld [vmem:[#allocation3 + $0x18] sm:$0xff]  ;;  %v7679_v23 = vld [vmem:[%s370_s22] ss:$0 sm:$0xff]  ;;  %vm7681_vm1 = vcmp.ne.s32.totalorder %v958_v9, 0  ;;  %v7687_v27 = vadd.s32 72, %v7642_v63  ;;  %v7690_v28 = vadd.s32 112, %v7642_v63 }
  0x3f   : > { %v7698_v32 = vadd.s32 96, %v7642_v63  ;;  %v7701_v33 = vadd.s32 120, %v7642_v63  ;;  %v7711_v38 = vadd.s32 104, %v7642_v63  ;;  %v7714_v39 = vadd.s32 144, %v7642_v63 }
  0x40   : > { %6589 = vmatpush3.bf16.msra.mxu0 %v7361_v57  ;;  %v1756_v57 = vld [vmem:[#allocation3 + $0x20] sm:$0xff]  ;;  %v1035_v44 = vand.u32 15, %v7672_v22  ;;  %v7722_v45 = vadd.s32 128, %v7642_v63  ;;  %vm7744_vm5 = vcmp.ne.s32.totalorder %v986_v20, 0 }
  0x41   : > { %6590 = vmatprep.subr.bf16.mxu0 %v7362_v58  ;;  %6827 = vmatpush3.bf16.msra.mxu1 %v7373_v50  ;;  %v1056_v50 = vand.u32 15, %v7690_v28  ;;  %v7878_v28 = vadd.s32 240, %v7642_v63 }
  0x42   : > { %6828 = vmatprep.subr.bf16.mxu1 %v7375_v52  ;;  %vm7814_vm10 = vcmp.ne.s32.totalorder %v1035_v44, 15 }
  0x43   : > { %vm7865_vm12 = vcmp.ne.s32.totalorder %v1056_v50, 0  ;;  %v7881_v50 = vadd.s32 224, %v7642_v63 }
  0x44   : > { %6591 = vmatpush3.bf16.msra.mxu0 %v7362_v58  ;;  %v1757_v58 = vld [vmem:[#allocation3 + $0x38] sm:$0xff] }
  0x45   : > { %6592 = vmatprep.subr.bf16.mxu0 %v7363_v61  ;;  %6829 = vmatpush3.bf16.msra.mxu1 %v7375_v52  ;;  %v1788_v59 = vpack.c.bf16 %v1757_v58, %v1756_v57  ;;  %v1049_v57 = vand.u32 15, %v7711_v38  ;;  %v1084_v58 = vand.u32 15, %v7714_v39 }
  0x46   : > { %6830 = vmatprep.subr.bf16.mxu1 %v7377_v54 }
  0x47   : > { %vm7900_vm15 = vcmp.ne.s32.totalorder %v1049_v57, 15 }
  0x48   : > { %6593 = vmatpush3.bf16.msra.mxu0 %v7363_v61  ;;  %v7639_v61 = vld [vmem:[%s7586_s15] sm:$0xff]  }
  0x49   : > { %6626 = vmatprep.subr.bf16.mxu0 %v7364_v3  ;;  %6831 = vmatpush3.bf16.msra.mxu1 %v7377_v54  ;;  %v1063_v54 = vand.u32 15, %v7701_v33 }
  0x4a   : > { %6832 = vmatprep.subr.bf16.mxu1 %v7379_v56 }
  0x4b   : > { %6595 = vmatmul.mubr.bf16.vlgmr.msra.gmra.mrb[0].mxu0 %v539_v4  ;;  %v1723_v4 = vpack.c.bf16 %v1691_v1, %v1690_v0  ;;  %v1070_v1 = vand.u32 15, %v7722_v45  ;;  %vm7885_vm14 = vcmp.ne.s32.totalorder %v1063_v54, 15 }
  0x4c   : > { %6598 = vmatprep.mubr.bf16.mxu0 %v540_v6  ;;  %6627 = vmatpush3.bf16.msra.mxu0 %v7364_v3  ;;  %v925_v3 = vadd.s32 24, %v7642_v63  ;;  %v972_v6 = vand.u32 15, %v924_v2  ;;  %v7742_v2 = vadd.s32 152, %v7642_v63 }
  0x4d   : > { %6628 = vmatprep.subr.bf16.mxu0 %v7366_v5  ;;  %6833 = vmatpush3.bf16.msra.mxu1 %v7379_v56  ;;  %v2032_v14 = vshrl.u32 %v1723_v4, 16  ;;  %v2035_v16 = vshll.u32 %v1723_v4, 16 }
  0x4e   : > { %6866 = vmatprep.subr.bf16.mxu1 %v7635_v60  ;;  %vm7664_vm0 = vcmp.ne.s32.totalorder %v972_v6, 0  ;;  %v7749_v6 = vadd.s32 136, %v7642_v63 }
  0x4f   : > { %v7703_v34 = vrot.slane %v2032_v14, 3  ;;  %v7716_v40 = vrot.slane %v2035_v16, 4  ;;  %v7762_v14 = vadd.s32 184, %v7642_v63 }
  0x50   : > { %6629 = vmatpush3.bf16.msra.mxu0 %v7366_v5  ;;  %v923_v5 = vadd.s32 8, %v7642_v63 }
  0x51   : > { %6630 = vmatprep.subr.bf16.mxu0 %v7368_v11 }
  0x52   : > { %v965_v15 = vand.u32 15, %v923_v5 }
  0x53   : > { %6599 = vmatmul.mubr.bf16.gmra.mrb[4].mxu0 %v541_v12  ;;  %v979_v12 = vand.u32 15, %v925_v3 }
  0x54   : > { %6602 = vmatprep.mubr.bf16.mxu0 %v542_v13  ;;  %6631 = vmatpush3.bf16.msra.mxu0 %v7368_v11  ;;  %v7652_v11 = vadd.s32 40, %v7642_v63  ;;  %v7655_v13 = vadd.s32 80, %v7642_v63  ;;  %vm7706_vm3 = vcmp.ne.s32.totalorder %v965_v15, 15 }
  0x55   : > { %6632 = vmatprep.subr.bf16.mxu0 %v7370_v47  ;;  %vm7692_vm2 = vcmp.ne.s32.totalorder %v979_v12, 15  ;;  %v7759_v12 = vadd.s32 160, %v7642_v63 }
  0x56   : > { %v993_v26 = vand.u32 15, %v7652_v11 }
  0x58   : > { %6633 = vmatpush3.bf16.msra.mxu0 %v7370_v47  ;;  %vm7767_vm7 = vcmp.ne.s32.totalorder %v993_v26, 15 }
  0x59   : > { %6634 = vmatprep.subr.bf16.mxu0 %v7372_v49 }
  0x5b   : > { %6603 = vmatmul.mubr.bf16.gmra.mrb[8].mxu0 %v543_v18 }
  0x5c   : > { %6606 = vmatprep.mubr.bf16.mxu0 %v544_v19  ;;  %6635 = vmatpush3.bf16.msra.mxu0 %v7372_v49  ;;  %v1000_v19 = vand.u32 15, %v928_v7  ;;  %v1021_v49 = vand.u32 15, %v7687_v27  ;;  %v7752_v7 = vadd.s32 176, %v7642_v63 }
  0x5d   : > { %6636 = vmatprep.subr.bf16.mxu0 %v7374_v51 }
  0x5e   : > { %vm7736_vm4 = vcmp.ne.s32.totalorder %v1000_v19, 0  ;;  %vm7829_vm11 = vcmp.ne.s32.totalorder %v1021_v49, 15 }
  0x60   : > { %6637 = vmatpush3.bf16.msra.mxu0 %v7374_v51 }
  0x61   : > { %6638 = vmatprep.subr.bf16.mxu0 %v7376_v53 }
  0x63   : > { %6607 = vmatmul.mubr.bf16.gmra.mrb[12].mxu0 %v545_v24 }
  0x64   : > { %6610 = vmatprep.mubr.bf16.mxu0 %v546_v25  ;;  %6639 = vmatpush3.bf16.msra.mxu0 %v7376_v53  ;;  %v1007_v25 = vand.u32 15, %v929_v10  ;;  %v1042_v53 = vand.u32 15, %v7698_v32 }
  0x65   : > { %6640 = vmatprep.subr.bf16.mxu0 %v7378_v55 }
  0x66   : > { %vm7754_vm6 = vcmp.ne.s32.totalorder %v1007_v25, 15  ;;  %vm7873_vm13 = vcmp.ne.s32.totalorder %v1042_v53, 0  ;;  %v7890_v53 = vadd.s32 248, %v7642_v63 }
  0x68   : > { %6641 = vmatpush3.bf16.msra.mxu0 %v7378_v55 }
  0x69   : > { %6674 = vmatprep.subr.bf16.mxu0 %v7639_v61 }
  0x6b   : > { %6611 = vmatmul.mubr.bf16.gmra.mrb[16].mxu0 %v547_v30 }
  0x6c   : > { %6614 = vmatprep.mubr.bf16.mxu0 %v548_v31  ;;  %v1028_v31 = vand.u32 15, %v7655_v13  ;;  %v1119_v13 = vand.u32 15, %v7762_v14 }
  0x6e   : > { %vm7798_vm8 = vcmp.ne.s32.totalorder %v1028_v31, 0 }
  0x73   : > { %6615 = vmatmul.mubr.bf16.gmra.mrb[20].mxu0 %v549_v36 }
  0x74   : > { %6618 = vmatprep.mubr.bf16.mxu0 %v550_v37 }
  0x7b   : > { %6619 = vmatmul.mubr.bf16.gmra.mrb[24].mxu0 %v551_v42 }
  0x7c   : > { %6622 = vmatprep.mubr.bf16.mxu0 %v552_v43  ;;  %v1014_v43 = vand.u32 15, %v7669_v21 }
  0x7e   : > { %vm7806_vm9 = vcmp.ne.s32.totalorder %v1014_v43, 0  ;;  %v7821_v43 = vadd.s32 192, %v7642_v63 }
  0x80   : > { %v1126_v25 = vand.u32 15, %v7821_v43 }
  0x83   : > { %6623 = vmatmul.mubr.bf16.gmra.mrb[28].mxu0 %v553_v46 }
  0x84   : > { %6642 = vmatprep.mubr.bf16.mxu0 %v1788_v59 }
 0x11e   : > { %v6596_v29 = vpop.f32.mrb[0].mxu0 }
 0x11f   : > { %v788_v35 = vmul.f32 %v6596_v29, %v7662_v17  ;;  %v652_v36 = vpop.f32.mrb[1].mxu0  ;;  %v7772_v29 = vadd.s32 168, %v7642_v63 }
 0x120   : > { %v786_v41 = vmul.f32 %v7662_v17, %v652_v36  ;;  %v6597_v42 = vpop.f32.mrb[2].mxu0 }
 0x121   : > { %v827_v46 = vadd.f32 %v7679_v23, %v788_v35  ;;  %v789_v47 = vmul.f32 %v6597_v42, %v7662_v17  ;;  %v655_v48 = vpop.f32.mrb[3].mxu0  ;;  %v7778_v42 = vadd.s32 208, %v7642_v63  ;;  %v1105_v31 = vand.u32 15, %v7772_v29 }
 0x122   : > { %v825_v51 = vadd.f32 %v7679_v23, %v786_v41  ;;  %v787_v52 = vmul.f32 %v7662_v17, %v655_v48 }
 0x123   : > { %v859_v55 = vmul.f32 0.1, %v827_v46  ;;  %v828_v56 = vadd.f32 %v7679_v23, %v789_v47  ;;  %v1140_v21 = vand.u32 15, %v7778_v42 }
 0x124   : > { %v857_v59 = vmul.f32 0.1, %v825_v51  ;;  %v826_v62 = vadd.f32 %v7679_v23, %v787_v52 }
 0x125   : > { %v891_v3 = vmax.f32 %v827_v46, %v859_v55  ;;  %v860_v4 = vmul.f32 0.1, %v828_v56 }
 0x126   : > { %v889_v8 = vmax.f32 %v825_v51, %v857_v59  ;;  %v858_v9 = vmul.f32 0.1, %v826_v62  ;;  %v6600_v10 = vpop.f32.mrb[4].mxu0 }
 0x127   : > { %1468 = vst [vmem:[#allocation3 + $0x78] sm:$0xff] %v891_v3  ;;  %1500 = vst [vmem:[#allocation3 + $0x80] sm:$0xff] %v891_v3  ;;  %v1628_v15 = vsel %vm7664_vm0, %v891_v3, 0.0  ;;  %v892_v16 = vmax.f32 %v828_v56, %v860_v4  ;;  %v792_v19 = vmul.f32 %v6600_v10, %v7662_v17  ;;  %v668_v20 = vpop.f32.mrb[5].mxu0  ;;  %v1091_v4 = vand.u32 15, %v7742_v2 }
 0x128   : > { %1660 = vst [vmem:[#allocation3 + $0x88] sm:$0xff] %v1628_v15  ;;  %1466 = vst [vmem:[#allocation3 + $0x48] sm:$0xff] %v889_v8  ;;  %v1626_v35 = vsel %vm7681_vm1, %v889_v8, 0.0  ;;  %v890_v36 = vmax.f32 %v826_v62, %v858_v9  ;;  %v790_v18 = vmul.f32 %v7662_v17, %v668_v20  ;;  %v6601_v41 = vpop.f32.mrb[6].mxu0  ;;  %v7790_v62 = vld [vmem:[%s7586_s15 + $0x148] sm:$0xff]   ;;  %vm7932_vm0 = vcmp.ne.s32.totalorder %v1084_v58, 0 }
 0x129   : > { %1658 = vst [vmem:[#allocation3 + $0x58] sm:$0xff] %v1626_v35  ;;  %v1437_v26 = vsel %vm7692_vm2, %v892_v16, 0.0  ;;  %1501 = vst [vmem:[#allocation3 + $0x98] sm:$0xff] %v892_v16  ;;  %v831_v46 = vadd.f32 %v7679_v23, %v792_v19  ;;  %v793_v24 = vmul.f32 %v6601_v41, %v7662_v17  ;;  %v671_v47 = vpop.f32.mrb[7].mxu0  ;;  %v1790_v48 = vpack.c.bf16 %v892_v16, %v891_v3  ;;  %v7386_v9 = vld [vmem:[%s7586_s15 + $0x8] sm:$0xff]  }
 0x12a   : > { %1661 = vst [vmem:[#allocation3 + $0xa0] sm:$0xff] %v892_v16  ;;  %1469 = vst [vmem:[#allocation3 + $0x90] sm:$0xff] %v1437_v26  ;;  %v1435_v51 = vsel %vm7706_vm3, %v890_v36, 0.0  ;;  %v829_v52 = vadd.f32 %v7679_v23, %v790_v18  ;;  %v791_v30 = vmul.f32 %v7662_v17, %v671_v47  ;;  %v1789_v55 = vpack.c.bf16 %v890_v36, %v889_v8  ;;  %v7382_v47 = vld [vmem:[%s7586_s15 + $0x150] sm:$0xff]  }
 0x12b   : > { %1659 = vst [vmem:[#allocation3 + $0x70] sm:$0xff] %v890_v36  ;;  %1467 = vst [vmem:[#allocation3 + $0x60] sm:$0xff] %v1435_v51  ;;  %v863_v56 = vmul.f32 0.1, %v831_v46  ;;  %v832_v59 = vadd.f32 %v7679_v23, %v793_v24  ;;  %v1077_v3 = vand.u32 15, %v7749_v6  ;;  %v1112_v8 = vand.u32 15, %v7752_v7 }
 0x12c   : > { %v861_v10 = vmul.f32 0.1, %v829_v52  ;;  %v830_v37 = vadd.f32 %v7679_v23, %v791_v30  ;;  %6643 = vmatmul.mubr.bf16.vlgmr.msra.gmra.mrb[32].mxu0 %v1789_v55  ;;  %6834 = vmatprep.mubr.bf16.mxu1 %v1789_v55  ;;  %v1098_v16 = vand.u32 15, %v7759_v12  ;;  %v1692_v30 = vld [vmem:[#allocation3 + $0x30] sm:$0xff]  ;;  %vm7940_vm1 = vcmp.ne.s32.totalorder %v1070_v1, 0 }
 0x12d   : > { %v895_v19 = vmax.f32 %v831_v46, %v863_v56  ;;  %v864_v20 = vmul.f32 0.1, %v832_v59  ;;  %6646 = vmatprep.mubr.bf16.mxu0 %v1790_v48  ;;  %6835 = vmatmul.mubr.bf16.vlgmr.msra.gmra.mrb[0].mxu1 %v1790_v48  ;;  %v7387_v48 = vld [vmem:[%s7586_s15 + $0x10] sm:$0xff]   ;;  %vm7949_vm2 = vcmp.ne.s32.totalorder %v1091_v4, 15  ;;  %vm7958_vm3 = vcmp.ne.s32.totalorder %v1077_v3, 15 }
 0x12e   : > { %v893_v36 = vmax.f32 %v829_v52, %v861_v10  ;;  %v862_v18 = vmul.f32 0.1, %v830_v37  ;;  %v6604_v41 = vpop.f32.mrb[8].mxu0  ;;  %6867 = vmatpush3.bf16.msra.mxu1 %v7635_v60  ;;  %6675 = vmatpush3.bf16.msra.mxu0 %v7639_v61  ;;  %v7836_v61 = vadd.s32 216, %v7642_v63  ;;  %v7843_v52 = vadd.s32 200, %v7642_v63  ;;  %v7391_v4 = vld [vmem:[%s7586_s15 + $0x170] sm:$0xff]  }
 0x12f   : > { %1472 = vst [vmem:[#allocation3 + $0xd8] sm:$0xff] %v895_v19  ;;  %1504 = vst [vmem:[#allocation3 + $0xe0] sm:$0xff] %v895_v19  ;;  %v1632_v46 = vsel %vm7736_vm4, %v895_v19, 0.0  ;;  %v896_v22 = vmax.f32 %v832_v59, %v864_v20  ;;  %v796_v44 = vmul.f32 %v6604_v41, %v7662_v17  ;;  %v684_v24 = vpop.f32.mrb[9].mxu0  ;;  %6868 = vmatprep.subr.bf16.mxu1 %v7790_v62  ;;  %6676 = vmatprep.subr.bf16.mxu0 %v7386_v9  ;;  %v1693_v55 = vld [vmem:[#allocation3 + $0x48] sm:$0xff] }
 0x130   : > { %1664 = vst [vmem:[#allocation3 + $0xe8] sm:$0xff] %v1632_v46  ;;  %1470 = vst [vmem:[#allocation3 + $0xa8] sm:$0xff] %v893_v36  ;;  %v1630_v0 = vsel %vm7744_vm5, %v893_v36, 0.0  ;;  %v894_v51 = vmax.f32 %v830_v37, %v862_v18  ;;  %v794_v27 = vmul.f32 %v7662_v17, %v684_v24  ;;  %v6605_v49 = vpop.f32.mrb[10].mxu0  ;;  %v7860_v24 = vpack.c.bf16 %v1693_v55, %v1692_v30 }
 0x131   : > { %1502 = vst [vmem:[#allocation3 + $0xb0] sm:$0xff] %v893_v36  ;;  %1662 = vst [vmem:[#allocation3 + $0xb8] sm:$0xff] %v1630_v0  ;;  %v1441_v56 = vsel %vm7754_vm6, %v896_v22, 0.0  ;;  %v835_v59 = vadd.f32 %v7679_v23, %v796_v44  ;;  %v797_v5 = vmul.f32 %v6605_v49, %v7662_v17  ;;  %v687_v10 = vpop.f32.mrb[11].mxu0  ;;  %v1792_v37 = vpack.c.bf16 %v896_v22, %v895_v19  ;;  %v7856_v19 = vld [vmem:[%s7586_s15 + $0x158] sm:$0xff]  }
 0x132   : > { %1505 = vst [vmem:[#allocation3 + $0xf8] sm:$0xff] %v896_v22  ;;  %1665 = vst [vmem:[#allocation3 + $0x100] sm:$0xff] %v896_v22  ;;  %v1439_v20 = vsel %vm7767_vm7, %v894_v51, 0.0  ;;  %v833_v18 = vadd.f32 %v7679_v23, %v794_v27  ;;  %v795_v11 = vmul.f32 %v7662_v17, %v687_v10  ;;  %v1791_v41 = vpack.c.bf16 %v894_v51, %v893_v36  ;;  %v7389_v22 = vld [vmem:[%s7586_s15 + $0x18] sm:$0xff]  }
 0x133   : > { %1473 = vst [vmem:[#allocation3 + $0xf0] sm:$0xff] %v1441_v56  ;;  %1503 = vst [vmem:[#allocation3 + $0xc8] sm:$0xff] %v894_v51  ;;  %6869 = vmatpush3.bf16.msra.mxu1 %v7790_v62  ;;  %6677 = vmatpush3.bf16.msra.mxu0 %v7386_v9  ;;  %v867_v46 = vmul.f32 0.1, %v835_v59  ;;  %v836_v44 = vadd.f32 %v7679_v23, %v797_v5  ;;  %v1147_v9 = vand.u32 15, %v7836_v61  ;;  %v1133_v36 = vand.u32 15, %v7843_v52 }
 0x134   : > { %1663 = vst [vmem:[#allocation3 + $0xd0] sm:$0xff] %v894_v51  ;;  %1471 = vst [vmem:[#allocation3 + $0xc0] sm:$0xff] %v1439_v20  ;;  %6870 = vmatprep.subr.bf16.mxu1 %v7382_v47  ;;  %6678 = vmatprep.subr.bf16.mxu0 %v7387_v48  ;;  %v865_v0 = vmul.f32 0.1, %v833_v18  ;;  %v834_v27 = vadd.f32 %v7679_v23, %v795_v11  ;;  %v2040_v20 = vshrl.u32 %v7860_v24, 16  ;;  %v2043_v11 = vshll.u32 %v7860_v24, 16 }
 0x135   : > { %6647 = vmatmul.mubr.bf16.gmra.mrb[36].mxu0 %v1791_v41  ;;  %6838 = vmatprep.mubr.bf16.mxu1 %v1791_v41  ;;  %v899_v51 = vmax.f32 %v835_v59, %v867_v46  ;;  %v868_v49 = vmul.f32 0.1, %v836_v44  ;;  %v7893_v59 = vadd.s32 232, %v7642_v63  ;;  %v7385_v63 = vld [vmem:[%s7586_s15 + $0x160] sm:$0xff]   ;;  %v3647_v41 = vld [vmem:[#allocation3 + $0x58] sm:$0xfe] }
 0x136   : > { %6650 = vmatprep.mubr.bf16.mxu0 %v1792_v37  ;;  %6839 = vmatmul.mubr.bf16.gmra.mrb[4].mxu1 %v1792_v37  ;;  %v897_v55 = vmax.f32 %v833_v18, %v865_v0  ;;  %v866_v56 = vmul.f32 0.1, %v834_v27  ;;  %v6608_v5 = vpop.f32.mrb[12].mxu0  ;;  %v3648_v46 = vld [vmem:[#allocation3 + $0x70] sm:$0xff]  ;;  %v1168_v60 = vand.u32 15, %v7878_v28  ;;  %v2042_v1 = vrot.slane %v2040_v20, 3 }
 0x137   : > { %6871 = vmatpush3.bf16.msra.mxu1 %v7382_v47  ;;  %6679 = vmatpush3.bf16.msra.mxu0 %v7387_v48  ;;  %1476 = vst [vmem:[#allocation3 + $0x138] sm:$0xff] %v899_v51  ;;  %1508 = vst [vmem:[#allocation3 + $0x140] sm:$0xff] %v899_v51  ;;  %v1636_v10 = vsel %vm7798_vm8, %v899_v51, 0.0  ;;  %v900_v37 = vmax.f32 %v836_v44, %v868_v49  ;;  %v800_v33 = vmul.f32 %v6608_v5, %v7662_v17  ;;  %v700_v54 = vpop.f32.mrb[13].mxu0  ;;  %v7390_v48 = vld [vmem:[%s7586_s15 + $0x20] sm:$0xff]   ;;  %v1695_v20 = vld [vmem:[#allocation3 + $0x78] sm:$0xff] }
 0x138   : > { %6872 = vmatprep.subr.bf16.mxu1 %v7856_v19  ;;  %6680 = vmatprep.subr.bf16.mxu0 %v7389_v22  ;;  %1668 = vst [vmem:[#allocation3 + $0x148] sm:$0xff] %v1636_v10  ;;  %1474 = vst [vmem:[#allocation3 + $0x108] sm:$0xff] %v897_v55  ;;  %v1634_v15 = vsel %vm7806_vm9, %v897_v55, 0.0  ;;  %v898_v18 = vmax.f32 %v834_v27, %v866_v56  ;;  %v798_v38 = vmul.f32 %v7662_v17, %v700_v54  ;;  %v6609_v57 = vpop.f32.mrb[14].mxu0  ;;  %v3649_v10 = vld [vmem:[#allocation3 + $0x88] sm:$0xff] }
 0x139   : > { %1506 = vst [vmem:[#allocation3 + $0x110] sm:$0xff] %v897_v55  ;;  %1666 = vst [vmem:[#allocation3 + $0x118] sm:$0xff] %v1634_v15  ;;  %v1445_v44 = vsel %vm7814_vm10, %v900_v37, 0.0  ;;  %v839_v0 = vadd.f32 %v7679_v23, %v800_v33  ;;  %v801_v49 = vmul.f32 %v6609_v57, %v7662_v17  ;;  %v703_v35 = vpop.f32.mrb[15].mxu0  ;;  %v1794_v5 = vpack.c.bf16 %v900_v37, %v899_v51  ;;  %v3650_v33 = vld [vmem:[#allocation3 + $0xa0] sm:$0xff]  ;;  %v7924_v54 = vld [vmem:[%s7586_s15 + $0x168] sm:$0xff]  }
 0x13a   : > { %1509 = vst [vmem:[#allocation3 + $0x158] sm:$0xff] %v900_v37  ;;  %1669 = vst [vmem:[#allocation3 + $0x160] sm:$0xff] %v900_v37  ;;  %v1443_v27 = vsel %vm7829_vm11, %v898_v18, 0.0  ;;  %v837_v24 = vadd.f32 %v7679_v23, %v798_v38  ;;  %v799_v26 = vmul.f32 %v7662_v17, %v703_v35  ;;  %v1793_v56 = vpack.c.bf16 %v898_v18, %v897_v55  ;;  %v7392_v15 = vld [vmem:[%s7586_s15 + $0x28] sm:$0xff]  }
 0x13b   : > { %1477 = vst [vmem:[#allocation3 + $0x150] sm:$0xff] %v1445_v44  ;;  %1507 = vst [vmem:[#allocation3 + $0x128] sm:$0xff] %v898_v18  ;;  %6873 = vmatpush3.bf16.msra.mxu1 %v7856_v19  ;;  %6681 = vmatpush3.bf16.msra.mxu0 %v7389_v22  ;;  %v871_v51 = vmul.f32 0.1, %v839_v0  ;;  %v840_v37 = vadd.f32 %v7679_v23, %v801_v49  ;;  %v7927_v38 = vpack.c.bf16 %v3648_v46, %v3647_v41  ;;  %v1694_v46 = vld [vmem:[#allocation3 + $0x60] sm:$0xff] }
 0x13c   : > { %1667 = vst [vmem:[#allocation3 + $0x130] sm:$0xff] %v898_v18  ;;  %1475 = vst [vmem:[#allocation3 + $0x120] sm:$0xff] %v1443_v27  ;;  %6874 = vmatprep.subr.bf16.mxu1 %v7385_v63  ;;  %6682 = vmatprep.subr.bf16.mxu0 %v7390_v48  ;;  %v869_v57 = vmul.f32 0.1, %v837_v24  ;;  %v838_v55 = vadd.f32 %v7679_v23, %v799_v26  ;;  %v1154_v22 = vand.u32 15, %v7881_v50  ;;  %v1175_v18 = vand.u32 15, %v7890_v53 }
 0x13d   : > { %6651 = vmatmul.mubr.bf16.gmra.mrb[40].mxu0 %v1793_v56  ;;  %6842 = vmatprep.mubr.bf16.mxu1 %v1793_v56  ;;  %v903_v44 = vmax.f32 %v839_v0, %v871_v51  ;;  %v872_v49 = vmul.f32 0.1, %v840_v37  ;;  %v1161_v39 = vand.u32 15, %v7893_v59  ;;  %v7945_v58 = vpack.c.bf16 %v3650_v33, %v3649_v10  ;;  %v8033_v19 = vld [vmem:[%s7586_s15 + $0x80] sm:$0xff]  }
 0x13e   : > { %6654 = vmatprep.mubr.bf16.mxu0 %v1794_v5  ;;  %6843 = vmatmul.mubr.bf16.gmra.mrb[8].mxu1 %v1794_v5  ;;  %v901_v35 = vmax.f32 %v837_v24, %v869_v57  ;;  %v870_v27 = vmul.f32 0.1, %v838_v55  ;;  %v6612_v26 = vpop.f32.mrb[16].mxu0  ;;  %v2045_v0 = vrot.slane %v2043_v11, 4  ;;  %v7969_v33 = vpack.c.bf16 %v1695_v20, %v1694_v46  ;;  %v1696_v20 = vld [vmem:[#allocation3 + $0x90] sm:$0xff] }
 0x13f   : > { %6875 = vmatpush3.bf16.msra.mxu1 %v7385_v63  ;;  %6683 = vmatpush3.bf16.msra.mxu0 %v7390_v48  ;;  %1480 = vst [vmem:[#allocation3 + $0x198] sm:$0xff] %v903_v44  ;;  %1512 = vst [vmem:[#allocation3 + $0x1a0] sm:$0xff] %v903_v44  ;;  %v1640_v5 = vsel %vm7865_vm12, %v903_v44, 0.0  ;;  %v904_v24 = vmax.f32 %v840_v37, %v872_v49  ;;  %v804_v56 = vmul.f32 %v6612_v26, %v7662_v17  ;;  %v716_v10 = vpop.f32.mrb[17].mxu0  ;;  %v7393_v63 = vld [vmem:[%s7586_s15 + $0x30] sm:$0xff]  }
 0x140   : > { %6876 = vmatprep.subr.bf16.mxu1 %v7924_v54  ;;  %6684 = vmatprep.subr.bf16.mxu0 %v7392_v15  ;;  %v3717_v48 = vshll.u32 %v7927_v38, 16  ;;  %1672 = vst [vmem:[#allocation3 + $0x1a8] sm:$0xff] %v1640_v5  ;;  %1478 = vst [vmem:[#allocation3 + $0x168] sm:$0xff] %v901_v35  ;;  %v1638_v62 = vsel %vm7873_vm13, %v901_v35, 0.0  ;;  %v902_v11 = vmax.f32 %v838_v55, %v870_v27  ;;  %v6613_v3 = vpop.f32.mrb[18].mxu0  ;;  %v1697_v55 = vld [vmem:[#allocation3 + $0xa8] sm:$0xff] }
 0x141   : > { %1510 = vst [vmem:[#allocation3 + $0x170] sm:$0xff] %v901_v35  ;;  %v802_v6 = vmul.f32 %v7662_v17, %v716_v10  ;;  %1670 = vst [vmem:[#allocation3 + $0x178] sm:$0xff] %v1638_v62  ;;  %v1449_v51 = vsel %vm7885_vm14, %v904_v24, 0.0  ;;  %v843_v37 = vadd.f32 %v7679_v23, %v804_v56  ;;  %v805_v57 = vmul.f32 %v6613_v3, %v7662_v17  ;;  %v719_v30 = vpop.f32.mrb[19].mxu0  ;;  %v7981_v5 = vld [vmem:[%s7586_s15 + $0x178] sm:$0xff]   ;;  %v3652_v62 = vld [vmem:[#allocation3 + $0xd0] sm:$0xff] }
 0x142   : > { %1513 = vst [vmem:[#allocation3 + $0x1b8] sm:$0xff] %v904_v24  ;;  %1673 = vst [vmem:[#allocation3 + $0x1c0] sm:$0xff] %v904_v24  ;;  %v1796_v49 = vpack.c.bf16 %v904_v24, %v903_v44  ;;  %v1447_v46 = vsel %vm7900_vm15, %v902_v11, 0.0  ;;  %v803_v27 = vmul.f32 %v7662_v17, %v719_v30  ;;  %v1795_v26 = vpack.c.bf16 %v902_v11, %v901_v35  ;;  %v7984_v56 = vld [vmem:[%s7586_s15 + $0x38] sm:$0xff]  }
 0x143   : > { %1481 = vst [vmem:[#allocation3 + $0x1b0] sm:$0xff] %v1449_v51  ;;  %1511 = vst [vmem:[#allocation3 + $0x188] sm:$0xff] %v902_v11  ;;  %v841_v32 = vadd.f32 %v7679_v23, %v802_v6  ;;  %6877 = vmatpush3.bf16.msra.mxu1 %v7924_v54  ;;  %6685 = vmatpush3.bf16.msra.mxu0 %v7392_v15  ;;  %v875_v44 = vmul.f32 0.1, %v843_v37  ;;  %v844_v24 = vadd.f32 %v7679_v23, %v805_v57  ;;  %v3651_v35 = vld [vmem:[#allocation3 + $0xb8] sm:$0xff] }
 0x144   : > { %1671 = vst [vmem:[#allocation3 + $0x190] sm:$0xff] %v902_v11  ;;  %1479 = vst [vmem:[#allocation3 + $0x180] sm:$0xff] %v1447_v46  ;;  %6878 = vmatprep.subr.bf16.mxu1 %v7391_v4  ;;  %6686 = vmatprep.subr.bf16.mxu0 %v7393_v63  ;;  %v2038_v47 = vor.u32 %v7716_v40, %v7703_v34  ;;  %v3715_v10 = vshrl.u32 %v7927_v38, 16  ;;  %v842_v15 = vadd.f32 %v7679_v23, %v803_v27  ;;  %vm2030_vm8 = vsmask.f32 4352 }
 0x145   : > { %v873_v54 = vmul.f32 0.1, %v841_v32  ;;  %vm7993_vm4 = vcmp.ne.s32.totalorder %v1112_v8, 0  ;;  %6655 = vmatmul.mubr.bf16.gmra.mrb[44].mxu0 %v1795_v26  ;;  %6846 = vmatprep.mubr.bf16.mxu1 %v1795_v26  ;;  %v7997_v6 = vor.u32 %v2045_v0, %v2042_v1  ;;  %v7999_v3 = vpack.c.bf16 %v1697_v55, %v1696_v20 }
 0x146   : > { %v907_v51 = vmax.f32 %v843_v37, %v875_v44  ;;  %v876_v57 = vmul.f32 0.1, %v844_v24  ;;  %vm8003_vm5 = vcmp.ne.s32.totalorder %v1098_v16, 0  ;;  %6658 = vmatprep.mubr.bf16.mxu0 %v1796_v49  ;;  %6847 = vmatmul.mubr.bf16.gmra.mrb[12].mxu1 %v1796_v49  ;;  %v3719_v7 = vrot.slane %v3717_v48, 1  ;;  %v6616_v26 = vpop.f32.mrb[20].mxu0  ;;  %v1707_v53 = vld [vmem:[#allocation3 + $0x198] sm:$0xff] }
 0x147   : > { %v3722_v8 = vshll.u32 %v7945_v58, 16  ;;  %v905_v46 = vmax.f32 %v841_v32, %v873_v54  ;;  %v874_v27 = vmul.f32 0.1, %v842_v15  ;;  %vm8010_vm6 = vcmp.ne.s32.totalorder %v1119_v13, 15  ;;  %6879 = vmatpush3.bf16.msra.mxu1 %v7391_v4  ;;  %6687 = vmatpush3.bf16.msra.mxu0 %v7393_v63  ;;  %v732_v37 = vpop.f32.mrb[21].mxu0  ;;  %v8030_v63 = vld [vmem:[%s7586_s15 + $0x180] sm:$0xff]  }
 0x148   : > { %v2049_v12 = vshrl.u32 %v7969_v33, 16  ;;  %v8015_v16 = vpack.c.bf16 %v3652_v62, %v3651_v35  ;;  %1484 = vst [vmem:[#allocation3 + $0x1f8] sm:$0xff] %v907_v51  ;;  %1516 = vst [vmem:[#allocation3 + $0x200] sm:$0xff] %v907_v51  ;;  %v1644_v0 = vsel %vm7932_vm0, %v907_v51, 0.0  ;;  %v908_v48 = vmax.f32 %v844_v24, %v876_v57  ;;  %6880 = vmatprep.subr.bf16.mxu1 %v7981_v5  ;;  %v6617_v55 = vpop.f32.mrb[22].mxu0 }
 0x149   : > { %v808_v14 = vmul.f32 %v6616_v26, %v7662_v17  ;;  %vm8022_vm7 = vcmp.ne.s32.totalorder %v1105_v31, 15  ;;  %6688 = vmatprep.subr.bf16.mxu0 %v7984_v56  ;;  %v2052_v4 = vshll.u32 %v7969_v33, 16  ;;  %1676 = vst [vmem:[#allocation3 + $0x208] sm:$0xff] %v1644_v0  ;;  %1482 = vst [vmem:[#allocation3 + $0x1c8] sm:$0xff] %v905_v46  ;;  %v1642_v29 = vsel %vm7940_vm1, %v905_v46, 0.0  ;;  %v735_v41 = vpop.f32.mrb[23].mxu0 }
 0x14a   : > { %1514 = vst [vmem:[#allocation3 + $0x1d0] sm:$0xff] %v905_v46  ;;  %v8037_v31 = vmax.f32 %v842_v15, %v874_v27  ;;  %v806_v49 = vmul.f32 %v7662_v17, %v732_v37  ;;  %v2058_v32 = vshrl.u32 %v7999_v3, 16  ;;  %1674 = vst [vmem:[#allocation3 + $0x1d8] sm:$0xff] %v1642_v29  ;;  %v1453_v33 = vsel %vm7949_vm2, %v908_v48, 0.0 }
 0x14b   : > { %1517 = vst [vmem:[#allocation3 + $0x218] sm:$0xff] %v908_v48  ;;  %1677 = vst [vmem:[#allocation3 + $0x220] sm:$0xff] %v908_v48  ;;  %v847_v44 = vadd.f32 %v7679_v23, %v808_v14  ;;  %v809_v24 = vmul.f32 %v6617_v55, %v7662_v17  ;;  %v1798_v20 = vpack.c.bf16 %v908_v48, %v907_v51  ;;  %6881 = vmatpush3.bf16.msra.mxu1 %v7981_v5  ;;  %vm2475_vm9 = vsmask.f32 7424  ;;  %v3654_v55 = vld [vmem:[#allocation3 + $0x100] sm:$0xff] }
 0x14c   : > { %1485 = vst [vmem:[#allocation3 + $0x210] sm:$0xff] %v1453_v33  ;;  %v1451_v35 = vsel %vm7958_vm3, %v8037_v31, 0.0  ;;  %1515 = vst [vmem:[#allocation3 + $0x1e8] sm:$0xff] %v8037_v31  ;;  %v845_v45 = vadd.f32 %v7679_v23, %v806_v49  ;;  %v807_v62 = vmul.f32 %v7662_v17, %v735_v41  ;;  %v1797_v54 = vpack.c.bf16 %v8037_v31, %v905_v46  ;;  %v3653_v49 = vld [vmem:[#allocation3 + $0xe8] sm:$0xff] }
 0x14d   : > { %1675 = vst [vmem:[#allocation3 + $0x1f0] sm:$0xff] %v8037_v31  ;;  %6689 = vmatpush3.bf16.msra.mxu0 %v7984_v56  ;;  %1483 = vst [vmem:[#allocation3 + $0x1e0] sm:$0xff] %v1451_v35  ;;  %v879_v15 = vmul.f32 0.1, %v847_v44  ;;  %v848_v51 = vadd.f32 %v7679_v23, %v809_v24  ;;  %v8058_v2 = vor.u32 %v3719_v7, %v3715_v10  ;;  %6914 = vmatprep.subr.bf16.mxu1 %v8030_v63 }
 0x14e   : > { %v2061_v57 = vshll.u32 %v7999_v3, 16  ;;  %6722 = vmatprep.subr.bf16.mxu0 %v8033_v19  ;;  %v877_v46 = vmul.f32 0.1, %v845_v45  ;;  %v846_v5 = vadd.f32 %v7679_v23, %v807_v62  ;;  %vm8066_vm10 = vcmp.ne.s32.totalorder %v1140_v21, 0  ;;  %6659 = vmatmul.mubr.bf16.gmra.mrb[48].mxu0 %v1797_v54  ;;  %v6620_v0 = vpop.f32.mrb[24].mxu0 }
 0x14f   : > { %6850 = vmatprep.mubr.bf16.mxu1 %v1797_v54  ;;  %v2051_v38 = vrot.slane %v2049_v12, 3  ;;  %v2054_v10 = vrot.slane %v2052_v4, 4  ;;  %v911_v7 = vmax.f32 %v847_v44, %v879_v15  ;;  %v880_v27 = vmul.f32 0.1, %v848_v51  ;;  %6662 = vmatprep.mubr.bf16.mxu0 %v1798_v20  ;;  %v748_v37 = vpop.f32.mrb[25].mxu0 }
 0x150   : > { %vm8072_vm11 = vcmp.ne.s32.totalorder %v1126_v25, 0  ;;  %6851 = vmatmul.mubr.bf16.gmra.mrb[16].mxu1 %v1798_v20  ;;  %v8078_v42 = vrot.slane %v3722_v8, 1  ;;  %v3726_v21 = vshrl.u32 %v7945_v58, 16  ;;  %v8081_v26 = vmax.f32 %v845_v45, %v877_v46  ;;  %v6621_v52 = vpop.f32.mrb[26].mxu0 }
 0x151   : > { %v878_v12 = vmul.f32 0.1, %v846_v5  ;;  %vm8085_vm12 = vcmp.ne.s32.totalorder %v1147_v9, 15  ;;  %v2060_v25 = vrot.slane %v2058_v32, 3  ;;  %v3730_v48 = vshll.u32 %v8015_v16, 16  ;;  %1488 = vst [vmem:[#allocation3 + $0x258] sm:$0xff] %v911_v7 }
 0x152   : > { %1520 = vst [vmem:[#allocation3 + $0x260] sm:$0xff] %v911_v7  ;;  %v1648_v8 = vsel %vm7993_vm4, %v911_v7, 0.0  ;;  %v8092_v14 = vmax.f32 %v848_v51, %v880_v27  ;;  %v812_v58 = vmul.f32 %v6620_v0, %v7662_v17  ;;  %vm8097_vm13 = vcmp.ne.s32.totalorder %v1133_v36, 15  ;;  %1486 = vst [vmem:[#allocation3 + $0x228] sm:$0xff] %v8081_v26  ;;  %v751_v44 = vpop.f32.mrb[27].mxu0 }
 0x153   : > { %v2063_v9 = vrot.slane %v2061_v57, 4  ;;  %1680 = vst [vmem:[#allocation3 + $0x268] sm:$0xff] %v1648_v8  ;;  %1518 = vst [vmem:[#allocation3 + $0x230] sm:$0xff] %v8081_v26  ;;  %v8106_v11 = vsel %vm8003_vm5, %v8081_v26, 0.0  ;;  %v8108_v4 = vmax.f32 %v846_v5, %v878_v12  ;;  %v810_v29 = vmul.f32 %v7662_v17, %v748_v37  ;;  %v1701_v8 = vld [vmem:[#allocation3 + $0x108] sm:$0xff] }
 0x154   : > { %v8111_v36 = vor.u32 %v2054_v10, %v2051_v38  ;;  %1678 = vst [vmem:[#allocation3 + $0x238] sm:$0xff] %v8106_v11  ;;  %v1457_v32 = vsel %vm8010_vm6, %v8092_v14, 0.0  ;;  %1521 = vst [vmem:[#allocation3 + $0x278] sm:$0xff] %v8092_v14  ;;  %v851_v30 = vadd.f32 %v7679_v23, %v812_v58  ;;  %v813_v33 = vmul.f32 %v6621_v52, %v7662_v17 }
 0x155   : > { %1681 = vst [vmem:[#allocation3 + $0x280] sm:$0xff] %v8092_v14  ;;  %v1800_v24 = vpack.c.bf16 %v8092_v14, %v911_v7  ;;  %1489 = vst [vmem:[#allocation3 + $0x270] sm:$0xff] %v1457_v32  ;;  %v8125_v41 = vsel %vm8022_vm7, %v8108_v4, 0.0  ;;  %v849_v1 = vadd.f32 %v7679_v23, %v810_v29  ;;  %v811_v20 = vmul.f32 %v7662_v17, %v751_v44  ;;  %v1700_v32 = vld [vmem:[#allocation3 + $0xf0] sm:$0xff] }
 0x156   : > { %1519 = vst [vmem:[#allocation3 + $0x248] sm:$0xff] %v8108_v4  ;;  %1679 = vst [vmem:[#allocation3 + $0x250] sm:$0xff] %v8108_v4  ;;  %v1799_v35 = vpack.c.bf16 %v8108_v4, %v8081_v26  ;;  %v883_v45 = vmul.f32 0.1, %v851_v30  ;;  %v852_v62 = vadd.f32 %v7679_v23, %v813_v33  ;;  %v8140_v13 = vsel %vm2030_vm8, %v2038_v47, %v7997_v6  ;;  %v6624_v7 = vpop.f32.mrb[28].mxu0  ;;  %v3656_v33 = vld [vmem:[#allocation3 + $0x130] sm:$0xff] }
 0x157   : > { %1487 = vst [vmem:[#allocation3 + $0x240] sm:$0xff] %v8125_v41  ;;  %v8142_v54 = vpack.c.bf16 %v3654_v55, %v3653_v49  ;;  %v881_v15 = vmul.f32 0.1, %v849_v1  ;;  %v850_v51 = vadd.f32 %v7679_v23, %v811_v20  ;;  %vm8147_vm14 = vcmp.ne.s32.totalorder %v1168_v60, 0  ;;  %v764_v0 = vpop.f32.mrb[29].mxu0 }
 0x158   : > { %6663 = vmatmul.mubr.bf16.gmra.mrb[52].mxu0 %v1799_v35  ;;  %6854 = vmatprep.mubr.bf16.mxu1 %v1799_v35  ;;  %v8154_v34 = vsel %vm2475_vm9, %v8058_v2, %v8078_v42  ;;  %v3728_v40 = vor.u32 %v3726_v21, %v8078_v42  ;;  %v915_v47 = vmax.f32 %v851_v30, %v883_v45  ;;  %v884_v46 = vmul.f32 0.1, %v852_v62  ;;  %v1698_v2 = vld [vmem:[#allocation3 + $0xc0] sm:$0xff]  ;;  %v3655_v30 = vld [vmem:[#allocation3 + $0x118] sm:$0xff] }
 0x159   : > { %vm8159_vm15 = vcmp.ne.s32.totalorder %v1154_v22, 0  ;;  %6666 = vmatprep.mubr.bf16.mxu0 %v1800_v24  ;;  %6855 = vmatmul.mubr.bf16.gmra.mrb[20].mxu1 %v1800_v24  ;;  %v8166_v28 = vsel %vm2030_vm8, %v7997_v6, %v8111_v36  ;;  %v8168_v60 = vor.u32 %v2063_v9, %v2060_v25  ;;  %v8170_v38 = vmax.f32 %v849_v1, %v881_v15  ;;  %v3658_v15 = vld [vmem:[#allocation3 + $0x160] sm:$0xff] }
 0x15a   : > { %v882_v10 = vmul.f32 0.1, %v850_v51  ;;  %vm8174_vm0 = vcmp.ne.s32.totalorder %v1175_v18, 15  ;;  %v3732_v22 = vrot.slane %v3730_v48, 1  ;;  %v3734_v27 = vshrl.u32 %v8015_v16, 16  ;;  %1492 = vst [vmem:[#allocation3 + $0x2b8] sm:$0xff] %v915_v47 }
 0x15b   : > { %1524 = vst [vmem:[#allocation3 + $0x2c0] sm:$0xff] %v915_v47  ;;  %v8181_v6 = vsel %vm8066_vm10, %v915_v47, 0.0  ;;  %v8183_v21 = vmax.f32 %v852_v62, %v884_v46  ;;  %v816_v12 = vmul.f32 %v6624_v7, %v7662_v17  ;;  %vm8188_vm1 = vcmp.ne.s32.totalorder %v1161_v39, 15  ;;  %v1699_v16 = vld [vmem:[#allocation3 + $0xd8] sm:$0xff]  ;;  %1490 = vst [vmem:[#allocation3 + $0x288] sm:$0xff] %v8170_v38  ;;  %v6625_v39 = vpop.f32.mrb[30].mxu0 }
 0x15c   : > { %v3738_v18 = vshll.u32 %v8142_v54, 16  ;;  %1684 = vst [vmem:[#allocation3 + $0x2c8] sm:$0xff] %v8181_v6  ;;  %1522 = vst [vmem:[#allocation3 + $0x290] sm:$0xff] %v8170_v38  ;;  %v8199_v56 = vsel %vm8072_vm11, %v8170_v38, 0.0  ;;  %v8201_v25 = vmax.f32 %v850_v51, %v882_v10  ;;  %v814_v59 = vmul.f32 %v7662_v17, %v764_v0  ;;  %v767_v9 = vpop.f32.mrb[31].mxu0  ;;  %v3657_v62 = vld [vmem:[#allocation3 + $0x148] sm:$0xff] }
 0x15d   : > { %v8204_v48 = vpack.c.bf16 %v1699_v16, %v1698_v2  ;;  %1682 = vst [vmem:[#allocation3 + $0x298] sm:$0xff] %v8199_v56  ;;  %v1461_v58 = vsel %vm8085_vm12, %v8183_v21, 0.0  ;;  %1525 = vst [vmem:[#allocation3 + $0x2d8] sm:$0xff] %v8183_v21  ;;  %v855_v3 = vadd.f32 %v7679_v23, %v816_v12  ;;  %v817_v37 = vmul.f32 %v6625_v39, %v7662_v17  ;;  %v1702_v0 = vld [vmem:[#allocation3 + $0x120] sm:$0xff]  ;;  %v1705_v39 = vld [vmem:[#allocation3 + $0x168] sm:$0xff] }
 0x15e   : > { %1685 = vst [vmem:[#allocation3 + $0x2e0] sm:$0xff] %v8183_v21  ;;  %v1802_v29 = vpack.c.bf16 %v8183_v21, %v915_v47  ;;  %1493 = vst [vmem:[#allocation3 + $0x2d0] sm:$0xff] %v1461_v58  ;;  %v8218_v52 = vsel %vm8097_vm13, %v8201_v25, 0.0  ;;  %v853_v43 = vadd.f32 %v7679_v23, %v814_v59  ;;  %v815_v49 = vmul.f32 %v7662_v17, %v767_v9  ;;  %v1703_v9 = vld [vmem:[#allocation3 + $0x138] sm:$0xff] }
 0x15f   : > { %1523 = vst [vmem:[#allocation3 + $0x2a8] sm:$0xff] %v8201_v25  ;;  %1683 = vst [vmem:[#allocation3 + $0x2b0] sm:$0xff] %v8201_v25  ;;  %v1801_v55 = vpack.c.bf16 %v8201_v25, %v8170_v38  ;;  %v887_v44 = vmul.f32 0.1, %v855_v3  ;;  %v856_v61 = vadd.f32 %v7679_v23, %v817_v37  ;;  %v8231_v24 = vsel %vm2030_vm8, %v8111_v36, %v8168_v60 }
 0x160   : > { %1491 = vst [vmem:[#allocation3 + $0x2a0] sm:$0xff] %v8218_v52  ;;  %v8233_v1 = vpack.c.bf16 %v1701_v8, %v1700_v32  ;;  %v885_v20 = vmul.f32 0.1, %v853_v43  ;;  %v854_v17 = vadd.f32 %v7679_v23, %v815_v49  ;;  %v8237_v35 = vsel %vm2475_vm9, %v3728_v40, %v3732_v22  ;;  %v3660_v8 = vld [vmem:[#allocation3 + $0x190] sm:$0xff] }
 0x161   : > { %6667 = vmatmul.mubr.bf16.gmra.mrb[56].mxu0 %v1801_v55  ;;  %6858 = vmatprep.mubr.bf16.mxu1 %v1801_v55  ;;  %v3736_v45 = vor.u32 %v3734_v27, %v3732_v22  ;;  %v919_v51 = vmax.f32 %v855_v3, %v887_v44  ;;  %v888_v47 = vmul.f32 0.1, %v856_v61  ;;  %v2067_v36 = vshrl.u32 %v8204_v48, 16  ;;  %v1704_v32 = vld [vmem:[#allocation3 + $0x150] sm:$0xff] }
 0x162   : > { %6670 = vmatprep.mubr.bf16.mxu0 %v1802_v29  ;;  %6859 = vmatmul.mubr.bf16.gmra.mrb[24].mxu1 %v1802_v29  ;;  %v8240_v46 = vpack.c.bf16 %v3656_v33, %v3655_v30  ;;  %v8242_v2 = vmax.f32 %v853_v43, %v885_v20  ;;  %v886_v10 = vmul.f32 0.1, %v854_v17  ;;  %v8244_v23 = vrot.slane %v3738_v18, 1  ;;  %v1706_v29 = vld [vmem:[#allocation3 + $0x180] sm:$0xff]  ;;  %v3661_v30 = vld [vmem:[#allocation3 + $0x1a8] sm:$0xff] }
 0x163   : > { %v2070_v7 = vshll.u32 %v8204_v48, 16  ;;  %1496 = vst [vmem:[#allocation3 + $0x318] sm:$0xff] %v919_v51  ;;  %1528 = vst [vmem:[#allocation3 + $0x320] sm:$0xff] %v919_v51  ;;  %v8249_v40 = vsel %vm8147_vm14, %v919_v51, 0.0  ;;  %v8251_v22 = vmax.f32 %v856_v61, %v888_v47  ;;  %v2076_v27 = vshrl.u32 %v8233_v1, 16  ;;  %v3659_v48 = vld [vmem:[#allocation3 + $0x178] sm:$0xff] }
 0x164   : > { %v8254_v12 = vpack.c.bf16 %v3658_v15, %v3657_v62  ;;  %1688 = vst [vmem:[#allocation3 + $0x328] sm:$0xff] %v8249_v40  ;;  %1494 = vst [vmem:[#allocation3 + $0x2e8] sm:$0xff] %v8242_v2  ;;  %v8262_v18 = vsel %vm8159_vm15, %v8242_v2, 0.0  ;;  %v8264_v57 = vmax.f32 %v854_v17, %v886_v10  ;;  %v8268_v16 = vsel %vm2475_vm9, %v3736_v45, %v8244_v23  ;;  %v3662_v33 = vld [vmem:[#allocation3 + $0x1c0] sm:$0xff] }
 0x165   : > { %1526 = vst [vmem:[#allocation3 + $0x2f0] sm:$0xff] %v8242_v2  ;;  %v2079_v59 = vshll.u32 %v8233_v1, 16  ;;  %1686 = vst [vmem:[#allocation3 + $0x2f8] sm:$0xff] %v8262_v18  ;;  %v1465_v58 = vsel %vm8174_vm0, %v8251_v22, 0.0  ;;  %v3388_v5 = vpack.c.bf16 %v8251_v22, %v919_v51  ;;  %v2069_v3 = vrot.slane %v2067_v36, 3 }
 0x166   : > { %1529 = vst [vmem:[#allocation3 + $0x338] sm:$0xff] %v8251_v22  ;;  %1689 = vst [vmem:[#allocation3 + $0x340] sm:$0xff] %v8251_v22  ;;  %v3746_v37 = vshll.u32 %v8240_v46, 16  ;;  %v1463_v43 = vsel %vm8188_vm1, %v8264_v57, 0.0  ;;  %v1803_v50 = vpack.c.bf16 %v8264_v57, %v8242_v2  ;;  %v2072_v49 = vrot.slane %v2070_v7, 4  ;;  %v1709_v7 = vld [vmem:[#allocation3 + $0x1c8] sm:$0xff] }
 0x167   : > { %1497 = vst [vmem:[#allocation3 + $0x330] sm:$0xff] %v1465_v58  ;;  %1527 = vst [vmem:[#allocation3 + $0x308] sm:$0xff] %v8264_v57  ;;  %v1729_v55 = vpack.c.bf16 %v1703_v9, %v1702_v0  ;;  %v2078_v44 = vrot.slane %v2076_v27, 3  ;;  %v3754_v61 = vshll.u32 %v8254_v12, 16  ;;  %v1730_v1 = vpack.c.bf16 %v1705_v39, %v1704_v32 }
 0x168   : > { %1687 = vst [vmem:[#allocation3 + $0x310] sm:$0xff] %v8264_v57  ;;  %1495 = vst [vmem:[#allocation3 + $0x300] sm:$0xff] %v1463_v43  ;;  %v3686_v20 = vpack.c.bf16 %v3660_v8, %v3659_v48  ;;  %6862 = vmatprep.mubr.bf16.mxu1 %v1803_v50  ;;  %v2081_v17 = vrot.slane %v2079_v59, 4  ;;  %v1731_v15 = vpack.c.bf16 %v1707_v53, %v1706_v29  ;;  %v3748_v51 = vrot.slane %v3746_v37, 1 }
 0x169   : > { %6671 = vmatmul.mubr.bf16.gmra.mrb[60].mxu0 %v1803_v50  ;;  %v2085_v45 = vshrl.u32 %v1729_v55, 16  ;;  %v2088_v62 = vshll.u32 %v1729_v55, 16  ;;  %v2094_v47 = vshrl.u32 %v1730_v1, 16  ;;  %v2097_v36 = vshll.u32 %v1730_v1, 16  ;;  %v7397_v1 = vld [vmem:[%s7586_s15 + $0x188] sm:$0xff]  }
 0x16a   : > { %6690 = vmatprep.mubr.bf16.mxu0 %v8140_v13  ;;  %6863 = vmatmul.mubr.bf16.gmra.mrb[28].mxu1 %v3388_v5  ;;  %v8288_v10 = vpack.c.bf16 %v3662_v33, %v3661_v30  ;;  %v2073_v27 = vor.u32 %v2072_v49, %v2069_v3  ;;  %v3762_v48 = vshll.u32 %v3686_v20, 16  ;;  %v3750_v59 = vshrl.u32 %v8240_v46, 16  ;;  %v1708_v13 = vld [vmem:[#allocation3 + $0x1b0] sm:$0xff]  ;;  %v8292_v5 = vld [vmem:[#allocation3 + $0x1d8] sm:$0xff] }
 0x16b   : > { %6882 = vmatprep.mubr.bf16.mxu1 %v8154_v34  ;;  %v2087_v0 = vrot.slane %v2085_v45, 3  ;;  %v2090_v39 = vrot.slane %v2088_v62, 4  ;;  %v3756_v8 = vrot.slane %v3754_v61, 1  ;;  %v2096_v58 = vrot.slane %v2094_v47, 3 }
 0x16c   : > { %v2103_v9 = vshrl.u32 %v1731_v15, 16  ;;  %v2099_v37 = vrot.slane %v2097_v36, 4  ;;  %v3764_v29 = vrot.slane %v3762_v48, 1  ;;  %v2106_v43 = vshll.u32 %v1731_v15, 16  ;;  %v7402_v15 = vld [vmem:[%s7586_s15 + $0x88] sm:$0xff]  }
 0x16d   : > { %v1732_v50 = vpack.c.bf16 %v1709_v7, %v1708_v13  ;;  %v2082_v55 = vor.u32 %v2081_v17, %v2078_v44  ;;  %v3742_v34 = vshrl.u32 %v8142_v54, 16  ;;  %v3752_v3 = vor.u32 %v3750_v59, %v3748_v51  ;;  %v3665_v36 = vld [vmem:[#allocation3 + $0x208] sm:$0xff]  ;;  %v3666_v7 = vld [vmem:[#allocation3 + $0x220] sm:$0xff] }
 0x16e   : > { %v3770_v49 = vshll.u32 %v8288_v10, 16  ;;  %v2091_v32 = vor.u32 %v2090_v39, %v2087_v0  ;;  %v3758_v46 = vshrl.u32 %v8254_v12, 16  ;;  %v3766_v30 = vshrl.u32 %v3686_v20, 16  ;;  %v8308_v20 = vld [vmem:[#allocation3 + $0x210] sm:$0xff]  ;;  %v1710_v59 = vld [vmem:[#allocation3 + $0x1e0] sm:$0xff] }
 0x16f   : > { %v8299_v33 = vpack.c.bf16 %v8037_v31, %v8292_v5  ;;  %v8303_v61 = vsel %vm2030_vm8, %v8168_v60, %v2073_v27  ;;  %v3744_v44 = vor.u32 %v3742_v34, %v8244_v23  ;;  %v2105_v54 = vrot.slane %v2103_v9, 3  ;;  %v7398_v39 = vld [vmem:[%s7586_s15 + $0x190] sm:$0xff]  }
 0x170   : > { %v2108_v53 = vrot.slane %v2106_v43, 4  ;;  %v2100_v17 = vor.u32 %v2099_v37, %v2096_v58  ;;  %v3760_v45 = vor.u32 %v3758_v46, %v3756_v8  ;;  %v3768_v62 = vor.u32 %v3766_v30, %v3764_v29  ;;  %v8348_v43 = vld [vmem:[#allocation3 + $0x268] sm:$0xff]  ;;  %v8355_v34 = vld [vmem:[#allocation3 + $0x270] sm:$0xff] }
 0x171   : > { %6691 = vmatmul.mubr.bf16.vlgmr.msra.gmra.mrb[32].mxu0 %v8166_v28  ;;  %v2112_v12 = vshrl.u32 %v1732_v50, 16  ;;  %v8314_v31 = vsel %vm2030_vm8, %v2073_v27, %v2082_v55  ;;  %v8317_v23 = vsel %vm2475_vm9, %v3744_v44, %v3748_v51  ;;  %v3772_v47 = vrot.slane %v3770_v49, 1  ;;  %v7399_v44 = vld [vmem:[%s7586_s15 + $0x198] sm:$0xff]  }
 0x172   : > { %6694 = vmatprep.mubr.bf16.mxu0 %v8231_v24  ;;  %6883 = vmatmul.mubr.bf16.vlgmr.msra.gmra.mrb[0].mxu1 %v8237_v35  ;;  %v2115_v28 = vshll.u32 %v1732_v50, 16  ;;  %v8322_v0 = vsel %vm2475_vm9, %v3752_v3, %v3756_v8  ;;  %v8325_v24 = vsel %vm2030_vm8, %v2082_v55, %v2091_v32  ;;  %v8328_v27 = vsel %vm2475_vm9, %v3760_v45, %v3764_v29 }
 0x173   : > { %6915 = vmatpush3.bf16.msra.mxu1 %v8030_v63  ;;  %6886 = vmatprep.mubr.bf16.mxu1 %v8268_v16  ;;  %v3778_v51 = vshll.u32 %v8299_v33, 16  ;;  %v8332_v48 = vor.u32 %v2108_v53, %v2105_v54  ;;  %v3774_v63 = vshrl.u32 %v8288_v10, 16  ;;  %v1734_v8 = vpack.c.bf16 %v8081_v26, %v8308_v20  ;;  %v7403_v10 = vld [vmem:[%s7586_s15 + $0x90] sm:$0xff]  }
 0x174   : > { %6916 = vmatprep.subr.bf16.mxu1 %v7397_v1  ;;  %6723 = vmatpush3.bf16.msra.mxu0 %v8033_v19  ;;  %v3690_v58 = vpack.c.bf16 %v8108_v4, %v8106_v11  ;;  %v8341_v9 = vsel %vm2030_vm8, %v2091_v32, %v2100_v17  ;;  %v8344_v13 = vsel %vm2475_vm9, %v3768_v62, %v3772_v47  ;;  %v2114_v37 = vrot.slane %v2112_v12, 3  ;;  %v1711_v19 = vld [vmem:[#allocation3 + $0x1f8] sm:$0xff] }
 0x175   : > { %v8346_v29 = vpack.c.bf16 %v3666_v7, %v3665_v36  ;;  %6724 = vmatprep.subr.bf16.mxu0 %v7402_v15  ;;  %v2117_v26 = vrot.slane %v2115_v28, 4  ;;  %v8351_v50 = vor.u32 %v3774_v63, %v3772_v47  ;;  %v2130_v55 = vshrl.u32 %v1734_v8, 16  ;;  %v8353_v4 = vld [vmem:[#allocation3 + $0x258] sm:$0xff]  ;;  %v7401_v63 = vld [vmem:[%s7586_s15 + $0x1a0] sm:$0xff]  }
 0x176   : > { %v2133_v11 = vshll.u32 %v1734_v8, 16  ;;  %v8357_v3 = vrot.slane %v3778_v51, 1  ;;  %v3782_v49 = vshrl.u32 %v8299_v33, 16  ;;  %v8360_v32 = vpack.c.bf16 %v1711_v19, %v1710_v59  ;;  %v7405_v47 = vld [vmem:[%s7586_s15 + $0x98] sm:$0xff]  }
 0x177   : > { %6917 = vmatpush3.bf16.msra.mxu1 %v7397_v1  ;;  %v3794_v46 = vshll.u32 %v3690_v58, 16  ;;  %v8364_v30 = vsel %vm2030_vm8, %v2100_v17, %v8332_v48  ;;  %v2132_v54 = vrot.slane %v2130_v55, 3  ;;  %v3691_v45 = vpack.c.bf16 %v8092_v14, %v8348_v43  ;;  %v8396_v55 = vld [vmem:[#allocation3 + $0x2b8] sm:$0xff] }
 0x178   : > { %6918 = vmatprep.subr.bf16.mxu1 %v7398_v39  ;;  %v2135_v53 = vrot.slane %v2133_v11, 4  ;;  %6725 = vmatpush3.bf16.msra.mxu0 %v7402_v15  ;;  %v3786_v1 = vshll.u32 %v8346_v29, 16  ;;  %v1735_v12 = vpack.c.bf16 %v8353_v4, %v8125_v41  ;;  %v1736_v17 = vpack.c.bf16 %v8170_v38, %v8355_v34  ;;  %v8398_v11 = vld [vmem:[#allocation3 + $0x2d0] sm:$0xff] }
 0x179   : > { %6695 = vmatmul.mubr.bf16.gmra.mrb[36].mxu0 %v8303_v61  ;;  %v8371_v62 = vrot.slane %v3794_v46, 1  ;;  %6726 = vmatprep.subr.bf16.mxu0 %v7403_v10  ;;  %v8380_v14 = vor.u32 %v2117_v26, %v2114_v37  ;;  %v3798_v15 = vshrl.u32 %v3690_v58, 16  ;;  %v3802_v28 = vshll.u32 %v3691_v45, 16 }
 0x17a   : > { %6698 = vmatprep.mubr.bf16.mxu0 %v8314_v31  ;;  %6887 = vmatmul.mubr.bf16.gmra.mrb[4].mxu1 %v8317_v23  ;;  %v3692_v36 = vpack.c.bf16 %v8201_v25, %v8199_v56  ;;  %v8388_v41 = vsel %vm2475_vm9, %v8351_v50, %v8357_v3  ;;  %v2121_v38 = vshrl.u32 %v8360_v32, 16  ;;  %v2139_v7 = vshrl.u32 %v1735_v12, 16  ;;  %v7406_v25 = vld [vmem:[%s7586_s15 + $0xa0] sm:$0xff]  }
 0x17b   : > { %6890 = vmatprep.mubr.bf16.mxu1 %v8322_v0  ;;  %6919 = vmatpush3.bf16.msra.mxu1 %v7398_v39  ;;  %v2142_v51 = vshll.u32 %v1735_v12, 16  ;;  %v8392_v59 = vor.u32 %v2135_v53, %v2132_v54  ;;  %v3800_v8 = vor.u32 %v3798_v15, %v8371_v62  ;;  %v3804_v58 = vrot.slane %v3802_v28, 1 }
 0x17c   : > { %6920 = vmatprep.subr.bf16.mxu1 %v7399_v44  ;;  %v2148_v56 = vshrl.u32 %v1736_v17, 16  ;;  %6727 = vmatpush3.bf16.msra.mxu0 %v7403_v10  ;;  %v2141_v39 = vrot.slane %v2139_v7, 3  ;;  %v2151_v26 = vshll.u32 %v1736_v17, 16  ;;  %v3806_v19 = vshrl.u32 %v3691_v45, 16  ;;  %v7404_v45 = vld [vmem:[%s7586_s15 + $0x1a8] sm:$0xff]  }
 0x17d   : > { %v2144_v37 = vrot.slane %v2142_v51, 4  ;;  %6728 = vmatprep.subr.bf16.mxu0 %v7405_v47  ;;  %v8401_v46 = vsel %vm2475_vm9, %v3800_v8, %v3804_v58  ;;  %v3810_v53 = vshll.u32 %v3692_v36, 16  ;;  %v3693_v12 = vpack.c.bf16 %v8183_v21, %v8181_v6 }
 0x17e   : > { %v2150_v54 = vrot.slane %v2148_v56, 3  ;;  %v2153_v15 = vrot.slane %v2151_v26, 4  ;;  %v3808_v28 = vor.u32 %v3806_v19, %v3804_v58  ;;  %v3814_v17 = vshrl.u32 %v3692_v36, 16 }
 0x17f   : > { %6921 = vmatpush3.bf16.msra.mxu1 %v7399_v44  ;;  %v2145_v10 = vor.u32 %v2144_v37, %v2141_v39  ;;  %v3812_v7 = vrot.slane %v3810_v53, 1  ;;  %v3818_v51 = vshll.u32 %v3693_v12, 16  ;;  %v1737_v8 = vpack.c.bf16 %v8396_v55, %v8218_v52  ;;  %v7407_v53 = vld [vmem:[%s7586_s15 + $0x1b0] sm:$0xff]  }
 0x180   : > { %6922 = vmatprep.subr.bf16.mxu1 %v7401_v63  ;;  %6729 = vmatpush3.bf16.msra.mxu0 %v7405_v47  ;;  %v1738_v56 = vpack.c.bf16 %v8242_v2, %v8398_v11  ;;  %v2124_v6 = vshll.u32 %v8360_v32, 16  ;;  %v2154_v44 = vor.u32 %v2153_v15, %v2150_v54  ;;  %v3694_v36 = vpack.c.bf16 %v8264_v57, %v8262_v18  ;;  %v7408_v47 = vld [vmem:[%s7586_s15 + $0xa8] sm:$0xff]  }
 0x181   : > { %6699 = vmatmul.mubr.bf16.gmra.mrb[40].mxu0 %v8325_v24  ;;  %v8414_v21 = vsel %vm2030_vm8, %v8392_v59, %v2145_v10  ;;  %6730 = vmatprep.subr.bf16.mxu0 %v7406_v25  ;;  %v8422_v52 = vsel %vm2475_vm9, %v3808_v28, %v3812_v7  ;;  %v3816_v2 = vor.u32 %v3814_v17, %v3812_v7  ;;  %v3820_v58 = vrot.slane %v3818_v51, 1 }
 0x182   : > { %6702 = vmatprep.mubr.bf16.mxu0 %v8341_v9  ;;  %6891 = vmatmul.mubr.bf16.gmra.mrb[8].mxu1 %v8328_v27  ;;  %v2157_v39 = vshrl.u32 %v1737_v8, 16  ;;  %v8426_v37 = vsel %vm2030_vm8, %v2145_v10, %v2154_v44  ;;  %v2160_v18 = vshll.u32 %v1737_v8, 16  ;;  %v2166_v57 = vshrl.u32 %v1738_v56, 16  ;;  %v7409_v10 = vld [vmem:[%s7586_s15 + $0xb0] sm:$0xff]  }
 0x183   : > { %6894 = vmatprep.mubr.bf16.mxu1 %v8344_v13  ;;  %6923 = vmatpush3.bf16.msra.mxu1 %v7401_v63  ;;  %v2169_v26 = vshll.u32 %v1738_v56, 16  ;;  %v8429_v19 = vsel %vm2475_vm9, %v3816_v2, %v3820_v58  ;;  %v3822_v15 = vshrl.u32 %v3693_v12, 16  ;;  %v3826_v28 = vshll.u32 %v3694_v36, 16 }
 0x184   : > { %6924 = vmatprep.subr.bf16.mxu1 %v7404_v45  ;;  %v2159_v54 = vrot.slane %v2157_v39, 3  ;;  %6731 = vmatpush3.bf16.msra.mxu0 %v7406_v25  ;;  %v2162_v17 = vrot.slane %v2160_v18, 4  ;;  %v2168_v7 = vrot.slane %v2166_v57, 3  ;;  %v8434_v63 = vpack.c.bf16 %v8251_v22, %v8249_v40 }
 0x185   : > { %v2171_v51 = vrot.slane %v2169_v26, 4  ;;  %6732 = vmatprep.subr.bf16.mxu0 %v7408_v47  ;;  %v3784_v8 = vor.u32 %v3782_v49, %v8357_v3  ;;  %v3824_v56 = vor.u32 %v3822_v15, %v3820_v58  ;;  %v3828_v2 = vrot.slane %v3826_v28, 1  ;;  %v7410_v49 = vld [vmem:[%s7586_s15 + $0x1b8] sm:$0xff]   ;;  %v8477_v15 = vld [vmem:[%s7586_s15 + $0x1c0] sm:$0xff]  }
 0x186   : > { %v3830_v39 = vshrl.u32 %v3694_v36, 16  ;;  %v3788_v25 = vrot.slane %v3786_v1, 1  ;;  %v2163_v12 = vor.u32 %v2162_v17, %v2159_v54  ;;  %v3834_v40 = vshll.u32 %v8434_v63, 16  ;;  %v2427_v36 = vld [vmem:[#allocation3 + $0x1f0] sm:$0xff]  ;;  %v8480_v28 = vld [vmem:[%s7586_s15 + $0xc0] sm:$0xff]  }
 0x187   : > { %6925 = vmatpush3.bf16.msra.mxu1 %v7404_v45  ;;  %v8442_v18 = vor.u32 %v2171_v51, %v2168_v7  ;;  %v2123_v22 = vrot.slane %v2121_v38, 3  ;;  %v2126_v57 = vrot.slane %v2124_v6, 4  ;;  %v8448_v33 = vsel %vm2475_vm9, %v3824_v56, %v3828_v2  ;;  %v7411_v6 = vld [vmem:[%s7586_s15 + $0xb8] sm:$0xff]   ;;  %v2409_v56 = vld [vmem:[#allocation3 + $0x40] sm:$0xff] }
 0x188   : > { %6926 = vmatprep.subr.bf16.mxu1 %v7407_v53  ;;  %v3832_v3 = vor.u32 %v3830_v39, %v3828_v2  ;;  %6733 = vmatpush3.bf16.msra.mxu0 %v7408_v47  ;;  %v8455_v1 = vsel %vm2030_vm8, %v8332_v48, %v8380_v14  ;;  %v2164_v45 = vsel %vm2030_vm8, %v2154_v44, %v2163_v12  ;;  %v8462_v38 = vrot.slane %v3834_v40, 1  ;;  %v4103_v39 = vld [vmem:[#allocation3 + $0x60] sm:$0x80] }
 0x189   : > { %6703 = vmatmul.mubr.bf16.gmra.mrb[44].mxu0 %v8364_v30  ;;  %v8460_v32 = vsel %vm2030_vm8, %v2163_v12, %v8442_v18  ;;  %6734 = vmatprep.subr.bf16.mxu0 %v7409_v10  ;;  %v3789_v47 = vsel %vm2475_vm9, %v3784_v8, %v3788_v25  ;;  %v3790_v48 = vshrl.u32 %v8346_v29, 16  ;;  %v2450_v58 = vpack.c.bf16 %v2427_v36, %v8292_v5  ;;  %v2408_v8 = vld [vmem:[#allocation3 + $0x28] sm:$0xfe]  ;;  %v3679_v12 = vld [vmem:[#allocation3 + $0x358] sm:$0x1] }
 0x18a   : > { %6706 = vmatprep.mubr.bf16.mxu0 %v8455_v1  ;;  %6895 = vmatmul.mubr.bf16.gmra.mrb[12].mxu1 %v8388_v41  ;;  %v3837_v44 = vsel %vm2475_vm9, %v3832_v3, %v8462_v38  ;;  %v8472_v26 = vor.u32 %v2126_v57, %v2123_v22  ;;  %v7437_v57 = vld [vmem:[#allocation3 + $0x70] sm:$0xff]  ;;  %v3696_v36 = vpack.c.bf16 %v3679_v12, %v3679_v12 }
 0x18b   : > { %6898 = vmatprep.mubr.bf16.mxu1 %v3789_v47  ;;  %6927 = vmatpush3.bf16.msra.mxu1 %v7407_v53  ;;  %v8474_v54 = vor.u32 %v3790_v48, %v3788_v25  ;;  %v2548_v41 = vshll.u32 %v2450_v58, 16  ;;  %v2552_v53 = vshrl.u32 %v2450_v58, 16  ;;  %v7419_v12 = vld [vmem:[%s7586_s15 + $0xd0] sm:$0xff]  }
 0x18c   : > { %6928 = vmatprep.subr.bf16.mxu1 %v7410_v49  ;;  %6735 = vmatpush3.bf16.msra.mxu0 %v7409_v10  ;;  %v8485_v17 = vsel %vm2030_vm8, %v8380_v14, %v8472_v26  ;;  %v2137_v7 = vsel %vm2030_vm8, %v8472_v26, %v8392_v59  ;;  %v1722_v14 = vld [vmem:[#allocation3 + $0x300] sm:$0x7f]  ;;  %v2441_v59 = vpack.c.bf16 %v2409_v56, %v2408_v8 }
 0x18d   : > { %6736 = vmatprep.subr.bf16.mxu0 %v7411_v6  ;;  %v2550_v29 = vrot.slane %v2548_v41, 1  ;;  %v3797_v5 = vsel %vm2475_vm9, %v8474_v54, %v8371_v62  ;;  %v1739_v2 = vpack.c.bf16 %v1722_v14, %v1722_v14  ;;  %v3842_v41 = vshll.u32 %v3696_v36, 16 }
 0x18f   : > { %6929 = vmatpush3.bf16.msra.mxu1 %v7410_v49  ;;  %v8497_v51 = vsel %vm2475_vm9, %v8351_v50, %v2550_v29  ;;  %v2554_v10 = vor.u32 %v2552_v53, %v2550_v29  ;;  %v2410_v50 = vld [vmem:[#allocation3 + $0x58] sm:$0xff]  ;;  %v2178_v40 = vshll.u32 %v1739_v2, 16  ;;  %v2479_v49 = vshll.u32 %v2441_v59, 16 }
 0x190   : > { %6737 = vmatpush3.bf16.msra.mxu0 %v7411_v6  ;;  %6962 = vmatprep.subr.bf16.mxu1 %v8477_v15  ;;  %v2442_v3 = vpack.c.bf16 %v7437_v57, %v2410_v50  ;;  %v7414_v50 = vld [vmem:[%s7586_s15 + $0x1d0] sm:$0xff]  }
 0x191   : > { %6707 = vmatmul.mubr.bf16.gmra.mrb[48].mxu0 %v8485_v17  ;;  %6770 = vmatprep.subr.bf16.mxu0 %v8480_v28  ;;  %v8502_v62 = vsel %vm2475_vm9, %v2554_v10, %v3788_v25  ;;  %v7436_v25 = vld [vmem:[#allocation3 + $0x78] sm:$0xff]  ;;  %v2481_v58 = vrot.slane %v2479_v49, 1 }
 0x192   : > { %6710 = vmatprep.mubr.bf16.mxu0 %v2137_v7  ;;  %6899 = vmatmul.mubr.bf16.gmra.mrb[16].mxu1 %v3797_v5  ;;  %v4136_v22 = vpack.c.bf16 %v7436_v25, %v4103_v39  ;;  %v4122_v39 = vld [vmem:[#allocation3 + $0x228] sm:$0xff]  ;;  %v2888_v25 = vld [vmem:[#allocation3 + $0x258] sm:$0xff] }
 0x193   : > { %6902 = vmatprep.mubr.bf16.mxu1 %v8401_v46  ;;  %v2175_v46 = vshrl.u32 %v1739_v2, 16 }
 0x194   : > { %v4171_v47 = vshrl.u32 %v4136_v22, 16  ;;  %v4174_v48 = vshll.u32 %v4136_v22, 16  ;;  %v4126_v22 = vld [vmem:[#allocation3 + $0x288] sm:$0xff] }
 0x195   : > { %v2177_v6 = vrot.slane %v2175_v46, 3  ;;  %v4123_v46 = vld [vmem:[#allocation3 + $0x240] sm:$0xff] }
 0x196   : > { %v4173_v53 = vrot.slane %v4171_v47, 3  ;;  %v4176_v5 = vrot.slane %v4174_v48, 4  ;;  %v2909_v57 = vpack.c.bf16 %v2888_v25, %v4123_v46  ;;  %v2889_v48 = vld [vmem:[#allocation3 + $0x270] sm:$0xff] }
 0x198   : > { %v4177_v56 = vor.u32 %v4176_v5, %v4173_v53  ;;  %v3034_v47 = vshll.u32 %v2909_v57, 16 }
 0x199   : > { %6711 = vmatmul.mubr.bf16.gmra.mrb[52].mxu0 %v8414_v21  ;;  %v2180_v21 = vrot.slane %v2178_v40, 4  ;;  %v2885_v40 = vld [vmem:[#allocation3 + $0x210] sm:$0xff] }
 0x19a   : > { %6714 = vmatprep.mubr.bf16.mxu0 %v8426_v37  ;;  %6903 = vmatmul.mubr.bf16.gmra.mrb[20].mxu1 %v8422_v52  ;;  %v2477_v37 = vshrl.u32 %v2441_v59, 16  ;;  %v2484_v52 = vshll.u32 %v2442_v3, 16  ;;  %v7418_v59 = vld [vmem:[%s7586_s15 + $0xc8] sm:$0xff]   ;;  %v3036_v5 = vrot.slane %v3034_v47, 4 }
 0x19b   : > { %6906 = vmatprep.mubr.bf16.mxu1 %v8429_v19  ;;  %v3838_v19 = vshrl.u32 %v8434_v63, 16  ;;  %v2181_v29 = vor.u32 %v2180_v21, %v2177_v6  ;;  %v2488_v63 = vshrl.u32 %v2442_v3, 16  ;;  %v8538_v3 = vld [vmem:[#allocation3 + $0x2a0] sm:$0xff]  ;;  %v3031_v21 = vshrl.u32 %v2909_v57, 16  ;;  %v7423_v57 = vld [vmem:[%s7586_s15 + $0x1f0] sm:$0xff]  }
 0x19c   : > { %v2482_v7 = vor.u32 %v2481_v58, %v2477_v37  ;;  %v2486_v10 = vrot.slane %v2484_v52, 1  ;;  %v7417_v37 = vld [vmem:[%s7586_s15 + $0x1e0] sm:$0xff]   ;;  %v2910_v52 = vpack.c.bf16 %v4126_v22, %v2889_v48 }
 0x19d   : > { %v3840_v14 = vor.u32 %v3838_v19, %v8462_v38  ;;  %v2182_v8 = vsel %vm2030_vm8, %v8442_v18, %v2181_v29  ;;  %v7413_v18 = vld [vmem:[%s7586_s15 + $0x1c8] sm:$0xff]   ;;  %v3033_v53 = vrot.slane %v3031_v21, 3  ;;  %v8574_v21 = vld [vmem:[#allocation3 + $0x280] sm:$0xff] }
 0x19e   : > { %v2490_v38 = vor.u32 %v2488_v63, %v2486_v10  ;;  %v8543_v29 = vld [vmem:[#allocation3 + $0x2e8] sm:$0xff] }
 0x1a0   : > { %v2495_v2 = vsel %vm2475_vm9, %v2490_v38, %v8078_v42  ;;  %v8529_v42 = vpack.c.bf16 %v4122_v39, %v8308_v20  ;;  %v7421_v20 = vld [vmem:[%s7586_s15 + $0xd8] sm:$0xff]  }
 0x1a1   : > { %6715 = vmatmul.mubr.bf16.gmra.mrb[56].mxu0 %v2164_v45  ;;  %v3844_v45 = vrot.slane %v3842_v41, 1  ;;  %v2892_v41 = vld [vmem:[#allocation3 + $0x2b8] sm:$0xff] }
 0x1a2   : > { %6718 = vmatprep.mubr.bf16.mxu0 %v8460_v32  ;;  %6907 = vmatmul.mubr.bf16.gmra.mrb[24].mxu1 %v8448_v33  ;;  %v2487_v33 = vsel %vm2475_vm9, %v2482_v7, %v2486_v10  ;;  %v2911_v7 = vpack.c.bf16 %v2892_v41, %v8538_v3  ;;  %v4146_v10 = vpack.c.bf16 %v8353_v4, %v4123_v46  ;;  %v2430_v38 = vld [vmem:[#allocation3 + $0x238] sm:$0xff] }
 0x1a3   : > { %6910 = vmatprep.mubr.bf16.mxu1 %v3837_v44  ;;  %v3845_v32 = vsel %vm2475_vm9, %v3840_v14, %v3844_v45  ;;  %v4186_v44 = vsel %vm2030_vm8, %v4177_v56, %v8168_v60  ;;  %v4131_v60 = vld [vmem:[#allocation3 + $0x300] sm:$0xff]  ;;  %v3040_v45 = vshrl.u32 %v2910_v52, 16  ;;  %v8588_v41 = vpack.c.bf16 %v8574_v21, %v8348_v43 }
 0x1a4   : > { %v3052_v63 = vshll.u32 %v2911_v7, 16  ;;  %v4260_v25 = vshrl.u32 %v4146_v10, 16  ;;  %v4149_v43 = vpack.c.bf16 %v8543_v29, %v8398_v11  ;;  %v2437_v11 = vld [vmem:[#allocation3 + $0x2e0] sm:$0xff] }
 0x1a6   : > { %v3054_v46 = vrot.slane %v3052_v63, 4  ;;  %v2436_v63 = vld [vmem:[#allocation3 + $0x2c8] sm:$0xff] }
 0x1a9   : > { %6719 = vmatmul.mubr.bf16.gmra.mrb[60].mxu0 %v2182_v8  ;;  %v3043_v8 = vshll.u32 %v2910_v52, 16 }
 0x1aa   : > { %6738 = vmatprep.mubr.bf16.mxu0 %v2487_v33  ;;  %6911 = vmatmul.mubr.bf16.gmra.mrb[28].mxu1 %v3845_v32  ;;  %v3037_v33 = vor.u32 %v3036_v5, %v3033_v53  ;;  %v3049_v32 = vshrl.u32 %v2911_v7, 16  ;;  %v4148_v53 = vpack.c.bf16 %v8396_v55, %v8538_v3  ;;  %v7427_v5 = vld [vmem:[%s7586_s15 + $0xf8] sm:$0xff]   ;;  %v8602_v3 = vld [vmem:[%s7586_s15 + $0x200] sm:$0xff]  }
 0x1ab   : > { %6930 = vmatprep.mubr.bf16.mxu1 %v4186_v44  ;;  %v2893_v44 = vld [vmem:[#allocation3 + $0x2d0] sm:$0xff] }
 0x1ac   : > { %v2912_v4 = vpack.c.bf16 %v8543_v29, %v2893_v44  ;;  %v4133_v29 = vld [vmem:[#allocation3 + $0x330] sm:$0xff]  ;;  %v4134_v44 = vld [vmem:[#allocation3 + $0x348] sm:$0xff] }
 0x1b1   : > { %6739 = vmatmul.mubr.bf16.vlgmr.msra.gmra.mrb[32].mxu0 %v2495_v2  ;;  %v2431_v2 = vld [vmem:[#allocation3 + $0x250] sm:$0xff] }
 0x1b2   : > { %6742 = vmatprep.mubr.bf16.mxu0 %v8237_v35  ;;  %6931 = vmatmul.mubr.bf16.vlgmr.msra.gmra.mrb[0].mxu1 %v8303_v61  ;;  %v4132_v35 = vld [vmem:[#allocation3 + $0x318] sm:$0xff] }
 0x1b3   : > { %6963 = vmatpush3.bf16.msra.mxu1 %v8477_v15  ;;  %6934 = vmatprep.mubr.bf16.mxu1 %v8314_v31  ;;  %v4150_v61 = vpack.c.bf16 %v4132_v35, %v4131_v60  ;;  %v7415_v15 = vld [vmem:[%s7586_s15 + $0x1d8] sm:$0xff]   ;;  %v2908_v31 = vpack.c.bf16 %v4122_v39, %v2885_v40  ;;  %v3042_v39 = vrot.slane %v3040_v45, 3  ;;  %v3045_v60 = vrot.slane %v3043_v8, 4 }
 0x1b4   : > { %6964 = vmatprep.subr.bf16.mxu1 %v7413_v18  ;;  %6771 = vmatpush3.bf16.msra.mxu0 %v8480_v28  ;;  %v4251_v28 = vshrl.u32 %v8529_v42, 16  ;;  %v3051_v35 = vrot.slane %v3049_v32, 3  ;;  %v4281_v8 = vshll.u32 %v4148_v53, 16  ;;  %v4290_v32 = vshll.u32 %v4149_v43, 16 }
 0x1b5   : > { %6772 = vmatprep.subr.bf16.mxu0 %v7418_v59  ;;  %v4296_v49 = vshrl.u32 %v4150_v61, 16  ;;  %v3022_v36 = vshrl.u32 %v2908_v31, 16  ;;  %v3025_v6 = vshll.u32 %v2908_v31, 16  ;;  %v3046_v40 = vor.u32 %v3045_v60, %v3042_v39  ;;  %v2438_v39 = vld [vmem:[#allocation3 + $0x2f8] sm:$0xff]  ;;  %v2439_v60 = vld [vmem:[#allocation3 + $0x310] sm:$0xff] }
 0x1b6   : > { %v4253_v19 = vrot.slane %v4251_v28, 3  ;;  %v8562_v31 = vpack.c.bf16 %v2431_v2, %v2430_v38  ;;  %v4263_v28 = vshll.u32 %v4146_v10, 16 }
 0x1b7   : > { %6965 = vmatpush3.bf16.msra.mxu1 %v7413_v18  ;;  %v3024_v58 = vrot.slane %v3022_v36, 3  ;;  %v4298_v14 = vrot.slane %v4296_v49, 3  ;;  %v7420_v18 = vld [vmem:[%s7586_s15 + $0x1e8] sm:$0xff]   ;;  %v7425_v49 = vld [vmem:[%s7586_s15 + $0xf0] sm:$0xff]  }
 0x1b8   : > { %6966 = vmatprep.subr.bf16.mxu1 %v7414_v50  ;;  %6773 = vmatpush3.bf16.msra.mxu0 %v7418_v59  ;;  %v2564_v48 = vshll.u32 %v8562_v31, 16 }
 0x1b9   : > { %6743 = vmatmul.mubr.bf16.gmra.mrb[36].mxu0 %v8268_v16  ;;  %6774 = vmatprep.subr.bf16.mxu0 %v7419_v12  ;;  %v4254_v16 = vshll.u32 %v8529_v42, 16  ;;  %v7424_v42 = vld [vmem:[%s7586_s15 + $0xe8] sm:$0xff]  }
 0x1ba   : > { %6746 = vmatprep.mubr.bf16.mxu0 %v8317_v23  ;;  %6935 = vmatmul.mubr.bf16.gmra.mrb[4].mxu1 %v8325_v24  ;;  %v4299_v23 = vshll.u32 %v4150_v61, 16  ;;  %v3027_v24 = vrot.slane %v3025_v6, 4  ;;  %v4147_v61 = vpack.c.bf16 %v4126_v22, %v8355_v34 }
 0x1bb   : > { %6938 = vmatprep.mubr.bf16.mxu1 %v8341_v9  ;;  %6967 = vmatpush3.bf16.msra.mxu1 %v7414_v50  ;;  %v7422_v9 = vld [vmem:[%s7586_s15 + $0xe0] sm:$0xff]   ;;  %v4256_v50 = vrot.slane %v4254_v16, 4 }
 0x1bc   : > { %6968 = vmatprep.subr.bf16.mxu1 %v7415_v15  ;;  %6775 = vmatpush3.bf16.msra.mxu0 %v7419_v12  ;;  %v8548_v56 = vor.u32 %v3027_v24, %v3024_v58  ;;  %v4301_v59 = vrot.slane %v4299_v23, 4  ;;  %v4269_v6 = vshrl.u32 %v4147_v61, 16  ;;  %v4272_v16 = vshll.u32 %v4147_v61, 16  ;;  %v7426_v58 = vld [vmem:[%s7586_s15 + $0x1f8] sm:$0xff]  }
 0x1bd   : > { %6776 = vmatprep.subr.bf16.mxu0 %v7421_v20  ;;  %v4257_v36 = vor.u32 %v4256_v50, %v4253_v19  ;;  %v4265_v23 = vrot.slane %v4263_v28, 4  ;;  %v2434_v19 = vld [vmem:[#allocation3 + $0x298] sm:$0xff]  ;;  %v2576_v28 = vshrl.u32 %v8588_v41, 16 }
 0x1be   : > { %v8556_v12 = vsel %vm2030_vm8, %v8548_v56, %v3037_v33  ;;  %v4274_v10 = vrot.slane %v4272_v16, 4 }
 0x1bf   : > { %6969 = vmatpush3.bf16.msra.mxu1 %v7415_v15  ;;  %v3058_v15 = vshrl.u32 %v2912_v4, 16  ;;  %v4258_v7 = vsel %vm2030_vm8, %v8472_v26, %v4257_v36 }
 0x1c0   : > { %6970 = vmatprep.subr.bf16.mxu1 %v7417_v37  ;;  %6777 = vmatpush3.bf16.msra.mxu0 %v7421_v20  ;;  %v3055_v20 = vor.u32 %v3054_v46, %v3051_v35  ;;  %v4283_v35 = vrot.slane %v4281_v8, 4  ;;  %v2455_v46 = vpack.c.bf16 %v2437_v11, %v2436_v63 }
 0x1c1   : > { %6747 = vmatmul.mubr.bf16.gmra.mrb[40].mxu0 %v8322_v0  ;;  %6778 = vmatprep.subr.bf16.mxu0 %v7422_v9  ;;  %v3061_v0 = vshll.u32 %v2912_v4, 16  ;;  %v3060_v34 = vrot.slane %v3058_v15, 3  ;;  %v4905_v4 = vld [vmem:[#allocation3 + $0x268] sm:$0xff]  ;;  %v4151_v15 = vpack.c.bf16 %v4134_v44, %v4133_v29 }
 0x1c2   : > { %6750 = vmatprep.mubr.bf16.mxu0 %v8328_v27  ;;  %6939 = vmatmul.mubr.bf16.gmra.mrb[8].mxu1 %v8364_v30  ;;  %v8565_v27 = vor.u32 %v4301_v59, %v4298_v14  ;;  %v8568_v30 = vsel %vm2030_vm8, %v3037_v33, %v3046_v40  ;;  %v2566_v14 = vrot.slane %v2564_v48, 1  ;;  %v4287_v33 = vshrl.u32 %v4149_v43, 16  ;;  %v4135_v48 = vld [vmem:[#allocation3 + $0x360] sm:$0x7f] }
 0x1c3   : > { %6942 = vmatprep.mubr.bf16.mxu1 %v8455_v1  ;;  %6971 = vmatpush3.bf16.msra.mxu1 %v7417_v37  ;;  %v3063_v22 = vrot.slane %v3061_v0, 4  ;;  %v8572_v1 = vsel %vm2030_vm8, %v3046_v40, %v3055_v20  ;;  %v4262_v37 = vrot.slane %v4260_v25, 3  ;;  %v4292_v40 = vrot.slane %v4290_v32, 4 }
 0x1c4   : > { %6972 = vmatprep.subr.bf16.mxu1 %v7420_v18  ;;  %6779 = vmatpush3.bf16.msra.mxu0 %v7422_v9  ;;  %v2435_v9 = vld [vmem:[#allocation3 + $0x2b0] sm:$0xff]  ;;  %v2567_v38 = vsel %vm2475_vm9, %v8474_v54, %v2566_v14  ;;  %v4289_v61 = vrot.slane %v4287_v33, 3  ;;  %v8613_v0 = vpack.c.bf16 %v2439_v60, %v2438_v39  ;;  %v4308_v16 = vshll.u32 %v4151_v15, 16 }
 0x1c5   : > { %6780 = vmatprep.subr.bf16.mxu0 %v7424_v42  ;;  %v3064_v47 = vor.u32 %v3063_v22, %v3060_v34  ;;  %v4266_v45 = vor.u32 %v4265_v23, %v4262_v37  ;;  %v8599_v55 = vpack.c.bf16 %v2435_v9, %v2434_v19  ;;  %v2867_v34 = vld [vmem:[#allocation3 + $0x60] sm:$0xff]  ;;  %v2866_v23 = vld [vmem:[#allocation3 + $0x48] sm:$0xff]  ;;  %v4152_v43 = vpack.c.bf16 %v4135_v48, %v4135_v48 }
 0x1c6   : > { %v2596_v37 = vshll.u32 %v8613_v0, 16  ;;  %v2592_v32 = vshrl.u32 %v2455_v46, 16 }
 0x1c7   : > { %6973 = vmatpush3.bf16.msra.mxu1 %v7420_v18  ;;  %v8579_v24 = vsel %vm2030_vm8, %v3055_v20, %v3064_v47  ;;  %v8583_v52 = vsel %vm2030_vm8, %v3064_v47, %v8565_v27  ;;  %v4267_v2 = vsel %vm2030_vm8, %v4257_v36, %v4266_v45  ;;  %v2568_v18 = vshrl.u32 %v8562_v31, 16  ;;  %v2865_v47 = vld [vmem:[#allocation3 + $0x30] sm:$0x80] }
 0x1c8   : > { %6974 = vmatprep.subr.bf16.mxu1 %v7423_v57  ;;  %6781 = vmatpush3.bf16.msra.mxu0 %v7424_v42  ;;  %v2580_v59 = vshll.u32 %v8599_v55, 16  ;;  %v4928_v31 = vpack.c.bf16 %v8574_v21, %v4905_v4  ;;  %v4293_v36 = vor.u32 %v4292_v40, %v4289_v61  ;;  %v2898_v8 = vpack.c.bf16 %v2866_v23, %v2865_v47  ;;  %v2871_v4 = vld [vmem:[#allocation3 + $0xc0] sm:$0xff] }
 0x1c9   : > { %6751 = vmatmul.mubr.bf16.gmra.mrb[44].mxu0 %v8344_v13  ;;  %6782 = vmatprep.subr.bf16.mxu0 %v7425_v49  ;;  %v4271_v13 = vrot.slane %v4269_v6, 3  ;;  %v2570_v25 = vor.u32 %v2568_v18, %v2566_v14  ;;  %v4305_v6 = vshrl.u32 %v4151_v15, 16  ;;  %v2870_v18 = vld [vmem:[#allocation3 + $0xa8] sm:$0xff] }
 0x1ca   : > { %6754 = vmatprep.mubr.bf16.mxu0 %v8497_v51  ;;  %6943 = vmatmul.mubr.bf16.gmra.mrb[12].mxu1 %v8485_v17  ;;  %v2572_v17 = vshll.u32 %v8588_v41, 16  ;;  %v4278_v51 = vshrl.u32 %v4148_v53, 16  ;;  %v5032_v22 = vshll.u32 %v4928_v31, 16  ;;  %v5036_v21 = vshrl.u32 %v4928_v31, 16  ;;  %v2872_v31 = vld [vmem:[#allocation3 + $0xd8] sm:$0xff] }
 0x1cb   : > { %6946 = vmatprep.mubr.bf16.mxu1 %v4258_v7  ;;  %6975 = vmatpush3.bf16.msra.mxu1 %v7423_v57  ;;  %v4275_v26 = vor.u32 %v4274_v10, %v4271_v13  ;;  %v2588_v57 = vshll.u32 %v2455_v46, 16  ;;  %v2584_v53 = vshrl.u32 %v8599_v55, 16  ;;  %v2440_v10 = vld [vmem:[#allocation3 + $0x328] sm:$0x1]  ;;  %v2598_v55 = vrot.slane %v2596_v37, 1  ;;  %v2869_v46 = vld [vmem:[#allocation3 + $0x90] sm:$0xff] }
 0x1cc   : > { %6976 = vmatprep.subr.bf16.mxu1 %v7426_v58  ;;  %6783 = vmatpush3.bf16.msra.mxu0 %v7425_v49  ;;  %v2574_v50 = vrot.slane %v2572_v17, 1  ;;  %v4280_v42 = vrot.slane %v4278_v51, 3  ;;  %v8618_v19 = vrot.slane %v5032_v22, 1  ;;  %v4307_v17 = vrot.slane %v4305_v6, 3  ;;  %v4580_v6 = vld [vmem:[#allocation3 + $0x98] sm:$0xff] }
 0x1cd   : > { %6784 = vmatprep.subr.bf16.mxu0 %v7427_v5  ;;  %v4276_v54 = vsel %vm2030_vm8, %v4266_v45, %v4275_v26  ;;  %v2590_v13 = vrot.slane %v2588_v57, 1  ;;  %v4310_v51 = vrot.slane %v4308_v16, 4  ;;  %v2933_v39 = vshrl.u32 %v2898_v8, 16 }
 0x1ce   : > { %v4284_v20 = vor.u32 %v4283_v35, %v4280_v42  ;;  %v2578_v49 = vor.u32 %v2576_v28, %v2574_v50  ;;  %v2575_v41 = vsel %vm2475_vm9, %v2570_v25, %v2574_v50  ;;  %v5038_v14 = vor.u32 %v5036_v21, %v8618_v19 }
 0x1cf   : > { %6977 = vmatpush3.bf16.msra.mxu1 %v7426_v58  ;;  %v2868_v58 = vld [vmem:[#allocation3 + $0x78] sm:$0xff]  ;;  %v2594_v44 = vor.u32 %v2592_v32, %v2590_v13  ;;  %v2936_v60 = vshll.u32 %v2898_v8, 16  ;;  %v2600_v35 = vshrl.u32 %v8613_v0, 16  ;;  %v2900_v15 = vpack.c.bf16 %v2870_v18, %v2869_v46  ;;  %v2878_v18 = vld [vmem:[#allocation3 + $0x168] sm:$0xff]  ;;  %v2877_v46 = vld [vmem:[#allocation3 + $0x150] sm:$0xff] }
 0x1d0   : > { %6785 = vmatpush3.bf16.msra.mxu0 %v7427_v5  ;;  %7010 = vmatprep.subr.bf16.mxu1 %v8602_v3  ;;  %v2899_v5 = vpack.c.bf16 %v2868_v58, %v2867_v34  ;;  %v4285_v7 = vsel %vm2030_vm8, %v4275_v26, %v4284_v20  ;;  %v4294_v45 = vsel %vm2030_vm8, %v4284_v20, %v4293_v36  ;;  %v2935_v57 = vrot.slane %v2933_v39, 3  ;;  %v2874_v58 = vld [vmem:[#allocation3 + $0x108] sm:$0xff]  ;;  %v4581_v39 = vld [vmem:[#allocation3 + $0xb0] sm:$0xff] }
 0x1d1   : > { %6755 = vmatmul.mubr.bf16.gmra.mrb[48].mxu0 %v8502_v62  ;;  %v2582_v62 = vrot.slane %v2580_v59, 1  ;;  %v2457_v26 = vpack.c.bf16 %v2440_v10, %v2440_v10  ;;  %v4311_v59 = vor.u32 %v4310_v51, %v4307_v17  ;;  %v8633_v42 = vsel %vm2475_vm9, %v2594_v44, %v2598_v55 }
 0x1d2   : > { %6758 = vmatprep.mubr.bf16.mxu0 %v2567_v38  ;;  %6947 = vmatmul.mubr.bf16.gmra.mrb[16].mxu1 %v4267_v2  ;;  %v2941_v11 = vshrl.u32 %v2899_v5, 16  ;;  %v2944_v29 = vshll.u32 %v2899_v5, 16  ;;  %v4314_v38 = vshrl.u32 %v4152_v43, 16  ;;  %v4317_v2 = vshll.u32 %v4152_v43, 16 }
 0x1d3   : > { %6950 = vmatprep.mubr.bf16.mxu1 %v4276_v54  ;;  %v2583_v9 = vsel %vm2475_vm9, %v2578_v49, %v2582_v62  ;;  %v2586_v33 = vor.u32 %v2584_v53, %v2582_v62  ;;  %v8627_v63 = vsel %vm2475_vm9, %v5038_v14, %v2582_v62  ;;  %v2604_v54 = vshll.u32 %v2457_v26, 16  ;;  %v4584_v26 = vld [vmem:[#allocation3 + $0xf8] sm:$0xff] }
 0x1d4   : > { %v2943_v61 = vrot.slane %v2941_v11, 3  ;;  %v2946_v40 = vrot.slane %v2944_v29, 4  ;;  %v4303_v25 = vsel %vm2030_vm8, %v4293_v36, %v8565_v27  ;;  %v4316_v28 = vrot.slane %v4314_v38, 3 }
 0x1d5   : > { %v8630_v50 = vsel %vm2475_vm9, %v2586_v33, %v2590_v13  ;;  %v4319_v62 = vrot.slane %v4317_v2, 4  ;;  %v2901_v20 = vpack.c.bf16 %v2872_v31, %v2871_v4  ;;  %v4312_v0 = vsel %vm2030_vm8, %v8565_v27, %v4311_v59  ;;  %v2879_v4 = vld [vmem:[#allocation3 + $0x180] sm:$0xff] }
 0x1d6   : > { %v2938_v34 = vrot.slane %v2936_v60, 4  ;;  %v8642_v22 = vor.u32 %v2600_v35, %v2598_v55  ;;  %v2947_v49 = vor.u32 %v2946_v40, %v2943_v61  ;;  %v2950_v16 = vshrl.u32 %v2900_v15, 16  ;;  %v4582_v55 = vld [vmem:[#allocation3 + $0xc8] sm:$0xff]  ;;  %v4583_v60 = vld [vmem:[#allocation3 + $0xe0] sm:$0xff] }
 0x1d7   : > { %v2953_v47 = vshll.u32 %v2900_v15, 16  ;;  %v2606_v48 = vrot.slane %v2604_v54, 1  ;;  %v4320_v36 = vor.u32 %v4319_v62, %v4316_v28  ;;  %v2959_v37 = vshrl.u32 %v2901_v20, 16  ;;  %v7429_v15 = vld [vmem:[%s7586_s15 + $0x208] sm:$0xff]  }
 0x1d8   : > { %v2962_v23 = vshll.u32 %v2901_v20, 16  ;;  %v2939_v21 = vor.u32 %v2938_v34, %v2935_v57  ;;  %v2952_v10 = vrot.slane %v2950_v16, 3  ;;  %v4613_v35 = vpack.c.bf16 %v4584_v26, %v4583_v60  ;;  %v4586_v34 = vld [vmem:[#allocation3 + $0x128] sm:$0xff]  ;;  %v7432_v26 = vld [vmem:[%s7586_s15 + $0x220] sm:$0xff]  }
 0x1d9   : > { %6759 = vmatmul.mubr.bf16.gmra.mrb[52].mxu0 %v2575_v41  ;;  %v4579_v41 = vld [vmem:[#allocation3 + $0x80] sm:$0xff]  ;;  %v2607_v53 = vsel %vm2475_vm9, %v8642_v22, %v2606_v48  ;;  %v2955_v43 = vrot.slane %v2953_v47, 4  ;;  %v4321_v17 = vsel %vm2030_vm8, %v4311_v59, %v4320_v36  ;;  %v2961_v51 = vrot.slane %v2959_v37, 3  ;;  %v7430_v47 = vld [vmem:[%s7586_s15 + $0x210] sm:$0xff]  }
 0x1da   : > { %6762 = vmatprep.mubr.bf16.mxu0 %v2583_v9  ;;  %6951 = vmatmul.mubr.bf16.gmra.mrb[20].mxu1 %v4285_v7  ;;  %v2875_v9 = vld [vmem:[#allocation3 + $0x120] sm:$0xff]  ;;  %v4611_v5 = vpack.c.bf16 %v4580_v6, %v4579_v41  ;;  %v2873_v7 = vld [vmem:[#allocation3 + $0xf0] sm:$0xff]  ;;  %v2948_v13 = vsel %vm2030_vm8, %v2939_v21, %v2947_v49  ;;  %v2964_v8 = vrot.slane %v2962_v23, 4  ;;  %v4612_v59 = vpack.c.bf16 %v4582_v55, %v4581_v39  ;;  %v2882_v23 = vld [vmem:[#allocation3 + $0x1c8] sm:$0xff] }
 0x1db   : > { %6954 = vmatprep.mubr.bf16.mxu1 %v4294_v45  ;;  %v2902_v14 = vpack.c.bf16 %v2874_v58, %v2873_v7  ;;  %v2876_v45 = vld [vmem:[#allocation3 + $0x138] sm:$0xff]  ;;  %v2956_v32 = vor.u32 %v2955_v43, %v2952_v10  ;;  %v2904_v31 = vpack.c.bf16 %v2878_v18, %v2877_v46  ;;  %v4585_v58 = vld [vmem:[#allocation3 + $0x110] sm:$0xff]  ;;  %v4587_v21 = vld [vmem:[#allocation3 + $0x140] sm:$0xff] }
 0x1dc   : > { %v2903_v33 = vpack.c.bf16 %v2876_v45, %v2875_v9  ;;  %v2965_v44 = vor.u32 %v2964_v8, %v2961_v51  ;;  %v2883_v41 = vld [vmem:[#allocation3 + $0x1e0] sm:$0xff]  ;;  %v4614_v9 = vpack.c.bf16 %v4586_v34, %v4585_v58  ;;  %v7431_v43 = vld [vmem:[%s7586_s15 + $0x218] sm:$0xff]   ;;  %v4589_v18 = vld [vmem:[#allocation3 + $0x170] sm:$0xff] }
 0x1dd   : > { %v2968_v11 = vshrl.u32 %v2902_v14, 16  ;;  %v2971_v29 = vshll.u32 %v2902_v14, 16  ;;  %v2957_v54 = vsel %vm2030_vm8, %v2947_v49, %v2956_v32  ;;  %v4588_v49 = vld [vmem:[#allocation3 + $0x158] sm:$0xff]  ;;  %v2986_v6 = vshrl.u32 %v2904_v31, 16  ;;  %v7433_v46 = vld [vmem:[%s7586_s15 + $0x228] sm:$0xff]  }
 0x1de   : > { %v2977_v38 = vshrl.u32 %v2903_v33, 16  ;;  %v2980_v2 = vshll.u32 %v2903_v33, 16  ;;  %v2966_v28 = vsel %vm2030_vm8, %v2956_v32, %v2965_v44  ;;  %v2989_v16 = vshll.u32 %v2904_v31, 16  ;;  %v2884_v14 = vld [vmem:[#allocation3 + $0x1f8] sm:$0xff] }
 0x1df   : > { %v2970_v61 = vrot.slane %v2968_v11, 3  ;;  %v2973_v40 = vrot.slane %v2971_v29, 4  ;;  %v2988_v7 = vrot.slane %v2986_v6, 3  ;;  %v2907_v8 = vpack.c.bf16 %v2884_v14, %v2883_v41  ;;  %v4590_v29 = vld [vmem:[#allocation3 + $0x188] sm:$0xff]  ;;  %v7435_v6 = vld [vmem:[%s7586_s15 + $0x238] sm:$0xff]  }
 0x1e0   : > { %v2979_v62 = vrot.slane %v2977_v38, 3  ;;  %v2982_v20 = vrot.slane %v2980_v2, 4  ;;  %v4592_v2 = vld [vmem:[#allocation3 + $0x1b8] sm:$0xff]  ;;  %v4616_v60 = vpack.c.bf16 %v4590_v29, %v4589_v18  ;;  %v4885_v14 = vld [vmem:[#allocation3 + $0x88] sm:$0xfe]  ;;  %v4607_v29 = vld [vmem:[#allocation3 + $0x320] sm:$0xff] }
 0x1e1   : > { %6763 = vmatmul.mubr.bf16.gmra.mrb[56].mxu0 %v8630_v50  ;;  %v2974_v57 = vor.u32 %v2973_v40, %v2970_v61  ;;  %v3016_v38 = vshll.u32 %v2907_v8, 16  ;;  %v4890_v18 = vld [vmem:[#allocation3 + $0x100] sm:$0xff] }
 0x1e2   : > { %6766 = vmatprep.mubr.bf16.mxu0 %v8633_v42  ;;  %6955 = vmatmul.mubr.bf16.gmra.mrb[24].mxu1 %v4303_v25  ;;  %v2880_v25 = vld [vmem:[#allocation3 + $0x198] sm:$0xff]  ;;  %v2983_v48 = vor.u32 %v2982_v20, %v2979_v62  ;;  %v4594_v62 = vld [vmem:[#allocation3 + $0x1e8] sm:$0xff] }
 0x1e3   : > { %6958 = vmatprep.mubr.bf16.mxu1 %v4312_v0  ;;  %v2905_v0 = vpack.c.bf16 %v2880_v25, %v2879_v4  ;;  %v4591_v4 = vld [vmem:[#allocation3 + $0x1a0] sm:$0xff]  ;;  %v7434_v25 = vld [vmem:[%s7586_s15 + $0x230] sm:$0xff]   ;;  %v4596_v20 = vld [vmem:[#allocation3 + $0x218] sm:$0xff] }
 0x1e4   : > { %v2984_v45 = vsel %vm2030_vm8, %v2974_v57, %v2983_v48  ;;  %v4617_v61 = vpack.c.bf16 %v4592_v2, %v4591_v4  ;;  %v4609_v4 = vld [vmem:[#allocation3 + $0x350] sm:$0xff] }
 0x1e5   : > { %v2995_v36 = vshrl.u32 %v2905_v0, 16  ;;  %v2998_v37 = vshll.u32 %v2905_v0, 16  ;;  %v4593_v0 = vld [vmem:[#allocation3 + $0x1d0] sm:$0xff] }
 0x1e6   : > { %v4618_v34 = vpack.c.bf16 %v4594_v62, %v4593_v0 }
 0x1e7   : > { %v3000_v51 = vrot.slane %v2998_v37, 4  ;;  %v4597_v37 = vld [vmem:[#allocation3 + $0x230] sm:$0xff] }
 0x1e9   : > { %6767 = vmatmul.mubr.bf16.gmra.mrb[60].mxu0 %v2607_v53  ;;  %v4615_v53 = vpack.c.bf16 %v4588_v49, %v4587_v21  ;;  %v4595_v49 = vld [vmem:[#allocation3 + $0x200] sm:$0xff] }
 0x1ea   : > { %6786 = vmatprep.mubr.bf16.mxu0 %v2948_v13  ;;  %6959 = vmatmul.mubr.bf16.gmra.mrb[28].mxu1 %v4321_v17  ;;  %v2991_v13 = vrot.slane %v2989_v16, 4  ;;  %v2997_v17 = vrot.slane %v2995_v36, 3  ;;  %v4600_v36 = vld [vmem:[#allocation3 + $0x278] sm:$0xff]  ;;  %v4599_v21 = vld [vmem:[#allocation3 + $0x260] sm:$0xff] }
 0x1eb   : > { %6978 = vmatprep.mubr.bf16.mxu1 %v4611_v5  ;;  %v2975_v5 = vsel %vm2030_vm8, %v2965_v44, %v2974_v57  ;;  %v3013_v44 = vshrl.u32 %v2907_v8, 16  ;;  %v4621_v41 = vpack.c.bf16 %v4600_v36, %v4599_v21 }
 0x1ec   : > { %v2992_v33 = vor.u32 %v2991_v13, %v2988_v7  ;;  %v3001_v11 = vor.u32 %v3000_v51, %v2997_v17  ;;  %v4603_v13 = vld [vmem:[#allocation3 + $0x2c0] sm:$0xff] }
 0x1ed   : > { %v3015_v40 = vrot.slane %v3013_v44, 3 }
 0x1ee   : > { %v2993_v39 = vsel %vm2030_vm8, %v2983_v48, %v2992_v33  ;;  %v4598_v48 = vld [vmem:[#allocation3 + $0x248] sm:$0xff] }
 0x1ef   : > { %v4620_v58 = vpack.c.bf16 %v4598_v48, %v4597_v37 }
 0x1f1   : > { %6787 = vmatmul.mubr.bf16.vlgmr.msra.gmra.mrb[32].mxu0 %v2957_v54  ;;  %v3002_v54 = vsel %vm2030_vm8, %v2992_v33, %v3001_v11  ;;  %v4606_v33 = vld [vmem:[#allocation3 + $0x308] sm:$0xff] }
 0x1f2   : > { %6790 = vmatprep.mubr.bf16.mxu0 %v2966_v28  ;;  %6979 = vmatmul.mubr.bf16.vlgmr.msra.gmra.mrb[0].mxu1 %v4612_v59 }
 0x1f3   : > { %7011 = vmatpush3.bf16.msra.mxu1 %v8602_v3  ;;  %6982 = vmatprep.mubr.bf16.mxu1 %v4613_v35  ;;  %v2881_v3 = vld [vmem:[#allocation3 + $0x1b0] sm:$0xff] }
 0x1f4   : > { %7012 = vmatprep.subr.bf16.mxu1 %v7429_v15  ;;  %v2906_v10 = vpack.c.bf16 %v2882_v23, %v2881_v3  ;;  %v4604_v3 = vld [vmem:[#allocation3 + $0x2d8] sm:$0xff] }
 0x1f6   : > { %v3004_v32 = vshrl.u32 %v2906_v10, 16  ;;  %v3007_v55 = vshll.u32 %v2906_v10, 16 }
 0x1f7   : > { %7013 = vmatpush3.bf16.msra.mxu1 %v7429_v15  ;;  %v3018_v15 = vrot.slane %v3016_v38, 4 }
 0x1f8   : > { %7014 = vmatprep.subr.bf16.mxu1 %v7430_v47  ;;  %v3006_v59 = vrot.slane %v3004_v32, 3  ;;  %v3009_v35 = vrot.slane %v3007_v55, 4  ;;  %v4608_v32 = vld [vmem:[#allocation3 + $0x338] sm:$0xff] }
 0x1f9   : > { %6791 = vmatmul.mubr.bf16.gmra.mrb[36].mxu0 %v2975_v5  ;;  %v3019_v28 = vor.u32 %v3018_v15, %v3015_v40  ;;  %v4601_v5 = vld [vmem:[#allocation3 + $0x290] sm:$0xff]  ;;  %v4625_v2 = vpack.c.bf16 %v4608_v32, %v4607_v29  ;;  %v4902_v32 = vld [vmem:[#allocation3 + $0x220] sm:$0xff]  ;;  %v4903_v29 = vld [vmem:[#allocation3 + $0x238] sm:$0xff] }
 0x1fa   : > { %6794 = vmatprep.mubr.bf16.mxu0 %v2984_v45  ;;  %6983 = vmatmul.mubr.bf16.gmra.mrb[4].mxu1 %v4614_v9  ;;  %v3010_v31 = vor.u32 %v3009_v35, %v3006_v59  ;;  %v4602_v9 = vld [vmem:[#allocation3 + $0x2a8] sm:$0xff]  ;;  %v4887_v45 = vld [vmem:[#allocation3 + $0xb8] sm:$0xff]  ;;  %v4892_v35 = vld [vmem:[#allocation3 + $0x130] sm:$0xff] }
 0x1fb   : > { %6986 = vmatprep.mubr.bf16.mxu1 %v4615_v53  ;;  %7015 = vmatpush3.bf16.msra.mxu1 %v7430_v47  ;;  %v4619_v47 = vpack.c.bf16 %v4596_v20, %v4595_v49  ;;  %v3029_v23 = vsel %vm2030_vm8, %v3019_v28, %v8548_v56  ;;  %v2897_v53 = vld [vmem:[#allocation3 + $0x330] sm:$0x7f]  ;;  %v4622_v7 = vpack.c.bf16 %v4602_v9, %v4601_v5  ;;  %v4886_v56 = vld [vmem:[#allocation3 + $0xa0] sm:$0xff]  ;;  %v4610_v59 = vld [vmem:[#allocation3 + $0x368] sm:$0xff] }
 0x1fc   : > { %7016 = vmatprep.subr.bf16.mxu1 %v7431_v43  ;;  %v3011_v57 = vsel %vm2030_vm8, %v3001_v11, %v3010_v31  ;;  %v3020_v16 = vsel %vm2030_vm8, %v3010_v31, %v3019_v28  ;;  %v2914_v10 = vpack.c.bf16 %v2897_v53, %v2897_v53  ;;  %v4918_v8 = vpack.c.bf16 %v4886_v56, %v4885_v14  ;;  %v4894_v20 = vld [vmem:[#allocation3 + $0x160] sm:$0xff]  ;;  %v4895_v49 = vld [vmem:[#allocation3 + $0x178] sm:$0xff] }
 0x1fd   : > { %v4626_v40 = vpack.c.bf16 %v4610_v59, %v4609_v4  ;;  %v4898_v9 = vld [vmem:[#allocation3 + $0x1c0] sm:$0xff] }
 0x1fe   : > { %v3076_v17 = vshrl.u32 %v2914_v10, 16  ;;  %v3079_v51 = vshll.u32 %v2914_v10, 16  ;;  %v4955_v38 = vshll.u32 %v4918_v8, 16  ;;  %v4953_v15 = vshrl.u32 %v4918_v8, 16 }
 0x1ff   : > { %7017 = vmatpush3.bf16.msra.mxu1 %v7431_v43  ;;  %v4623_v43 = vpack.c.bf16 %v4604_v3, %v4603_v13  ;;  %v4900_v13 = vld [vmem:[#allocation3 + $0x1f0] sm:$0xff] }
 0x200   : > { %7018 = vmatprep.subr.bf16.mxu1 %v7432_v26  ;;  %v3078_v44 = vrot.slane %v3076_v17, 3 }
 0x201   : > { %6795 = vmatmul.mubr.bf16.gmra.mrb[40].mxu0 %v2993_v39 }
 0x202   : > { %6798 = vmatprep.mubr.bf16.mxu0 %v3002_v54  ;;  %6987 = vmatmul.mubr.bf16.gmra.mrb[8].mxu1 %v4616_v60  ;;  %v4891_v60 = vld [vmem:[#allocation3 + $0x118] sm:$0xff]  ;;  %v4957_v54 = vrot.slane %v4955_v38, 1 }
 0x203   : > { %6990 = vmatprep.mubr.bf16.mxu1 %v4617_v61  ;;  %7019 = vmatpush3.bf16.msra.mxu1 %v7432_v26  ;;  %v4605_v26 = vld [vmem:[#allocation3 + $0x2f0] sm:$0xff] }
 0x204   : > { %7020 = vmatprep.subr.bf16.mxu1 %v7433_v46  ;;  %v4624_v11 = vpack.c.bf16 %v4606_v33, %v4605_v26  ;;  %v4958_v28 = vor.u32 %v4957_v54, %v4953_v15  ;;  %v4901_v33 = vld [vmem:[#allocation3 + $0x208] sm:$0xff] }
 0x205   : > { %v4926_v38 = vpack.c.bf16 %v4902_v32, %v4901_v33 }
 0x207   : > { %7021 = vmatpush3.bf16.msra.mxu1 %v7433_v46  ;;  %v5016_v4 = vshll.u32 %v4926_v38, 16  ;;  %v5020_v15 = vshrl.u32 %v4926_v38, 16 }
 0x208   : > { %7022 = vmatprep.subr.bf16.mxu1 %v7434_v25 }
 0x209   : > { %6799 = vmatmul.mubr.bf16.gmra.mrb[44].mxu0 %v3011_v57 }
 0x20a   : > { %6802 = vmatprep.mubr.bf16.mxu0 %v3020_v16  ;;  %6991 = vmatmul.mubr.bf16.gmra.mrb[12].mxu1 %v4618_v34 }
 0x20b   : > { %6994 = vmatprep.mubr.bf16.mxu1 %v4619_v47  ;;  %7023 = vmatpush3.bf16.msra.mxu1 %v7434_v25  ;;  %v4921_v25 = vpack.c.bf16 %v4892_v35, %v4891_v60 }
 0x20c   : > { %7024 = vmatprep.subr.bf16.mxu1 %v7435_v6 }
 0x20d   : > { %v4976_v57 = vshll.u32 %v4921_v25, 16  ;;  %v4980_v5 = vshrl.u32 %v4921_v25, 16 }
 0x20f   : > { %7025 = vmatpush3.bf16.msra.mxu1 %v7435_v6  ;;  %v4896_v6 = vld [vmem:[#allocation3 + $0x190] sm:$0xff]  ;;  %v4978_v37 = vrot.slane %v4976_v57, 1 }
 0x211   : > { %6803 = vmatmul.mubr.bf16.gmra.mrb[48].mxu0 %v3029_v23  ;;  %v4923_v23 = vpack.c.bf16 %v4896_v6, %v4895_v49  ;;  %v4982_v14 = vor.u32 %v4980_v5, %v4978_v37  ;;  %v4915_v49 = vld [vmem:[#allocation3 + $0x358] sm:$0xff]  ;;  %v4916_v6 = vld [vmem:[#allocation3 + $0x370] sm:$0xff] }
 0x212   : > { %6806 = vmatprep.mubr.bf16.mxu0 %v8556_v12  ;;  %6995 = vmatmul.mubr.bf16.gmra.mrb[16].mxu1 %v4620_v58  ;;  %v4888_v12 = vld [vmem:[#allocation3 + $0xd0] sm:$0xff] }
 0x213   : > { %6998 = vmatprep.mubr.bf16.mxu1 %v4621_v41  ;;  %v4919_v55 = vpack.c.bf16 %v4888_v12, %v4887_v45  ;;  %v4897_v41 = vld [vmem:[#allocation3 + $0x1a8] sm:$0xff]  ;;  %v4992_v3 = vshll.u32 %v4923_v23, 16 }
 0x215   : > { %v4960_v39 = vshll.u32 %v4919_v55, 16  ;;  %v4964_v34 = vshrl.u32 %v4919_v55, 16  ;;  %v4994_v45 = vrot.slane %v4992_v3, 1 }
 0x217   : > { %v4962_v31 = vrot.slane %v4960_v39, 1 }
 0x219   : > { %6807 = vmatmul.mubr.bf16.gmra.mrb[52].mxu0 %v8568_v30  ;;  %v3081_v30 = vrot.slane %v3079_v51, 4  ;;  %v4963_v0 = vsel %vm2475_vm9, %v4958_v28, %v4962_v31  ;;  %v4966_v48 = vor.u32 %v4964_v34, %v4962_v31 }
 0x21a   : > { %6810 = vmatprep.mubr.bf16.mxu0 %v8572_v1  ;;  %6999 = vmatmul.mubr.bf16.gmra.mrb[20].mxu1 %v4622_v7  ;;  %v4889_v1 = vld [vmem:[#allocation3 + $0xe8] sm:$0xff]  ;;  %v4899_v7 = vld [vmem:[#allocation3 + $0x1d8] sm:$0xff] }
 0x21b   : > { %7002 = vmatprep.mubr.bf16.mxu1 %v4623_v43  ;;  %v3082_v46 = vor.u32 %v3081_v30, %v3078_v44  ;;  %v4920_v61 = vpack.c.bf16 %v4890_v18, %v4889_v1  ;;  %v4924_v43 = vpack.c.bf16 %v4898_v9, %v4897_v41  ;;  %v4925_v12 = vpack.c.bf16 %v4900_v13, %v4899_v7  ;;  %v4904_v44 = vld [vmem:[#allocation3 + $0x250] sm:$0xff] }
 0x21c   : > { %v4927_v39 = vpack.c.bf16 %v4904_v44, %v4903_v29 }
 0x21d   : > { %v4968_v62 = vshll.u32 %v4920_v61, 16  ;;  %v4972_v36 = vshrl.u32 %v4920_v61, 16  ;;  %v5000_v51 = vshll.u32 %v4924_v43, 16  ;;  %v5008_v26 = vshll.u32 %v4925_v12, 16 }
 0x21e   : > { %v5004_v1 = vshrl.u32 %v4924_v43, 16  ;;  %v5012_v54 = vshrl.u32 %v4925_v12, 16  ;;  %v5018_v61 = vrot.slane %v5016_v4, 1 }
 0x21f   : > { %v4970_v16 = vrot.slane %v4968_v62, 1  ;;  %v5002_v30 = vrot.slane %v5000_v51, 1  ;;  %v5010_v18 = vrot.slane %v5008_v26, 1  ;;  %v5028_v62 = vshrl.u32 %v4927_v39, 16 }
 0x220   : > { %v5022_v25 = vor.u32 %v5020_v15, %v5018_v61 }
 0x221   : > { %6811 = vmatmul.mubr.bf16.gmra.mrb[56].mxu0 %v8579_v24  ;;  %v3083_v24 = vsel %vm2030_vm8, %v8565_v27, %v3082_v46  ;;  %v4974_v27 = vor.u32 %v4972_v36, %v4970_v16  ;;  %v4971_v21 = vsel %vm2475_vm9, %v4966_v48, %v4970_v16  ;;  %v5006_v60 = vor.u32 %v5004_v1, %v5002_v30  ;;  %v4917_v48 = vld [vmem:[#allocation3 + $0x388] sm:$0x1] }
 0x222   : > { %6814 = vmatprep.mubr.bf16.mxu0 %v8583_v52  ;;  %7003 = vmatmul.mubr.bf16.gmra.mrb[24].mxu1 %v4624_v11  ;;  %v4893_v52 = vld [vmem:[#allocation3 + $0x148] sm:$0xff]  ;;  %v4996_v11 = vshrl.u32 %v4923_v23, 16  ;;  %v5024_v46 = vshll.u32 %v4927_v39, 16  ;;  %v4934_v23 = vpack.c.bf16 %v4917_v48, %v4917_v48  ;;  %v5485_v48 = vld [vmem:[#allocation2 + $0x10] sm:$0xff] }
 0x223   : > { %7006 = vmatprep.mubr.bf16.mxu1 %v4625_v2  ;;  %v4922_v47 = vpack.c.bf16 %v4894_v20, %v4893_v52  ;;  %v4979_v53 = vsel %vm2475_vm9, %v4974_v27, %v4978_v37  ;;  %v5011_v35 = vsel %vm2475_vm9, %v5006_v60, %v5010_v18  ;;  %v4913_v20 = vld [vmem:[#allocation3 + $0x328] sm:$0xff] }
 0x224   : > { %v4998_v2 = vor.u32 %v4996_v11, %v4994_v45  ;;  %v5026_v31 = vrot.slane %v5024_v46, 1  ;;  %v5080_v41 = vshll.u32 %v4934_v23, 16 }
 0x225   : > { %v4984_v58 = vshll.u32 %v4922_v47, 16  ;;  %v4988_v56 = vshrl.u32 %v4922_v47, 16  ;;  %v4933_v47 = vpack.c.bf16 %v4916_v6, %v4915_v49 }
 0x226   : > { %v5003_v59 = vsel %vm2475_vm9, %v4998_v2, %v5002_v30  ;;  %v5027_v28 = vsel %vm2475_vm9, %v5022_v25, %v5026_v31  ;;  %v5030_v52 = vor.u32 %v5028_v62, %v5026_v31  ;;  %v5082_v3 = vrot.slane %v5080_v41, 1  ;;  %v8753_v31 = vld [vmem:[%s381_s29] ss:$0 sm:$0xff] }
 0x227   : > { %v4986_v10 = vrot.slane %v4984_v58, 1  ;;  %v5072_v37 = vshll.u32 %v4933_v47, 16 }
 0x228   : > { %v5035_v57 = vsel %vm2475_vm9, %v5030_v52, %v8618_v19  ;;  %v5076_v19 = vshrl.u32 %v4933_v47, 16 }
 0x229   : > { %6815 = vmatmul.mubr.bf16.gmra.mrb[60].mxu0 %v3083_v24  ;;  %v4990_v17 = vor.u32 %v4988_v56, %v4986_v10  ;;  %v4987_v8 = vsel %vm2475_vm9, %v4982_v14, %v4986_v10 }
 0x22a   : > { %7007 = vmatmul.mubr.bf16.gmra.mrb[28].mxu1 %v4626_v40  ;;  %v5014_v40 = vor.u32 %v5012_v54, %v5010_v18 }
 0x22b   : > { %7026 = vmatprep.mubr.bf16.mxu1 %v4963_v0  ;;  %v4995_v55 = vsel %vm2475_vm9, %v4990_v17, %v4994_v45  ;;  %v4914_v0 = vld [vmem:[#allocation3 + $0x340] sm:$0xff] }
 0x22c   : > { %v5019_v24 = vsel %vm2475_vm9, %v5014_v40, %v5018_v61  ;;  %v4932_v34 = vpack.c.bf16 %v4914_v0, %v4913_v20  ;;  %v8746_v61 = vld [vmem:[%s378_s10] ss:$0 sm:$0xff] }
 0x22e   : > { %v5064_v16 = vshll.u32 %v4932_v34, 16  ;;  %v5068_v27 = vshrl.u32 %v4932_v34, 16 }
 0x230   : > { %v5066_v36 = vrot.slane %v5064_v16, 1 }
 0x232   : > { %7027 = vmatmul.mubr.bf16.vlgmr.msra.gmra.mrb[0].mxu1 %v4971_v21  ;;  %v5070_v58 = vor.u32 %v5068_v27, %v5066_v36  ;;  %v5074_v21 = vrot.slane %v5072_v37, 1 }
 0x233   : > { %7030 = vmatprep.mubr.bf16.mxu1 %v4979_v53 }
 0x234   : > { %v5075_v9 = vsel %vm2475_vm9, %v5070_v58, %v5074_v21  ;;  %v5078_v53 = vor.u32 %v5076_v19, %v5074_v21  ;;  %v5483_v58 = vld [vmem:[#allocation2] sm:$0xff] }
 0x23a   : > { %7031 = vmatmul.mubr.bf16.gmra.mrb[4].mxu1 %v4987_v8 }
 0x23b   : > { %7034 = vmatprep.mubr.bf16.mxu1 %v4995_v55 }
 0x242   : > { %7035 = vmatmul.mubr.bf16.gmra.mrb[8].mxu1 %v5003_v59 }
 0x243   : > { %7038 = vmatprep.mubr.bf16.mxu1 %v5011_v35 }
 0x24a   : > { %7039 = vmatmul.mubr.bf16.gmra.mrb[12].mxu1 %v5019_v24 }
 0x24b   : > { %7042 = vmatprep.mubr.bf16.mxu1 %v5027_v28 }
 0x252   : > { %7043 = vmatmul.mubr.bf16.gmra.mrb[16].mxu1 %v5035_v57 }
 0x253   : > { %7046 = vmatprep.mubr.bf16.mxu1 %v8627_v63  ;;  %v5067_v63 = vsel %vm2475_vm9, %v8642_v22, %v5066_v36 }
 0x25a   : > { %7047 = vmatmul.mubr.bf16.gmra.mrb[20].mxu1 %v8630_v50  ;;  %v5083_v50 = vsel %vm2475_vm9, %v5078_v53, %v5082_v3 }
 0x25b   : > { %7050 = vmatprep.mubr.bf16.mxu1 %v8633_v42 }
 0x262   : > { %7051 = vmatmul.mubr.bf16.gmra.mrb[24].mxu1 %v5067_v63 }
 0x263   : > { %7054 = vmatprep.mubr.bf16.mxu1 %v5075_v9  ;;  %v5486_v9 = vld [vmem:[#allocation2 + $0x18] sm:$0xff] }
 0x26a   : > { %7055 = vmatmul.mubr.bf16.gmra.mrb[28].mxu1 %v5083_v50 }
 0x2c4   : > { %v6788_v5 = vpop.f32.mrb[32].mxu0 }
 0x2c5   : > { %v3182_v42 = vpop.f32.mrb[33].mxu0 }
 0x2c6   : > { %v6789_v7 = vpop.f32.mrb[34].mxu0 }
 0x2c7   : > { %v3185_v13 = vpop.f32.mrb[35].mxu0 }
 0x2cc   : > { %v6792_v10 = vpop.f32.mrb[36].mxu0 }
 0x2cd   : > { %v3198_v43 = vpop.f32.mrb[37].mxu0 }
 0x2ce   : > { %v6793_v14 = vpop.f32.mrb[38].mxu0 }
 0x2cf   : > { %v8691_v56 = vpop.f32.mrb[39].mxu0 }
 0x2d4   : > { %v8693_v45 = vpop.f32.mrb[40].mxu0 }
 0x2d5   : > { %v8695_v22 = vpop.f32.mrb[41].mxu0 }
 0x2d6   : > { %v8697_v12 = vpop.f32.mrb[42].mxu0 }
 0x2d7   : > { %v8699_v17 = vpop.f32.mrb[43].mxu0 }
 0x2dc   : > { %v8701_v51 = vpop.f32.mrb[44].mxu0 }
 0x2dd   : > { %v8703_v8 = vpop.f32.mrb[45].mxu0 }
 0x2de   : > { %v8705_v33 = vpop.f32.mrb[46].mxu0 }
 0x2df   : > { %v8707_v32 = vpop.f32.mrb[47].mxu0 }
 0x2e4   : > { %v8709_v55 = vpop.f32.mrb[48].mxu0 }
 0x2e5   : > { %v8711_v26 = vpop.f32.mrb[49].mxu0 }
 0x2e6   : > { %v8713_v11 = vpop.f32.mrb[50].mxu0 }
 0x2e7   : > { %v8715_v29 = vpop.f32.mrb[51].mxu0 }
 0x2ec   : > { %v8717_v44 = vpop.f32.mrb[52].mxu0 }
 0x2ed   : > { %v8719_v30 = vpop.f32.mrb[53].mxu0 }
 0x2ee   : > { %v8721_v38 = vpop.f32.mrb[54].mxu0 }
 0x2ef   : > { %v8723_v2 = vpop.f32.mrb[55].mxu0 }
 0x2f4   : > { %v8725_v1 = vpop.f32.mrb[56].mxu0 }
 0x2f5   : > { %v8727_v18 = vpop.f32.mrb[57].mxu0 }
 0x2f6   : > { %v8729_v39 = vpop.f32.mrb[58].mxu0 }
 0x2f7   : > { %v8731_v60 = vpop.f32.mrb[59].mxu0 }
 0x2fc   : > { %v8733_v4 = vpop.f32.mrb[60].mxu0 }
 0x2fd   : > { %v8735_v59 = vpop.f32.mrb[61].mxu0 }
 0x2fe   : > { %v8737_v35 = vpop.f32.mrb[62].mxu0 }
 0x2ff   : > { %v8739_v46 = vpop.f32.mrb[63].mxu0 }
 0x305   : > { %v7028_v54 = vpop.f32.mrb[0].mxu1 }
 0x306   : > { %v7058_v40 = vadd.f32 %v7028_v54, %v6788_v5  ;;  %v5182_v15 = vpop.f32.mrb[1].mxu1 }
 0x307   : > { %v7059_v25 = vadd.f32 %v5182_v15, %v3182_v42  ;;  %v7029_v24 = vpop.f32.mrb[2].mxu1 }
 0x308   : > { %v5350_v28 = vmul.f32 %v7058_v40, %v8746_v61  ;;  %v7060_v62 = vadd.f32 %v7029_v24, %v6789_v7  ;;  %v5185_v52 = vpop.f32.mrb[3].mxu1  ;;  %v5484_v7 = vld [vmem:[#allocation2 + $0x8] sm:$0xff] }
 0x309   : > { %v5348_v20 = vmul.f32 %v7059_v25, %v8746_v61  ;;  %v7061_v0 = vadd.f32 %v5185_v52, %v3185_v13 }
 0x30a   : > { %v5389_v57 = vadd.f32 %v8753_v31, %v5350_v28  ;;  %v5351_v34 = vmul.f32 %v7060_v62, %v8746_v61 }
 0x30b   : > { %v5387_v49 = vadd.f32 %v8753_v31, %v5348_v20  ;;  %v5349_v6 = vmul.f32 %v7061_v0, %v8746_v61 }
 0x30c   : > { %v5421_v16 = vmul.f32 0.1, %v5389_v57  ;;  %v5390_v47 = vadd.f32 %v8753_v31, %v5351_v34 }
 0x30d   : > { %v5419_v36 = vmul.f32 0.1, %v5387_v49  ;;  %v5388_v37 = vadd.f32 %v8753_v31, %v5349_v6  ;;  %v7032_v23 = vpop.f32.mrb[4].mxu1 }
 0x30e   : > { %v5453_v27 = vmax.f32 %v5389_v57, %v5421_v16  ;;  %v5422_v21 = vmul.f32 0.1, %v5390_v47  ;;  %v7062_v19 = vadd.f32 %v7032_v23, %v6792_v10  ;;  %v5198_v41 = vpop.f32.mrb[5].mxu1  ;;  %v5489_v57 = vld [vmem:[#allocation2 + $0x30] sm:$0xff] }
 0x30f   : > { %v5451_v63 = vmax.f32 %v5387_v49, %v5419_v36  ;;  %v5420_v53 = vmul.f32 0.1, %v5388_v37  ;;  %v7063_v3 = vadd.f32 %v5198_v41, %v3198_v43  ;;  %v7033_v50 = vpop.f32.mrb[6].mxu1 }
 0x310   : > { %v8763_v5 = vadd.f32 %v5485_v48, %v5453_v27  ;;  %v5454_v42 = vmax.f32 %v5390_v47, %v5422_v21  ;;  %v5354_v13 = vmul.f32 %v7062_v19, %v8746_v61  ;;  %v7064_v54 = vadd.f32 %v7033_v50, %v6793_v14  ;;  %v5201_v40 = vpop.f32.mrb[7].mxu1  ;;  %v5487_v47 = vld [vmem:[#allocation2 + $0x20] sm:$0xff]  ;;  %v5490_v27 = vld [vmem:[#allocation2 + $0x38] sm:$0xff] }
 0x311   : > { %v8766_v15 = vadd.f32 %v5483_v58, %v5451_v63  ;;  %v5452_v25 = vmax.f32 %v5388_v37, %v5420_v53  ;;  %v5352_v24 = vmul.f32 %v7063_v3, %v8746_v61  ;;  %v7065_v10 = vadd.f32 %v5201_v40, %v8691_v56 }
 0x312   : > { %5549 = vst [vmem:[#allocation2 + $0x10] sm:$0xff] %v8763_v5  ;;  %v8771_v28 = vadd.f32 %v5486_v9, %v5454_v42  ;;  %v5393_v43 = vadd.f32 %v8753_v31, %v5354_v13  ;;  %v5355_v62 = vmul.f32 %v7064_v54, %v8746_v61  ;;  %v5488_v9 = vld [vmem:[#allocation2 + $0x28] sm:$0xff] }
 0x313   : > { %5547 = vst [vmem:[#allocation2] sm:$0xff] %v8766_v15  ;;  %v8776_v52 = vadd.f32 %v5484_v7, %v5452_v25  ;;  %v5391_v14 = vadd.f32 %v8753_v31, %v5352_v24  ;;  %v5353_v20 = vmul.f32 %v7065_v10, %v8746_v61 }
 0x314   : > { %5550 = vst [vmem:[#allocation2 + $0x18] sm:$0xff] %v8771_v28  ;;  %v5425_v0 = vmul.f32 0.1, %v5393_v43  ;;  %v5394_v56 = vadd.f32 %v8753_v31, %v5355_v62 }
 0x315   : > { %5548 = vst [vmem:[#allocation2 + $0x8] sm:$0xff] %v8776_v52  ;;  %v5423_v34 = vmul.f32 0.1, %v5391_v14  ;;  %v5392_v49 = vadd.f32 %v8753_v31, %v5353_v20  ;;  %v7036_v6 = vpop.f32.mrb[8].mxu1 }
 0x316   : > { %v5457_v16 = vmax.f32 %v5393_v43, %v5425_v0  ;;  %v5426_v48 = vmul.f32 0.1, %v5394_v56  ;;  %v7066_v36 = vadd.f32 %v7036_v6, %v8693_v45  ;;  %v5214_v37 = vpop.f32.mrb[9].mxu1  ;;  %v5493_v43 = vld [vmem:[#allocation2 + $0x50] sm:$0xff] }
 0x317   : > { %v5455_v23 = vmax.f32 %v5391_v14, %v5423_v34  ;;  %v5424_v58 = vmul.f32 0.1, %v5392_v49  ;;  %v7067_v21 = vadd.f32 %v5214_v37, %v8695_v22  ;;  %v7037_v19 = vpop.f32.mrb[10].mxu1 }
 0x318   : > { %v8786_v41 = vadd.f32 %v5489_v57, %v5457_v16  ;;  %v5458_v63 = vmax.f32 %v5394_v56, %v5426_v48  ;;  %v5358_v53 = vmul.f32 %v7066_v36, %v8746_v61  ;;  %v7068_v3 = vadd.f32 %v7037_v19, %v8697_v12  ;;  %v5217_v50 = vpop.f32.mrb[11].mxu1  ;;  %v5491_v56 = vld [vmem:[#allocation2 + $0x40] sm:$0xff]  ;;  %v5494_v16 = vld [vmem:[#allocation2 + $0x58] sm:$0xff] }
 0x319   : > { %v8790_v42 = vadd.f32 %v5487_v47, %v5455_v23  ;;  %v5456_v7 = vmax.f32 %v5392_v49, %v5424_v58  ;;  %v5356_v45 = vmul.f32 %v7067_v21, %v8746_v61  ;;  %v7069_v13 = vadd.f32 %v5217_v50, %v8699_v17 }
 0x31a   : > { %5553 = vst [vmem:[#allocation2 + $0x30] sm:$0xff] %v8786_v41  ;;  %v8795_v22 = vadd.f32 %v5490_v27, %v5458_v63  ;;  %v5397_v54 = vadd.f32 %v8753_v31, %v5358_v53  ;;  %v5359_v40 = vmul.f32 %v7068_v3, %v8746_v61  ;;  %v5492_v27 = vld [vmem:[#allocation2 + $0x48] sm:$0xff] }
 0x31b   : > { %5551 = vst [vmem:[#allocation2 + $0x20] sm:$0xff] %v8790_v42  ;;  %v8800_v25 = vadd.f32 %v5488_v9, %v5456_v7  ;;  %v5395_v12 = vadd.f32 %v8753_v31, %v5356_v45  ;;  %v5357_v24 = vmul.f32 %v7069_v13, %v8746_v61 }
 0x31c   : > { %5554 = vst [vmem:[#allocation2 + $0x38] sm:$0xff] %v8795_v22  ;;  %v5429_v10 = vmul.f32 0.1, %v5397_v54  ;;  %v5398_v17 = vadd.f32 %v8753_v31, %v5359_v40 }
 0x31d   : > { %5552 = vst [vmem:[#allocation2 + $0x28] sm:$0xff] %v8800_v25  ;;  %v5427_v62 = vmul.f32 0.1, %v5395_v12  ;;  %v5396_v14 = vadd.f32 %v8753_v31, %v5357_v24  ;;  %v7040_v20 = vpop.f32.mrb[12].mxu1 }
 0x31e   : > { %v5461_v0 = vmax.f32 %v5397_v54, %v5429_v10  ;;  %v5430_v57 = vmul.f32 0.1, %v5398_v17  ;;  %v7070_v34 = vadd.f32 %v7040_v20, %v8701_v51  ;;  %v5230_v49 = vpop.f32.mrb[13].mxu1  ;;  %v5497_v54 = vld [vmem:[#allocation2 + $0x70] sm:$0xff] }
 0x31f   : > { %v5459_v6 = vmax.f32 %v5395_v12, %v5427_v62  ;;  %v5428_v47 = vmul.f32 0.1, %v5396_v14  ;;  %v7071_v48 = vadd.f32 %v5230_v49, %v8703_v8  ;;  %v7041_v36 = vpop.f32.mrb[14].mxu1 }
 0x320   : > { %v8810_v37 = vadd.f32 %v5493_v43, %v5461_v0  ;;  %v5462_v23 = vmax.f32 %v5398_v17, %v5430_v57  ;;  %v5362_v58 = vmul.f32 %v7070_v34, %v8746_v61  ;;  %v7072_v21 = vadd.f32 %v7041_v36, %v8705_v33  ;;  %v5233_v19 = vpop.f32.mrb[15].mxu1  ;;  %v5495_v17 = vld [vmem:[#allocation2 + $0x60] sm:$0xff]  ;;  %v5498_v0 = vld [vmem:[#allocation2 + $0x78] sm:$0xff] }
 0x321   : > { %v8814_v63 = vadd.f32 %v5491_v56, %v5459_v6  ;;  %v5460_v9 = vmax.f32 %v5396_v14, %v5428_v47  ;;  %v5360_v51 = vmul.f32 %v7071_v48, %v8746_v61  ;;  %v7073_v53 = vadd.f32 %v5233_v19, %v8707_v32 }
 0x322   : > { %5557 = vst [vmem:[#allocation2 + $0x50] sm:$0xff] %v8810_v37  ;;  %v8819_v8 = vadd.f32 %v5494_v16, %v5462_v23  ;;  %v5401_v3 = vadd.f32 %v8753_v31, %v5362_v58  ;;  %v5363_v50 = vmul.f32 %v7072_v21, %v8746_v61  ;;  %v5496_v16 = vld [vmem:[#allocation2 + $0x68] sm:$0xff] }
 0x323   : > { %5555 = vst [vmem:[#allocation2 + $0x40] sm:$0xff] %v8814_v63  ;;  %v8824_v7 = vadd.f32 %v5492_v27, %v5460_v9  ;;  %v5399_v33 = vadd.f32 %v8753_v31, %v5360_v51  ;;  %v5361_v45 = vmul.f32 %v7073_v53, %v8746_v61 }
 0x324   : > { %5558 = vst [vmem:[#allocation2 + $0x58] sm:$0xff] %v8819_v8  ;;  %v5433_v13 = vmul.f32 0.1, %v5401_v3  ;;  %v5402_v32 = vadd.f32 %v8753_v31, %v5363_v50 }
 0x325   : > { %5556 = vst [vmem:[#allocation2 + $0x48] sm:$0xff] %v8824_v7  ;;  %v5431_v40 = vmul.f32 0.1, %v5399_v33  ;;  %v5400_v12 = vadd.f32 %v8753_v31, %v5361_v45  ;;  %v7044_v24 = vpop.f32.mrb[16].mxu1 }
 0x326   : > { %v5465_v10 = vmax.f32 %v5401_v3, %v5433_v13  ;;  %v5434_v43 = vmul.f32 0.1, %v5402_v32  ;;  %v7074_v62 = vadd.f32 %v7044_v24, %v8709_v55  ;;  %v5246_v14 = vpop.f32.mrb[17].mxu1  ;;  %v5501_v3 = vld [vmem:[#allocation2 + $0x90] sm:$0xff] }
 0x327   : > { %v5463_v20 = vmax.f32 %v5399_v33, %v5431_v40  ;;  %v5432_v56 = vmul.f32 0.1, %v5400_v12  ;;  %v7075_v57 = vadd.f32 %v5246_v14, %v8711_v26  ;;  %v7045_v34 = vpop.f32.mrb[18].mxu1 }
 0x328   : > { %v8834_v49 = vadd.f32 %v5497_v54, %v5465_v10  ;;  %v5466_v6 = vmax.f32 %v5402_v32, %v5434_v43  ;;  %v5366_v47 = vmul.f32 %v7074_v62, %v8746_v61  ;;  %v7076_v48 = vadd.f32 %v7045_v34, %v8713_v11  ;;  %v5249_v36 = vpop.f32.mrb[19].mxu1  ;;  %v5499_v32 = vld [vmem:[#allocation2 + $0x80] sm:$0xff]  ;;  %v5502_v10 = vld [vmem:[#allocation2 + $0x98] sm:$0xff] }
 0x329   : > { %v8838_v23 = vadd.f32 %v5495_v17, %v5463_v20  ;;  %v5464_v27 = vmax.f32 %v5400_v12, %v5432_v56  ;;  %v5364_v55 = vmul.f32 %v7075_v57, %v8746_v61  ;;  %v7077_v58 = vadd.f32 %v5249_v36, %v8715_v29 }
 0x32a   : > { %5561 = vst [vmem:[#allocation2 + $0x70] sm:$0xff] %v8834_v49  ;;  %v8843_v26 = vadd.f32 %v5498_v0, %v5466_v6  ;;  %v5405_v21 = vadd.f32 %v8753_v31, %v5366_v47  ;;  %v5367_v19 = vmul.f32 %v7076_v48, %v8746_v61  ;;  %v5500_v0 = vld [vmem:[#allocation2 + $0x88] sm:$0xff] }
 0x32b   : > { %5559 = vst [vmem:[#allocation2 + $0x60] sm:$0xff] %v8838_v23  ;;  %v8848_v9 = vadd.f32 %v5496_v16, %v5464_v27  ;;  %v5403_v11 = vadd.f32 %v8753_v31, %v5364_v55  ;;  %v5365_v51 = vmul.f32 %v7077_v58, %v8746_v61 }
 0x32c   : > { %5562 = vst [vmem:[#allocation2 + $0x78] sm:$0xff] %v8843_v26  ;;  %v5437_v53 = vmul.f32 0.1, %v5405_v21  ;;  %v5406_v29 = vadd.f32 %v8753_v31, %v5367_v19 }
 0x32d   : > { %5560 = vst [vmem:[#allocation2 + $0x68] sm:$0xff] %v8848_v9  ;;  %v5435_v50 = vmul.f32 0.1, %v5403_v11  ;;  %v5404_v33 = vadd.f32 %v8753_v31, %v5365_v51  ;;  %v7048_v45 = vpop.f32.mrb[20].mxu1 }
 0x32e   : > { %v5469_v13 = vmax.f32 %v5405_v21, %v5437_v53  ;;  %v5438_v54 = vmul.f32 0.1, %v5406_v29  ;;  %v7078_v40 = vadd.f32 %v7048_v45, %v8717_v44  ;;  %v5262_v12 = vpop.f32.mrb[21].mxu1  ;;  %v5505_v21 = vld [vmem:[#allocation2 + $0xb0] sm:$0xff] }
 0x32f   : > { %v5467_v24 = vmax.f32 %v5403_v11, %v5435_v50  ;;  %v5436_v17 = vmul.f32 0.1, %v5404_v33  ;;  %v7079_v43 = vadd.f32 %v5262_v12, %v8719_v30  ;;  %v7049_v62 = vpop.f32.mrb[22].mxu1 }
 0x330   : > { %v8858_v14 = vadd.f32 %v5501_v3, %v5469_v13  ;;  %v5470_v20 = vmax.f32 %v5406_v29, %v5438_v54  ;;  %v5370_v56 = vmul.f32 %v7078_v40, %v8746_v61  ;;  %v7080_v57 = vadd.f32 %v7049_v62, %v8721_v38  ;;  %v5265_v34 = vpop.f32.mrb[23].mxu1  ;;  %v5503_v29 = vld [vmem:[#allocation2 + $0xa0] sm:$0xff]  ;;  %v5506_v13 = vld [vmem:[#allocation2 + $0xb8] sm:$0xff] }
 0x331   : > { %v8862_v6 = vadd.f32 %v5499_v32, %v5467_v24  ;;  %v5468_v16 = vmax.f32 %v5404_v33, %v5436_v17  ;;  %v5368_v44 = vmul.f32 %v7079_v43, %v8746_v61  ;;  %v7081_v47 = vadd.f32 %v5265_v34, %v8723_v2 }
 0x332   : > { %5565 = vst [vmem:[#allocation2 + $0x90] sm:$0xff] %v8858_v14  ;;  %v8867_v30 = vadd.f32 %v5502_v10, %v5470_v20  ;;  %v5409_v48 = vadd.f32 %v8753_v31, %v5370_v56  ;;  %v5371_v36 = vmul.f32 %v7080_v57, %v8746_v61  ;;  %v5504_v10 = vld [vmem:[#allocation2 + $0xa8] sm:$0xff] }
 0x333   : > { %5563 = vst [vmem:[#allocation2 + $0x80] sm:$0xff] %v8862_v6  ;;  %v8872_v27 = vadd.f32 %v5500_v0, %v5468_v16  ;;  %v5407_v38 = vadd.f32 %v8753_v31, %v5368_v44  ;;  %v5369_v55 = vmul.f32 %v7081_v47, %v8746_v61 }
 0x334   : > { %5566 = vst [vmem:[#allocation2 + $0x98] sm:$0xff] %v8867_v30  ;;  %v5441_v58 = vmul.f32 0.1, %v5409_v48  ;;  %v5410_v2 = vadd.f32 %v8753_v31, %v5371_v36 }
 0x335   : > { %5564 = vst [vmem:[#allocation2 + $0x88] sm:$0xff] %v8872_v27  ;;  %v5439_v19 = vmul.f32 0.1, %v5407_v38  ;;  %v5408_v11 = vadd.f32 %v8753_v31, %v5369_v55  ;;  %v7052_v51 = vpop.f32.mrb[24].mxu1 }
 0x336   : > { %v5473_v53 = vmax.f32 %v5409_v48, %v5441_v58  ;;  %v5442_v3 = vmul.f32 0.1, %v5410_v2  ;;  %v7082_v50 = vadd.f32 %v7052_v51, %v8725_v1  ;;  %v5278_v33 = vpop.f32.mrb[25].mxu1  ;;  %v5509_v48 = vld [vmem:[#allocation2 + $0xd0] sm:$0xff] }
 0x337   : > { %v5471_v45 = vmax.f32 %v5407_v38, %v5439_v19  ;;  %v5440_v32 = vmul.f32 0.1, %v5408_v11  ;;  %v7083_v54 = vadd.f32 %v5278_v33, %v8727_v18  ;;  %v7053_v40 = vpop.f32.mrb[26].mxu1 }
 0x338   : > { %v8882_v12 = vadd.f32 %v5505_v21, %v5473_v53  ;;  %v5474_v24 = vmax.f32 %v5410_v2, %v5442_v3  ;;  %v5374_v17 = vmul.f32 %v7082_v50, %v8746_v61  ;;  %v7084_v43 = vadd.f32 %v7053_v40, %v8729_v39  ;;  %v5281_v62 = vpop.f32.mrb[27].mxu1  ;;  %v5507_v2 = vld [vmem:[#allocation2 + $0xc0] sm:$0xff]  ;;  %v5510_v53 = vld [vmem:[#allocation2 + $0xd8] sm:$0xff] }
 0x339   : > { %v8886_v20 = vadd.f32 %v5503_v29, %v5471_v45  ;;  %v5472_v0 = vmax.f32 %v5408_v11, %v5440_v32  ;;  %v5372_v1 = vmul.f32 %v7083_v54, %v8746_v61  ;;  %v7085_v56 = vadd.f32 %v5281_v62, %v8731_v60 }
 0x33a   : > { %5569 = vst [vmem:[#allocation2 + $0xb0] sm:$0xff] %v8882_v12  ;;  %v8891_v18 = vadd.f32 %v5506_v13, %v5474_v24  ;;  %v5413_v57 = vadd.f32 %v8753_v31, %v5374_v17  ;;  %v5375_v34 = vmul.f32 %v7084_v43, %v8746_v61  ;;  %v5508_v13 = vld [vmem:[#allocation2 + $0xc8] sm:$0xff] }
 0x33b   : > { %5567 = vst [vmem:[#allocation2 + $0xa0] sm:$0xff] %v8886_v20  ;;  %v8896_v16 = vadd.f32 %v5504_v10, %v5472_v0  ;;  %v5411_v39 = vadd.f32 %v8753_v31, %v5372_v1  ;;  %v5373_v44 = vmul.f32 %v7085_v56, %v8746_v61 }
 0x33c   : > { %5570 = vst [vmem:[#allocation2 + $0xb8] sm:$0xff] %v8891_v18  ;;  %v5445_v47 = vmul.f32 0.1, %v5413_v57  ;;  %v5414_v60 = vadd.f32 %v8753_v31, %v5375_v34 }
 0x33d   : > { %5568 = vst [vmem:[#allocation2 + $0xa8] sm:$0xff] %v8896_v16  ;;  %v5443_v36 = vmul.f32 0.1, %v5411_v39  ;;  %v5412_v38 = vadd.f32 %v8753_v31, %v5373_v44  ;;  %v7056_v55 = vpop.f32.mrb[28].mxu1 }
 0x33e   : > { %v5477_v58 = vmax.f32 %v5413_v57, %v5445_v47  ;;  %v5446_v21 = vmul.f32 0.1, %v5414_v60  ;;  %v7086_v19 = vadd.f32 %v7056_v55, %v8733_v4  ;;  %v5294_v11 = vpop.f32.mrb[29].mxu1  ;;  %v5511_v47 = vld [vmem:[#allocation2 + $0xe0] sm:$0xff] }
 0x33f   : > { %v5475_v51 = vmax.f32 %v5411_v39, %v5443_v36  ;;  %v5444_v29 = vmul.f32 0.1, %v5412_v38  ;;  %v7087_v3 = vadd.f32 %v5294_v11, %v8735_v59  ;;  %v7057_v50 = vpop.f32.mrb[30].mxu1  ;;  %v5514_v36 = vld [vmem:[#allocation2 + $0xf8] sm:$0xff] }
 0x340   : > { %v8906_v33 = vadd.f32 %v5509_v48, %v5477_v58  ;;  %v5478_v45 = vmax.f32 %v5414_v60, %v5446_v21  ;;  %v5378_v32 = vmul.f32 %v7086_v19, %v8746_v61  ;;  %v7088_v54 = vadd.f32 %v7057_v50, %v8737_v35  ;;  %v5297_v40 = vpop.f32.mrb[31].mxu1 }
 0x341   : > { %v8910_v24 = vadd.f32 %v5507_v2, %v5475_v51  ;;  %v5476_v10 = vmax.f32 %v5412_v38, %v5444_v29  ;;  %v5376_v4 = vmul.f32 %v7087_v3, %v8746_v61  ;;  %v7089_v17 = vadd.f32 %v5297_v40, %v8739_v46  ;;  %v5513_v46 = vld [vmem:[#allocation2 + $0xf0] sm:$0xff]  ;;  %v5512_v2 = vld [vmem:[#allocation2 + $0xe8] sm:$0xff] }
 0x342   : > { %5573 = vst [vmem:[#allocation2 + $0xd0] sm:$0xff] %v8906_v33  ;;  %v5542_v59 = vadd.f32 %v5510_v53, %v5478_v45  ;;  %v5417_v43 = vadd.f32 %v8753_v31, %v5378_v32  ;;  %v5379_v62 = vmul.f32 %v7088_v54, %v8746_v61  ;;  %v6236_v51 = vpack.c.bf16 (!%p6094_p8), %v8771_v28, %v8763_v5 }
 0x343   : > { %5571 = vst [vmem:[#allocation2 + $0xc0] sm:$0xff] %v8910_v24  ;;  %v5540_v0 = vadd.f32 %v5508_v13, %v5476_v10  ;;  %v5415_v35 = vadd.f32 %v8753_v31, %v5376_v4  ;;  %v5377_v1 = vmul.f32 %v7089_v17, %v8746_v61  ;;  %v6241_v53 = vpack.c.bf16 (!%p6094_p8), %v8800_v25, %v8790_v42 }
 0x344   : > { %5574 = vst [vmem:[#allocation2 + $0xd8] sm:$0xff] %v5542_v59  ;;  %v5449_v56 = vmul.f32 0.1, %v5417_v43  ;;  %v5418_v57 = vadd.f32 %v8753_v31, %v5379_v62  ;;  %v6246_v29 = vpack.c.bf16 (!%p6094_p8), %v8795_v22, %v8786_v41  ;;  %v6251_v3 = vpack.c.bf16 (!%p6094_p8), %v8824_v7, %v8814_v63  ;;  %6323 = vst [vmem:[%s7591_s19 + $0x8] sm:$0xff] (!%p6094_p8), %v6236_v51  }
 0x345   : > { %5572 = vst [vmem:[#allocation2 + $0xc8] sm:$0xff] %v5540_v0  ;;  %v5447_v34 = vmul.f32 0.1, %v5415_v35  ;;  %v5416_v39 = vadd.f32 %v8753_v31, %v5377_v1  ;;  %v6231_v31 = vpack.c.bf16 (!%p6094_p8), %v8776_v52, %v8766_v15  ;;  %v6256_v50 = vpack.c.bf16 (!%p6094_p8), %v8819_v8, %v8810_v37  ;;  %6324 = vst [vmem:[%s7591_s19 + $0x10] sm:$0xff] (!%p6094_p8), %v6241_v53  }
 0x346   : > { %v5481_v44 = vmax.f32 %v5417_v43, %v5449_v56  ;;  %v5450_v60 = vmul.f32 0.1, %v5418_v57  ;;  %v6261_v15 = vpack.c.bf16 (!%p6094_p8), %v8848_v9, %v8838_v23  ;;  %v6266_v5 = vpack.c.bf16 (!%p6094_p8), %v8843_v26, %v8834_v49  ;;  %6325 = vst [vmem:[%s7591_s19 + $0x18] sm:$0xff] (!%p6094_p8), %v6246_v29   ;;  %6326 = vst [vmem:[%s7591_s19 + $0x20] sm:$0xff] (!%p6094_p8), %v6251_v3  }
 0x347   : > { %v5479_v48 = vmax.f32 %v5415_v35, %v5447_v34  ;;  %v5448_v38 = vmul.f32 0.1, %v5416_v39  ;;  %5582 = sbr.rel (%p6094_p8) target bundleno = 848 (0x350), region = 56  ;;  %6232 = vst [vmem:[%s7591_s19] sm:$0xff] (!%p6094_p8), %v6231_v31   ;;  %v6271_v28 = vpack.c.bf16 (!%p6094_p8), %v8872_v27, %v8862_v6  ;;  %v6276_v52 = vpack.c.bf16 (!%p6094_p8), %v8867_v30, %v8858_v14  ;;  %6327 = vst [vmem:[%s7591_s19 + $0x28] sm:$0xff] (!%p6094_p8), %v6256_v50  }
 0x348   : > { %v5545_v55 = vadd.f32 %v5513_v46, %v5481_v44  ;;  %v5482_v58 = vmax.f32 %v5418_v57, %v5450_v60  ;;  %v6281_v41 = vpack.c.bf16 (!%p6094_p8), %v8896_v16, %v8886_v20  ;;  %v6286_v42 = vpack.c.bf16 (!%p6094_p8), %v8891_v18, %v8882_v12  ;;  %6328 = vst [vmem:[%s7591_s19 + $0x30] sm:$0xff] (!%p6094_p8), %v6261_v15  }
 0x349   : > { %v5543_v21 = vadd.f32 %v5511_v47, %v5479_v48  ;;  %v5480_v61 = vmax.f32 %v5416_v39, %v5448_v38  ;;  %6329 = vst [vmem:[%s7591_s19 + $0x38] sm:$0xff] (!%p6094_p8), %v6266_v5   ;;  %v6291_v22 = vpack.c.bf16 (!%p6094_p8), %v5540_v0, %v8910_v24  ;;  %v6296_v25 = vpack.c.bf16 (!%p6094_p8), %v5542_v59, %v8906_v33 }
 0x34a   : > { %5577 = vst [vmem:[#allocation2 + $0xf0] sm:$0xff] %v5545_v55  ;;  %v5546_v19 = vadd.f32 %v5514_v36, %v5482_v58  ;;  %6330 = vst [vmem:[%s7591_s19 + $0x40] sm:$0xff] (!%p6094_p8), %v6271_v28  }
 0x34b   : > { %5575 = vst [vmem:[#allocation2 + $0xe0] sm:$0xff] %v5543_v21  ;;  %v5544_v11 = vadd.f32 %v5512_v2, %v5480_v61  ;;  %6331 = vst [vmem:[%s7591_s19 + $0x48] sm:$0xff] (!%p6094_p8), %v6276_v52  }
 0x34c   : > { %5578 = vst [vmem:[#allocation2 + $0xf8] sm:$0xff] %v5546_v19  ;;  %v6306_v63 = vpack.c.bf16 (!%p6094_p8), %v5546_v19, %v5545_v55  ;;  %6332 = vst [vmem:[%s7591_s19 + $0x50] sm:$0xff] (!%p6094_p8), %v6281_v41  }
 0x34d   : > { %5576 = vst [vmem:[#allocation2 + $0xe8] sm:$0xff] %v5544_v11  ;;  %v6301_v37 = vpack.c.bf16 (!%p6094_p8), %v5544_v11, %v5543_v21  ;;  %6333 = vst [vmem:[%s7591_s19 + $0x58] sm:$0xff] (!%p6094_p8), %v6286_v42  }
 0x34e   : > { %6334 = vst [vmem:[%s7591_s19 + $0x60] sm:$0xff] %v6291_v22   ;;  %6335 = vst [vmem:[%s7591_s19 + $0x68] sm:$0xff] %v6296_v25  }
 0x34f   : > { %6336 = vst [vmem:[%s7591_s19 + $0x70] sm:$0xff] %v6301_v37   ;;  %6337 = vst [vmem:[%s7591_s19 + $0x78] sm:$0xff] %v6306_v63  }
 0x350 PF: > { %s17_s28 = sadd.s32 1, %s7476_s28   ;;  %s9057_s29 = sld [smem:[#allocation4_spill]] }
 0x351   : > { %p14_p9 = scmp.ge.s32.totalorder %s17_s28, 6   ;;  %s9058_s8 = sld [smem:[#allocation5_spill]] }
 0x352   : > { %s9059_s24 = smov %s7468_s26  ;;  %s9060_s25 = smov %s7472_s27 }
 0x353   :  { %16 = sbr.rel (!%p14_p9) target bundleno = 3 (0x3), region = 112 }
 0x356   : > { %s9061_s26 = smov %s9057_s29 }
 0x357   : > { %s9062_s27 = smov %s9058_s8 }

</bundles_post_ra>
